<compile_context>
chip_gen: v7x
topology: tpu7x:2x2x1
jax: 0.10.0
libtpu: 0.0.40
codegen_flags: <defaults>
</compile_context>

<pallas_src>
import functools
import math

import jax
import jax.numpy as jnp
from jax.experimental import pallas as pl
from jax.experimental.pallas import tpu as pltpu


HEAD_PAD = 128   # lane-dense padded output channels for the fused 1x1 heads
CIN_PAD = 8      # pad the 3 RGB channels to 8 for a friendlier first matmul K


# ----------------------------------------------------------------------------
# Pallas kernels
# ----------------------------------------------------------------------------
def _conv_row_kernel(x_ref, w_ref, shift_ref, o_ref, acc_ref, *, activation):
    """One 'same'-conv output row, accumulated over kh row-taps (grid axis 2).

    Per grid step (n, h, di):
      x_ref:     (W_out + kw - 1, Cin)  padded input row  h + di     (bf16)
      w_ref:     (kh, kw, Cin, Cout)    full weights, resident       (bf16)
      shift_ref: (1, Cout)              folded BN shift              (f32)
      o_ref:     (W_out, Cout)          output row h
      acc_ref:   (W_out, Cout)          f32 accumulator scratch
    """
    kw = w_ref.shape[1]
    w_out = o_ref.shape[0]
    di = pl.program_id(2)

    @pl.when(di == 0)
    def _init():
        acc_ref[...] = jnp.zeros_like(acc_ref)

    # kw column taps: static shifted slices of the padded row, no im2col.
    s = jnp.dot(x_ref[0:w_out, :], w_ref[di, 0, :, :],
                preferred_element_type=jnp.float32)
    for dj in range(1, kw):
        s = s + jnp.dot(x_ref[dj:dj + w_out, :], w_ref[di, dj, :, :],
                        preferred_element_type=jnp.float32)
    acc_ref[...] += s

    @pl.when(di == pl.num_programs(2) - 1)
    def _finalize():
        r = acc_ref[...] + shift_ref[...]              # f32 epilogue
        if activation == "relu":
            r = jnp.maximum(r, 0.0)
        elif activation == "head":
            # fused heads: sigmoid only on lane 0 (classifier), linear elsewhere.
            lane = jax.lax.broadcasted_iota(jnp.int32, r.shape, 1)
            r = jnp.where(lane == 0, jax.nn.sigmoid(r), r)
        o_ref[...] = r.astype(o_ref.dtype)


def _maxpool2x2_kernel(x_ref, o_ref):
    """x_ref: (2, W//2, 2*C) = two input rows with column pairs packed into
    the lane dim; o_ref: (W//2, C)."""
    c = o_ref.shape[-1]
    m = jnp.maximum(x_ref[0], x_ref[1])                # row-pair max
    o_ref[...] = jnp.maximum(m[:, :c], m[:, c:])       # column-pair max


# ----------------------------------------------------------------------------
# Wrappers
# ----------------------------------------------------------------------------
def conv2d_bn_act(x, w, shift, activation, out_dtype=jnp.bfloat16):
    """'same'-padding stride-1 conv + folded-BN shift + activation.

    x: (N, H, W, Cin) bf16;  w: (kh, kw, Cin, Cout) bf16 (BN scale folded);
    shift: (1, Cout) f32.  Returns (N, H, W, Cout) in out_dtype.
    """
    n, h, wdim, cin = x.shape
    kh, kw, wcin, cout = w.shape
    assert wcin == cin
    ph, pw = kh // 2, kw // 2
    # One cheap 'same' pad instead of a materialized [M, kh*kw*Cin] im2col.
    xp = jnp.pad(x, ((0, 0), (ph, kh - 1 - ph), (pw, kw - 1 - pw), (0, 0)))
    wp = wdim + kw - 1

    return pl.pallas_call(
        functools.partial(_conv_row_kernel, activation=activation),
        out_shape=jax.ShapeDtypeStruct((n, h, wdim, cout), out_dtype),
        grid=(n, h, kh),
        in_specs=[
            # padded input row (h + di); block size 1 along H expresses the shift.
            pl.BlockSpec((None, None, wp, cin),
                         lambda i, j, di: (i, j + di, 0, 0)),
            # full weight stays resident in VMEM (constant block index).
            pl.BlockSpec((kh, kw, cin, cout),
                         lambda i, j, di: (0, 0, 0, 0)),
            pl.BlockSpec((1, cout), lambda i, j, di: (0, 0)),
        ],
        out_specs=pl.BlockSpec((None, None, wdim, cout),
                               lambda i, j, di: (i, j, 0, 0)),
        scratch_shapes=[pltpu.VMEM((wdim, cout), jnp.float32)],
        compiler_params=pltpu.CompilerParams(
            dimension_semantics=("parallel", "parallel", "arbitrary"),
            vmem_limit_bytes=32 * 1024 * 1024),
    )(xp, w, shift)


def maxpool2x2(x):
    """2x2 stride-2 max pool on NHWC, tiled over (N, H//2) row pairs."""
    n, h, w, c = x.shape
    h2, w2 = h // 2, w // 2
    # contiguous reshape: column pair (2w, 2w+1) packed into the lane dim.
    xr = x.reshape(n, h, w2, 2 * c)
    return pl.pallas_call(
        _maxpool2x2_kernel,
        out_shape=jax.ShapeDtypeStruct((n, h2, w2, c), x.dtype),
        grid=(n, h2),
        in_specs=[pl.BlockSpec((None, 2, w2, 2 * c), lambda i, j: (i, j, 0, 0))],
        out_specs=pl.BlockSpec((None, None, w2, c), lambda i, j: (i, j, 0, 0)),
        compiler_params=pltpu.CompilerParams(
            dimension_semantics=("parallel", "parallel")),
    )(xr)


# ----------------------------------------------------------------------------
# Deterministic parameter init (matches shapes in RPNHead.__init__)
# ----------------------------------------------------------------------------
def _init_conv_bn(key, cin, cout, k, cin_pad=None):
    k1, k2, k3, k4, k5 = jax.random.split(key, 5)
    fan_in = k * k * cin
    w = jax.random.normal(k1, (k, k, cin, cout), jnp.float32) / math.sqrt(fan_in)
    gamma = 1.0 + 0.1 * jax.random.normal(k2, (cout,), jnp.float32)
    beta = 0.1 * jax.random.normal(k3, (cout,), jnp.float32)
    mean = 0.1 * jax.random.normal(k4, (cout,), jnp.float32)
    var = jnp.abs(1.0 + 0.1 * jax.random.normal(k5, (cout,), jnp.float32))
    eps = 1e-5
    scale = gamma / jnp.sqrt(var + eps)
    shift = beta - mean * scale
    # Fold the BN scale into the conv weights (eval-mode BN).
    w = w * scale[None, None, None, :]
    if cin_pad is not None and cin_pad > cin:
        w = jnp.pad(w, ((0, 0), (0, 0), (0, cin_pad - cin), (0, 0)))
    return dict(w=w.astype(jnp.bfloat16),
                shift=shift.reshape(1, cout).astype(jnp.float32))


def init_rpn_params(key):
    backbone_defs = [(3, 16, 5), (16, 32, 5), (32, 64, 5), (64, 128, 5),
                     (128, 256, 5)]
    params = {"backbone": []}
    for li, (cin, cout, k) in enumerate(backbone_defs):
        key, sub = jax.random.split(key)
        cin_pad = CIN_PAD if li == 0 else None
        params["backbone"].append(_init_conv_bn(sub, cin, cout, k, cin_pad))
    key, sub = jax.random.split(key)
    params["inter"] = _init_conv_bn(sub, 256, 256, 3)

    # Fused 1x1 heads: cls weight in output lane 0, bbox weights in lanes 1..4,
    # zero-padded to a lane-dense 128-wide output.
    key, k1, k2 = jax.random.split(key, 3)
    w_cls = jax.random.normal(k1, (1, 1, 256, 1), jnp.float32) / math.sqrt(256)
    w_reg = jax.random.normal(k2, (1, 1, 256, 4), jnp.float32) / math.sqrt(256)
    w_head = jnp.zeros((1, 1, 256, HEAD_PAD), jnp.float32)
    w_head = w_head.at[..., 0:1].set(w_cls)
    w_head = w_head.at[..., 1:5].set(w_reg)
    params["w_head"] = w_head.astype(jnp.bfloat16)
    params["shift_head"] = jnp.zeros((1, HEAD_PAD), jnp.float32)
    return params


def create_anchors(aspect_ratio, scale, grid_sizes, stride):
    """jnp port of RPNHead.create_anchors (not used in forward compute)."""
    gh, gw = grid_sizes
    h = scale / jnp.sqrt(aspect_ratio)
    w = aspect_ratio * h
    ci = jnp.arange(gh, dtype=jnp.float32) * stride + stride / 2.0
    cj = jnp.arange(gw, dtype=jnp.float32) * stride + stride / 2.0
    cx = jnp.broadcast_to(ci[:, None], (gh, gw))
    cy = jnp.broadcast_to(cj[None, :], (gh, gw))
    a = jnp.stack([cx - w / 2, cy - h / 2, cx + w / 2, cy + h / 2], axis=-1)
    a = a.at[:, :, 0::2].set(jnp.clip(a[:, :, 0::2], 0, gh * stride))
    a = a.at[:, :, 1::2].set(jnp.clip(a[:, :, 1::2], 0, gw * stride))
    return a


# ----------------------------------------------------------------------------
# RPNHead forward
# ----------------------------------------------------------------------------
def rpn_head_forward(x_nchw, params, grid_size):
    # NCHW (PyTorch convention) -> NHWC; activations carried in bf16.
    x = jnp.transpose(x_nchw, (0, 2, 3, 1)).astype(jnp.bfloat16)
    # zero-pad RGB channels 3 -> 8 (layer-1 weights are zero-padded to match).
    cin0 = params["backbone"][0]["w"].shape[2]
    if x.shape[-1] < cin0:
        x = jnp.pad(x, ((0, 0), (0, 0), (0, 0), (0, cin0 - x.shape[-1])))

    # backbone: 5x (conv5x5 + folded-BN + ReLU), maxpool after the first 4.
    for i, p in enumerate(params["backbone"]):
        x = conv2d_bn_act(x, p["w"], p["shift"], "relu")
        if i < 4:
            x = maxpool2x2(x)
    assert x.shape[1:4] == (grid_size[0], grid_size[1], 256)

    # intermediate: conv3x3 + folded-BN + ReLU
    p = params["inter"]
    x = conv2d_bn_act(x, p["w"], p["shift"], "relu")

    # fused heads: one lane-dense 1x1 conv; sigmoid only on lane 0 in-kernel.
    head = conv2d_bn_act(x, params["w_head"], params["shift_head"], "head",
                         out_dtype=jnp.float32)
    logits = jnp.transpose(head[..., 0:1], (0, 3, 1, 2))
    bbox_regs = jnp.transpose(head[..., 1:5], (0, 3, 1, 2))

    assert logits.shape[1:4] == (1, grid_size[0], grid_size[1])
    assert bbox_regs.shape[1:4] == (4, grid_size[0], grid_size[1])
    return logits, bbox_regs


# ----------------------------------------------------------------------------
if __name__ == "__main__":
    # Small shapes: input 32x32, stride 16 (4 maxpools) -> grid_size (2, 2).
    anchors_param = dict(ratio=1.04, scale=154, grid_size=(2, 2), stride=16)
    key = jax.random.PRNGKey(0)
    key, pkey, xkey = jax.random.split(key, 3)

    params = init_rpn_params(pkey)
    anchors = create_anchors(anchors_param["ratio"], anchors_param["scale"],
                             anchors_param["grid_size"], anchors_param["stride"])
    assert anchors.shape == (2, 2, 4)

    x = jax.random.normal(xkey, (2, 3, 32, 32), jnp.float32)  # NCHW

    fwd = jax.jit(functools.partial(rpn_head_forward,
                                    grid_size=anchors_param["grid_size"]))
    logits, bbox_regs = fwd(x, params)
    jax.block_until_ready((logits, bbox_regs))

    assert logits.shape == (2, 1, 2, 2)
    assert bbox_regs.shape == (2, 4, 2, 2)
    assert bool(jnp.all(logits >= 0.0)) and bool(jnp.all(logits <= 1.0))
    print("KERNEL_OK")
</pallas_src>

<mosaic_0001>
module attributes {stable_mosaic.version = 11 : i64} {
  func.func @_conv_row_kernel(%arg0: i32, %arg1: i32, %arg2: i32, %arg3: memref<1x1x36x8xbf16, #tpu.memory_space<vmem>>, %arg4: memref<5x5x8x16xbf16, #tpu.memory_space<vmem>>, %arg5: memref<1x16xf32, #tpu.memory_space<vmem>>, %arg6: memref<1x1x32x16xbf16, #tpu.memory_space<vmem>>, %arg7: memref<32x16xf32, #tpu.memory_space<vmem>>) attributes {dimension_semantics = [#tpu.dimension_semantics<parallel>, #tpu.dimension_semantics<parallel>, #tpu.dimension_semantics<arbitrary>], iteration_bounds = array<i64: 2, 32, 5>, scalar_prefetch = 0 : i64, scratch_operands = 1 : i64, tpu.core_type = #tpu.core_type<tc>, window_params = [{transform_indices = @transform_0, window_bounds = array<i64: 1, 1, 36, 8>}, {pipeline_mode = #tpu.pipeline_mode<synchronous>, transform_indices = @transform_1, window_bounds = array<i64: 5, 5, 8, 16>}, {pipeline_mode = #tpu.pipeline_mode<synchronous>, transform_indices = @transform_2, window_bounds = array<i64: 1, 16>}, {transform_indices = @transform_3, window_bounds = array<i64: 1, 1, 32, 16>}]} {
    %c0_i32 = arith.constant 0 : i32
    %0 = arith.cmpi eq, %arg2, %c0_i32 : i32
    %1 = arith.extui %0 : i1 to i32
    %c0_i32_0 = arith.constant 0 : i32
    %2 = arith.cmpi ne, %1, %c0_i32_0 : i32
    scf.if %2 {
      %cst_40 = arith.constant 0.000000e+00 : f32
      %43 = vector.broadcast %cst_40 : f32 to vector<32x16xf32>
      %c0_41 = arith.constant 0 : index
      %c0_42 = arith.constant 0 : index
      %44 = vector.load %arg7[%c0_41, %c0_42] : memref<32x16xf32, #tpu.memory_space<vmem>>, vector<32x16xf32>
      tpu.vector_store %arg7[%c0_41, %c0_42], %43 {strides = array<i32>} : memref<32x16xf32, #tpu.memory_space<vmem>>, vector<32x16xf32>,
    } else {
    }
    %c0 = arith.constant 0 : index
    %c0_1 = arith.constant 0 : index
    %c0_2 = arith.constant 0 : index
    %c0_3 = arith.constant 0 : index
    %3 = vector.load %arg3[%c0, %c0_1, %c0_2, %c0_3] : memref<1x1x36x8xbf16, #tpu.memory_space<vmem>>, vector<1x1x32x8xbf16>
    %4 = vector.shape_cast %3 : vector<1x1x32x8xbf16> to vector<32x8xbf16>
    %5 = arith.index_cast %arg2 : i32 to index
    %c0_4 = arith.constant 0 : index
    %c0_5 = arith.constant 0 : index
    %c0_6 = arith.constant 0 : index
    %6 = vector.load %arg4[%5, %c0_4, %c0_5, %c0_6] : memref<5x5x8x16xbf16, #tpu.memory_space<vmem>>, vector<1x1x8x16xbf16>
    %7 = vector.shape_cast %6 : vector<1x1x8x16xbf16> to vector<8x16xbf16>
    %cst = arith.constant dense<0.000000e+00> : vector<32x16xf32>
    %8 = tpu.matmul %4, %7, %cst {dimension_numbers = #tpu.dot_dimension_numbers<[1], [0], [0], [1], [0, 0, 1, 1], [], []>} : vector<32x8xbf16>, vector<8x16xbf16>, vector<32x16xf32> -> vector<32x16xf32>
    %c0_7 = arith.constant 0 : index
    %c0_8 = arith.constant 0 : index
    %c1 = arith.constant 1 : index
    %c0_9 = arith.constant 0 : index
    %9 = vector.load %arg3[%c0_7, %c0_8, %c1, %c0_9] : memref<1x1x36x8xbf16, #tpu.memory_space<vmem>>, vector<1x1x32x8xbf16>
    %10 = vector.shape_cast %9 : vector<1x1x32x8xbf16> to vector<32x8xbf16>
    %11 = arith.index_cast %arg2 : i32 to index
    %c1_10 = arith.constant 1 : index
    %c0_11 = arith.constant 0 : index
    %c0_12 = arith.constant 0 : index
    %12 = vector.load %arg4[%11, %c1_10, %c0_11, %c0_12] : memref<5x5x8x16xbf16, #tpu.memory_space<vmem>>, vector<1x1x8x16xbf16>
    %13 = vector.shape_cast %12 : vector<1x1x8x16xbf16> to vector<8x16xbf16>
    %cst_13 = arith.constant dense<0.000000e+00> : vector<32x16xf32>
    %14 = tpu.matmul %10, %13, %cst_13 {dimension_numbers = #tpu.dot_dimension_numbers<[1], [0], [0], [1], [0, 0, 1, 1], [], []>} : vector<32x8xbf16>, vector<8x16xbf16>, vector<32x16xf32> -> vector<32x16xf32>
    %15 = arith.addf %8, %14 : vector<32x16xf32>
    %c0_14 = arith.constant 0 : index
    %c0_15 = arith.constant 0 : index
    %c2 = arith.constant 2 : index
    %c0_16 = arith.constant 0 : index
    %16 = vector.load %arg3[%c0_14, %c0_15, %c2, %c0_16] : memref<1x1x36x8xbf16, #tpu.memory_space<vmem>>, vector<1x1x32x8xbf16>
    %17 = vector.shape_cast %16 : vector<1x1x32x8xbf16> to vector<32x8xbf16>
    %18 = arith.index_cast %arg2 : i32 to index
    %c2_17 = arith.constant 2 : index
    %c0_18 = arith.constant 0 : index
    %c0_19 = arith.constant 0 : index
    %19 = vector.load %arg4[%18, %c2_17, %c0_18, %c0_19] : memref<5x5x8x16xbf16, #tpu.memory_space<vmem>>, vector<1x1x8x16xbf16>
    %20 = vector.shape_cast %19 : vector<1x1x8x16xbf16> to vector<8x16xbf16>
    %cst_20 = arith.constant dense<0.000000e+00> : vector<32x16xf32>
    %21 = tpu.matmul %17, %20, %cst_20 {dimension_numbers = #tpu.dot_dimension_numbers<[1], [0], [0], [1], [0, 0, 1, 1], [], []>} : vector<32x8xbf16>, vector<8x16xbf16>, vector<32x16xf32> -> vector<32x16xf32>
    %22 = arith.addf %15, %21 : vector<32x16xf32>
    %c0_21 = arith.constant 0 : index
    %c0_22 = arith.constant 0 : index
    %c3 = arith.constant 3 : index
    %c0_23 = arith.constant 0 : index
    %23 = vector.load %arg3[%c0_21, %c0_22, %c3, %c0_23] : memref<1x1x36x8xbf16, #tpu.memory_space<vmem>>, vector<1x1x32x8xbf16>
    %24 = vector.shape_cast %23 : vector<1x1x32x8xbf16> to vector<32x8xbf16>
    %25 = arith.index_cast %arg2 : i32 to index
    %c3_24 = arith.constant 3 : index
    %c0_25 = arith.constant 0 : index
    %c0_26 = arith.constant 0 : index
    %26 = vector.load %arg4[%25, %c3_24, %c0_25, %c0_26] : memref<5x5x8x16xbf16, #tpu.memory_space<vmem>>, vector<1x1x8x16xbf16>
    %27 = vector.shape_cast %26 : vector<1x1x8x16xbf16> to vector<8x16xbf16>
    %cst_27 = arith.constant dense<0.000000e+00> : vector<32x16xf32>
    %28 = tpu.matmul %24, %27, %cst_27 {dimension_numbers = #tpu.dot_dimension_numbers<[1], [0], [0], [1], [0, 0, 1, 1], [], []>} : vector<32x8xbf16>, vector<8x16xbf16>, vector<32x16xf32> -> vector<32x16xf32>
    %29 = arith.addf %22, %28 : vector<32x16xf32>
    %c0_28 = arith.constant 0 : index
    %c0_29 = arith.constant 0 : index
    %c4 = arith.constant 4 : index
    %c0_30 = arith.constant 0 : index
    %30 = vector.load %arg3[%c0_28, %c0_29, %c4, %c0_30] : memref<1x1x36x8xbf16, #tpu.memory_space<vmem>>, vector<1x1x32x8xbf16>
    %31 = vector.shape_cast %30 : vector<1x1x32x8xbf16> to vector<32x8xbf16>
    %32 = arith.index_cast %arg2 : i32 to index
    %c4_31 = arith.constant 4 : index
    %c0_32 = arith.constant 0 : index
    %c0_33 = arith.constant 0 : index
    %33 = vector.load %arg4[%32, %c4_31, %c0_32, %c0_33] : memref<5x5x8x16xbf16, #tpu.memory_space<vmem>>, vector<1x1x8x16xbf16>
    %34 = vector.shape_cast %33 : vector<1x1x8x16xbf16> to vector<8x16xbf16>
    %cst_34 = arith.constant dense<0.000000e+00> : vector<32x16xf32>
    %35 = tpu.matmul %31, %34, %cst_34 {dimension_numbers = #tpu.dot_dimension_numbers<[1], [0], [0], [1], [0, 0, 1, 1], [], []>} : vector<32x8xbf16>, vector<8x16xbf16>, vector<32x16xf32> -> vector<32x16xf32>
    %36 = arith.addf %29, %35 : vector<32x16xf32>
    %c0_35 = arith.constant 0 : index
    %c0_36 = arith.constant 0 : index
    %37 = vector.load %arg7[%c0_35, %c0_36] : memref<32x16xf32, #tpu.memory_space<vmem>>, vector<32x16xf32>
    %38 = arith.addf %37, %36 : vector<32x16xf32>
    %c0_37 = arith.constant 0 : index
    %c0_38 = arith.constant 0 : index
    %39 = vector.load %arg7[%c0_37, %c0_38] : memref<32x16xf32, #tpu.memory_space<vmem>>, vector<32x16xf32>
    tpu.vector_store %arg7[%c0_37, %c0_38], %38 {strides = array<i32>} : memref<32x16xf32, #tpu.memory_space<vmem>>, vector<32x16xf32>,
    %c4_i32 = arith.constant 4 : i32
    %40 = arith.cmpi eq, %arg2, %c4_i32 : i32
    %41 = arith.extui %40 : i1 to i32
    %c0_i32_39 = arith.constant 0 : i32
    %42 = arith.cmpi ne, %41, %c0_i32_39 : i32
    scf.if %42 {
      %c0_40 = arith.constant 0 : index
      %c0_41 = arith.constant 0 : index
      %43 = vector.load %arg7[%c0_40, %c0_41] : memref<32x16xf32, #tpu.memory_space<vmem>>, vector<32x16xf32>
      %c0_42 = arith.constant 0 : index
      %c0_43 = arith.constant 0 : index
      %44 = vector.load %arg5[%c0_42, %c0_43] : memref<1x16xf32, #tpu.memory_space<vmem>>, vector<1x16xf32>
      %45 = vector.broadcast %44 : vector<1x16xf32> to vector<32x16xf32>
      %46 = arith.addf %43, %45 : vector<32x16xf32>
      %cst_44 = arith.constant 0.000000e+00 : f32
      %47 = vector.broadcast %cst_44 : f32 to vector<32x16xf32>
      %48 = arith.maximumf %46, %47 : vector<32x16xf32>
      %49 = arith.truncf %48 : vector<32x16xf32> to vector<32x16xbf16>
      %c0_45 = arith.constant 0 : index
      %c0_46 = arith.constant 0 : index
      %c0_47 = arith.constant 0 : index
      %c0_48 = arith.constant 0 : index
      %50 = vector.load %arg6[%c0_45, %c0_46, %c0_47, %c0_48] : memref<1x1x32x16xbf16, #tpu.memory_space<vmem>>, vector<1x1x32x16xbf16>
      %51 = vector.shape_cast %50 : vector<1x1x32x16xbf16> to vector<32x16xbf16>
      %52 = vector.shape_cast %49 : vector<32x16xbf16> to vector<1x1x32x16xbf16>
      tpu.vector_store %arg6[%c0_45, %c0_46, %c0_47, %c0_48], %52 {strides = array<i32>} : memref<1x1x32x16xbf16, #tpu.memory_space<vmem>>, vector<1x1x32x16xbf16>,
    } else {
    }
    return
  }
  func.func @transform_0(%arg0: i32, %arg1: i32, %arg2: i32) -> (i32, i32, i32, i32) {
    %0 = arith.addi %arg1, %arg2 : i32
    %c0_i32 = arith.constant 0 : i32
    %c0_i32_0 = arith.constant 0 : i32
    %c0_i32_1 = arith.constant 0 : i32
    return %arg0, %0, %c0_i32, %c0_i32_0 : i32, i32, i32, i32
  }
  func.func @transform_1(%arg0: i32, %arg1: i32, %arg2: i32) -> (i32, i32, i32, i32) {
    %c0_i32 = arith.constant 0 : i32
    %c0_i32_0 = arith.constant 0 : i32
    %c0_i32_1 = arith.constant 0 : i32
    %c0_i32_2 = arith.constant 0 : i32
    %c0_i32_3 = arith.constant 0 : i32
    return %c0_i32, %c0_i32_0, %c0_i32_1, %c0_i32_2 : i32, i32, i32, i32
  }
  func.func @transform_2(%arg0: i32, %arg1: i32, %arg2: i32) -> (i32, i32) {
    %c0_i32 = arith.constant 0 : i32
    %c0_i32_0 = arith.constant 0 : i32
    %c0_i32_1 = arith.constant 0 : i32
    return %c0_i32, %c0_i32_0 : i32, i32
  }
  func.func @transform_3(%arg0: i32, %arg1: i32, %arg2: i32) -> (i32, i32, i32, i32) {
    %c0_i32 = arith.constant 0 : i32
    %c0_i32_0 = arith.constant 0 : i32
    %c0_i32_1 = arith.constant 0 : i32
    return %arg0, %arg1, %c0_i32, %c0_i32_0 : i32, i32, i32, i32
  }
}

module attributes {stable_mosaic.version = 11 : i64} {
  func.func @_maxpool2x2_kernel(%arg0: i32, %arg1: i32, %arg2: memref<1x2x16x32xbf16, #tpu.memory_space<vmem>>, %arg3: memref<1x1x16x16xbf16, #tpu.memory_space<vmem>>) attributes {dimension_semantics = [#tpu.dimension_semantics<parallel>, #tpu.dimension_semantics<parallel>], iteration_bounds = array<i64: 2, 16>, scalar_prefetch = 0 : i64, scratch_operands = 0 : i64, tpu.core_type = #tpu.core_type<tc>, window_params = [{transform_indices = @transform_0, window_bounds = array<i64: 1, 2, 16, 32>}, {transform_indices = @transform_1, window_bounds = array<i64: 1, 1, 16, 16>}]} {
    %c0 = arith.constant 0 : index
    %c0_0 = arith.constant 0 : index
    %c0_1 = arith.constant 0 : index
    %c0_2 = arith.constant 0 : index
    %0 = vector.load %arg2[%c0, %c0_0, %c0_1, %c0_2] : memref<1x2x16x32xbf16, #tpu.memory_space<vmem>>, vector<1x1x16x32xbf16>
    %1 = vector.shape_cast %0 : vector<1x1x16x32xbf16> to vector<16x32xbf16>
    %c0_3 = arith.constant 0 : index
    %c1 = arith.constant 1 : index
    %c0_4 = arith.constant 0 : index
    %c0_5 = arith.constant 0 : index
    %2 = vector.load %arg2[%c0_3, %c1, %c0_4, %c0_5] : memref<1x2x16x32xbf16, #tpu.memory_space<vmem>>, vector<1x1x16x32xbf16>
    %3 = vector.shape_cast %2 : vector<1x1x16x32xbf16> to vector<16x32xbf16>
    %4 = arith.maximumf %1, %3 : vector<16x32xbf16>
    %5 = vector.extract_strided_slice %4 {offsets = [0, 0], sizes = [16, 16], strides = [1, 1]} : vector<16x32xbf16> to vector<16x16xbf16>
    %6 = vector.extract_strided_slice %4 {offsets = [0, 16], sizes = [16, 16], strides = [1, 1]} : vector<16x32xbf16> to vector<16x16xbf16>
    %7 = arith.maximumf %5, %6 : vector<16x16xbf16>
    %c0_6 = arith.constant 0 : index
    %c0_7 = arith.constant 0 : index
    %c0_8 = arith.constant 0 : index
    %c0_9 = arith.constant 0 : index
    %8 = vector.load %arg3[%c0_6, %c0_7, %c0_8, %c0_9] : memref<1x1x16x16xbf16, #tpu.memory_space<vmem>>, vector<1x1x16x16xbf16>
    %9 = vector.shape_cast %8 : vector<1x1x16x16xbf16> to vector<16x16xbf16>
    %10 = vector.shape_cast %7 : vector<16x16xbf16> to vector<1x1x16x16xbf16>
    tpu.vector_store %arg3[%c0_6, %c0_7, %c0_8, %c0_9], %10 {strides = array<i32>} : memref<1x1x16x16xbf16, #tpu.memory_space<vmem>>, vector<1x1x16x16xbf16>,
    return
  }
  func.func @transform_0(%arg0: i32, %arg1: i32) -> (i32, i32, i32, i32) {
    %c0_i32 = arith.constant 0 : i32
    %c0_i32_0 = arith.constant 0 : i32
    %c0_i32_1 = arith.constant 0 : i32
    return %arg0, %arg1, %c0_i32, %c0_i32_0 : i32, i32, i32, i32
  }
  func.func @transform_1(%arg0: i32, %arg1: i32) -> (i32, i32, i32, i32) {
    %c0_i32 = arith.constant 0 : i32
    %c0_i32_0 = arith.constant 0 : i32
    %c0_i32_1 = arith.constant 0 : i32
    return %arg0, %arg1, %c0_i32, %c0_i32_0 : i32, i32, i32, i32
  }
}

module attributes {stable_mosaic.version = 11 : i64} {
  func.func @_conv_row_kernel(%arg0: i32, %arg1: i32, %arg2: i32, %arg3: memref<1x1x20x16xbf16, #tpu.memory_space<vmem>>, %arg4: memref<5x5x16x32xbf16, #tpu.memory_space<vmem>>, %arg5: memref<1x32xf32, #tpu.memory_space<vmem>>, %arg6: memref<1x1x16x32xbf16, #tpu.memory_space<vmem>>, %arg7: memref<16x32xf32, #tpu.memory_space<vmem>>) attributes {dimension_semantics = [#tpu.dimension_semantics<parallel>, #tpu.dimension_semantics<parallel>, #tpu.dimension_semantics<arbitrary>], iteration_bounds = array<i64: 2, 16, 5>, scalar_prefetch = 0 : i64, scratch_operands = 1 : i64, tpu.core_type = #tpu.core_type<tc>, window_params = [{transform_indices = @transform_0, window_bounds = array<i64: 1, 1, 20, 16>}, {pipeline_mode = #tpu.pipeline_mode<synchronous>, transform_indices = @transform_1, window_bounds = array<i64: 5, 5, 16, 32>}, {pipeline_mode = #tpu.pipeline_mode<synchronous>, transform_indices = @transform_2, window_bounds = array<i64: 1, 32>}, {transform_indices = @transform_3, window_bounds = array<i64: 1, 1, 16, 32>}]} {
    %c0_i32 = arith.constant 0 : i32
    %0 = arith.cmpi eq, %arg2, %c0_i32 : i32
    %1 = arith.extui %0 : i1 to i32
    %c0_i32_0 = arith.constant 0 : i32
    %2 = arith.cmpi ne, %1, %c0_i32_0 : i32
    scf.if %2 {
      %cst_40 = arith.constant 0.000000e+00 : f32
      %43 = vector.broadcast %cst_40 : f32 to vector<16x32xf32>
      %c0_41 = arith.constant 0 : index
      %c0_42 = arith.constant 0 : index
      %44 = vector.load %arg7[%c0_41, %c0_42] : memref<16x32xf32, #tpu.memory_space<vmem>>, vector<16x32xf32>
      tpu.vector_store %arg7[%c0_41, %c0_42], %43 {strides = array<i32>} : memref<16x32xf32, #tpu.memory_space<vmem>>, vector<16x32xf32>,
    } else {
    }
    %c0 = arith.constant 0 : index
    %c0_1 = arith.constant 0 : index
    %c0_2 = arith.constant 0 : index
    %c0_3 = arith.constant 0 : index
    %3 = vector.load %arg3[%c0, %c0_1, %c0_2, %c0_3] : memref<1x1x20x16xbf16, #tpu.memory_space<vmem>>, vector<1x1x16x16xbf16>
    %4 = vector.shape_cast %3 : vector<1x1x16x16xbf16> to vector<16x16xbf16>
    %5 = arith.index_cast %arg2 : i32 to index
    %c0_4 = arith.constant 0 : index
    %c0_5 = arith.constant 0 : index
    %c0_6 = arith.constant 0 : index
    %6 = vector.load %arg4[%5, %c0_4, %c0_5, %c0_6] : memref<5x5x16x32xbf16, #tpu.memory_space<vmem>>, vector<1x1x16x32xbf16>
    %7 = vector.shape_cast %6 : vector<1x1x16x32xbf16> to vector<16x32xbf16>
    %cst = arith.constant dense<0.000000e+00> : vector<16x32xf32>
    %8 = tpu.matmul %4, %7, %cst {dimension_numbers = #tpu.dot_dimension_numbers<[1], [0], [0], [1], [0, 0, 1, 1], [], []>} : vector<16x16xbf16>, vector<16x32xbf16>, vector<16x32xf32> -> vector<16x32xf32>
    %c0_7 = arith.constant 0 : index
    %c0_8 = arith.constant 0 : index
    %c1 = arith.constant 1 : index
    %c0_9 = arith.constant 0 : index
    %9 = vector.load %arg3[%c0_7, %c0_8, %c1, %c0_9] : memref<1x1x20x16xbf16, #tpu.memory_space<vmem>>, vector<1x1x16x16xbf16>
    %10 = vector.shape_cast %9 : vector<1x1x16x16xbf16> to vector<16x16xbf16>
    %11 = arith.index_cast %arg2 : i32 to index
    %c1_10 = arith.constant 1 : index
    %c0_11 = arith.constant 0 : index
    %c0_12 = arith.constant 0 : index
    %12 = vector.load %arg4[%11, %c1_10, %c0_11, %c0_12] : memref<5x5x16x32xbf16, #tpu.memory_space<vmem>>, vector<1x1x16x32xbf16>
    %13 = vector.shape_cast %12 : vector<1x1x16x32xbf16> to vector<16x32xbf16>
    %cst_13 = arith.constant dense<0.000000e+00> : vector<16x32xf32>
    %14 = tpu.matmul %10, %13, %cst_13 {dimension_numbers = #tpu.dot_dimension_numbers<[1], [0], [0], [1], [0, 0, 1, 1], [], []>} : vector<16x16xbf16>, vector<16x32xbf16>, vector<16x32xf32> -> vector<16x32xf32>
    %15 = arith.addf %8, %14 : vector<16x32xf32>
    %c0_14 = arith.constant 0 : index
    %c0_15 = arith.constant 0 : index
    %c2 = arith.constant 2 : index
    %c0_16 = arith.constant 0 : index
    %16 = vector.load %arg3[%c0_14, %c0_15, %c2, %c0_16] : memref<1x1x20x16xbf16, #tpu.memory_space<vmem>>, vector<1x1x16x16xbf16>
    %17 = vector.shape_cast %16 : vector<1x1x16x16xbf16> to vector<16x16xbf16>
    %18 = arith.index_cast %arg2 : i32 to index
    %c2_17 = arith.constant 2 : index
    %c0_18 = arith.constant 0 : index
    %c0_19 = arith.constant 0 : index
    %19 = vector.load %arg4[%18, %c2_17, %c0_18, %c0_19] : memref<5x5x16x32xbf16, #tpu.memory_space<vmem>>, vector<1x1x16x32xbf16>
    %20 = vector.shape_cast %19 : vector<1x1x16x32xbf16> to vector<16x32xbf16>
    %cst_20 = arith.constant dense<0.000000e+00> : vector<16x32xf32>
    %21 = tpu.matmul %17, %20, %cst_20 {dimension_numbers = #tpu.dot_dimension_numbers<[1], [0], [0], [1], [0, 0, 1, 1], [], []>} : vector<16x16xbf16>, vector<16x32xbf16>, vector<16x32xf32> -> vector<16x32xf32>
    %22 = arith.addf %15, %21 : vector<16x32xf32>
    %c0_21 = arith.constant 0 : index
    %c0_22 = arith.constant 0 : index
    %c3 = arith.constant 3 : index
    %c0_23 = arith.constant 0 : index
    %23 = vector.load %arg3[%c0_21, %c0_22, %c3, %c0_23] : memref<1x1x20x16xbf16, #tpu.memory_space<vmem>>, vector<1x1x16x16xbf16>
    %24 = vector.shape_cast %23 : vector<1x1x16x16xbf16> to vector<16x16xbf16>
    %25 = arith.index_cast %arg2 : i32 to index
    %c3_24 = arith.constant 3 : index
    %c0_25 = arith.constant 0 : index
    %c0_26 = arith.constant 0 : index
    %26 = vector.load %arg4[%25, %c3_24, %c0_25, %c0_26] : memref<5x5x16x32xbf16, #tpu.memory_space<vmem>>, vector<1x1x16x32xbf16>
    %27 = vector.shape_cast %26 : vector<1x1x16x32xbf16> to vector<16x32xbf16>
    %cst_27 = arith.constant dense<0.000000e+00> : vector<16x32xf32>
    %28 = tpu.matmul %24, %27, %cst_27 {dimension_numbers = #tpu.dot_dimension_numbers<[1], [0], [0], [1], [0, 0, 1, 1], [], []>} : vector<16x16xbf16>, vector<16x32xbf16>, vector<16x32xf32> -> vector<16x32xf32>
    %29 = arith.addf %22, %28 : vector<16x32xf32>
    %c0_28 = arith.constant 0 : index
    %c0_29 = arith.constant 0 : index
    %c4 = arith.constant 4 : index
    %c0_30 = arith.constant 0 : index
    %30 = vector.load %arg3[%c0_28, %c0_29, %c4, %c0_30] : memref<1x1x20x16xbf16, #tpu.memory_space<vmem>>, vector<1x1x16x16xbf16>
    %31 = vector.shape_cast %30 : vector<1x1x16x16xbf16> to vector<16x16xbf16>
    %32 = arith.index_cast %arg2 : i32 to index
    %c4_31 = arith.constant 4 : index
    %c0_32 = arith.constant 0 : index
    %c0_33 = arith.constant 0 : index
    %33 = vector.load %arg4[%32, %c4_31, %c0_32, %c0_33] : memref<5x5x16x32xbf16, #tpu.memory_space<vmem>>, vector<1x1x16x32xbf16>
    %34 = vector.shape_cast %33 : vector<1x1x16x32xbf16> to vector<16x32xbf16>
    %cst_34 = arith.constant dense<0.000000e+00> : vector<16x32xf32>
    %35 = tpu.matmul %31, %34, %cst_34 {dimension_numbers = #tpu.dot_dimension_numbers<[1], [0], [0], [1], [0, 0, 1, 1], [], []>} : vector<16x16xbf16>, vector<16x32xbf16>, vector<16x32xf32> -> vector<16x32xf32>
    %36 = arith.addf %29, %35 : vector<16x32xf32>
    %c0_35 = arith.constant 0 : index
    %c0_36 = arith.constant 0 : index
    %37 = vector.load %arg7[%c0_35, %c0_36] : memref<16x32xf32, #tpu.memory_space<vmem>>, vector<16x32xf32>
    %38 = arith.addf %37, %36 : vector<16x32xf32>
    %c0_37 = arith.constant 0 : index
    %c0_38 = arith.constant 0 : index
    %39 = vector.load %arg7[%c0_37, %c0_38] : memref<16x32xf32, #tpu.memory_space<vmem>>, vector<16x32xf32>
    tpu.vector_store %arg7[%c0_37, %c0_38], %38 {strides = array<i32>} : memref<16x32xf32, #tpu.memory_space<vmem>>, vector<16x32xf32>,
    %c4_i32 = arith.constant 4 : i32
    %40 = arith.cmpi eq, %arg2, %c4_i32 : i32
    %41 = arith.extui %40 : i1 to i32
    %c0_i32_39 = arith.constant 0 : i32
    %42 = arith.cmpi ne, %41, %c0_i32_39 : i32
    scf.if %42 {
      %c0_40 = arith.constant 0 : index
      %c0_41 = arith.constant 0 : index
      %43 = vector.load %arg7[%c0_40, %c0_41] : memref<16x32xf32, #tpu.memory_space<vmem>>, vector<16x32xf32>
      %c0_42 = arith.constant 0 : index
      %c0_43 = arith.constant 0 : index
      %44 = vector.load %arg5[%c0_42, %c0_43] : memref<1x32xf32, #tpu.memory_space<vmem>>, vector<1x32xf32>
      %45 = vector.broadcast %44 : vector<1x32xf32> to vector<16x32xf32>
      %46 = arith.addf %43, %45 : vector<16x32xf32>
      %cst_44 = arith.constant 0.000000e+00 : f32
      %47 = vector.broadcast %cst_44 : f32 to vector<16x32xf32>
      %48 = arith.maximumf %46, %47 : vector<16x32xf32>
      %49 = arith.truncf %48 : vector<16x32xf32> to vector<16x32xbf16>
      %c0_45 = arith.constant 0 : index
      %c0_46 = arith.constant 0 : index
      %c0_47 = arith.constant 0 : index
      %c0_48 = arith.constant 0 : index
      %50 = vector.load %arg6[%c0_45, %c0_46, %c0_47, %c0_48] : memref<1x1x16x32xbf16, #tpu.memory_space<vmem>>, vector<1x1x16x32xbf16>
      %51 = vector.shape_cast %50 : vector<1x1x16x32xbf16> to vector<16x32xbf16>
      %52 = vector.shape_cast %49 : vector<16x32xbf16> to vector<1x1x16x32xbf16>
      tpu.vector_store %arg6[%c0_45, %c0_46, %c0_47, %c0_48], %52 {strides = array<i32>} : memref<1x1x16x32xbf16, #tpu.memory_space<vmem>>, vector<1x1x16x32xbf16>,
    } else {
    }
    return
  }
  func.func @transform_0(%arg0: i32, %arg1: i32, %arg2: i32) -> (i32, i32, i32, i32) {
    %0 = arith.addi %arg1, %arg2 : i32
    %c0_i32 = arith.constant 0 : i32
    %c0_i32_0 = arith.constant 0 : i32
    %c0_i32_1 = arith.constant 0 : i32
    return %arg0, %0, %c0_i32, %c0_i32_0 : i32, i32, i32, i32
  }
  func.func @transform_1(%arg0: i32, %arg1: i32, %arg2: i32) -> (i32, i32, i32, i32) {
    %c0_i32 = arith.constant 0 : i32
    %c0_i32_0 = arith.constant 0 : i32
    %c0_i32_1 = arith.constant 0 : i32
    %c0_i32_2 = arith.constant 0 : i32
    %c0_i32_3 = arith.constant 0 : i32
    return %c0_i32, %c0_i32_0, %c0_i32_1, %c0_i32_2 : i32, i32, i32, i32
  }
  func.func @transform_2(%arg0: i32, %arg1: i32, %arg2: i32) -> (i32, i32) {
    %c0_i32 = arith.constant 0 : i32
    %c0_i32_0 = arith.constant 0 : i32
    %c0_i32_1 = arith.constant 0 : i32
    return %c0_i32, %c0_i32_0 : i32, i32
  }
  func.func @transform_3(%arg0: i32, %arg1: i32, %arg2: i32) -> (i32, i32, i32, i32) {
    %c0_i32 = arith.constant 0 : i32
    %c0_i32_0 = arith.constant 0 : i32
    %c0_i32_1 = arith.constant 0 : i32
    return %arg0, %arg1, %c0_i32, %c0_i32_0 : i32, i32, i32, i32
  }
}

module attributes {stable_mosaic.version = 11 : i64} {
  func.func @_maxpool2x2_kernel(%arg0: i32, %arg1: i32, %arg2: memref<1x2x8x64xbf16, #tpu.memory_space<vmem>>, %arg3: memref<1x1x8x32xbf16, #tpu.memory_space<vmem>>) attributes {dimension_semantics = [#tpu.dimension_semantics<parallel>, #tpu.dimension_semantics<parallel>], iteration_bounds = array<i64: 2, 8>, scalar_prefetch = 0 : i64, scratch_operands = 0 : i64, tpu.core_type = #tpu.core_type<tc>, window_params = [{transform_indices = @transform_0, window_bounds = array<i64: 1, 2, 8, 64>}, {transform_indices = @transform_1, window_bounds = array<i64: 1, 1, 8, 32>}]} {
    %c0 = arith.constant 0 : index
    %c0_0 = arith.constant 0 : index
    %c0_1 = arith.constant 0 : index
    %c0_2 = arith.constant 0 : index
    %0 = vector.load %arg2[%c0, %c0_0, %c0_1, %c0_2] : memref<1x2x8x64xbf16, #tpu.memory_space<vmem>>, vector<1x1x8x64xbf16>
    %1 = vector.shape_cast %0 : vector<1x1x8x64xbf16> to vector<8x64xbf16>
    %c0_3 = arith.constant 0 : index
    %c1 = arith.constant 1 : index
    %c0_4 = arith.constant 0 : index
    %c0_5 = arith.constant 0 : index
    %2 = vector.load %arg2[%c0_3, %c1, %c0_4, %c0_5] : memref<1x2x8x64xbf16, #tpu.memory_space<vmem>>, vector<1x1x8x64xbf16>
    %3 = vector.shape_cast %2 : vector<1x1x8x64xbf16> to vector<8x64xbf16>
    %4 = arith.maximumf %1, %3 : vector<8x64xbf16>
    %5 = vector.extract_strided_slice %4 {offsets = [0, 0], sizes = [8, 32], strides = [1, 1]} : vector<8x64xbf16> to vector<8x32xbf16>
    %6 = vector.extract_strided_slice %4 {offsets = [0, 32], sizes = [8, 32], strides = [1, 1]} : vector<8x64xbf16> to vector<8x32xbf16>
    %7 = arith.maximumf %5, %6 : vector<8x32xbf16>
    %c0_6 = arith.constant 0 : index
    %c0_7 = arith.constant 0 : index
    %c0_8 = arith.constant 0 : index
    %c0_9 = arith.constant 0 : index
    %8 = vector.load %arg3[%c0_6, %c0_7, %c0_8, %c0_9] : memref<1x1x8x32xbf16, #tpu.memory_space<vmem>>, vector<1x1x8x32xbf16>
    %9 = vector.shape_cast %8 : vector<1x1x8x32xbf16> to vector<8x32xbf16>
    %10 = vector.shape_cast %7 : vector<8x32xbf16> to vector<1x1x8x32xbf16>
    tpu.vector_store %arg3[%c0_6, %c0_7, %c0_8, %c0_9], %10 {strides = array<i32>} : memref<1x1x8x32xbf16, #tpu.memory_space<vmem>>, vector<1x1x8x32xbf16>,
    return
  }
  func.func @transform_0(%arg0: i32, %arg1: i32) -> (i32, i32, i32, i32) {
    %c0_i32 = arith.constant 0 : i32
    %c0_i32_0 = arith.constant 0 : i32
    %c0_i32_1 = arith.constant 0 : i32
    return %arg0, %arg1, %c0_i32, %c0_i32_0 : i32, i32, i32, i32
  }
  func.func @transform_1(%arg0: i32, %arg1: i32) -> (i32, i32, i32, i32) {
    %c0_i32 = arith.constant 0 : i32
    %c0_i32_0 = arith.constant 0 : i32
    %c0_i32_1 = arith.constant 0 : i32
    return %arg0, %arg1, %c0_i32, %c0_i32_0 : i32, i32, i32, i32
  }
}

module attributes {stable_mosaic.version = 11 : i64} {
  func.func @_conv_row_kernel(%arg0: i32, %arg1: i32, %arg2: i32, %arg3: memref<1x1x12x32xbf16, #tpu.memory_space<vmem>>, %arg4: memref<5x5x32x64xbf16, #tpu.memory_space<vmem>>, %arg5: memref<1x64xf32, #tpu.memory_space<vmem>>, %arg6: memref<1x1x8x64xbf16, #tpu.memory_space<vmem>>, %arg7: memref<8x64xf32, #tpu.memory_space<vmem>>) attributes {dimension_semantics = [#tpu.dimension_semantics<parallel>, #tpu.dimension_semantics<parallel>, #tpu.dimension_semantics<arbitrary>], iteration_bounds = array<i64: 2, 8, 5>, scalar_prefetch = 0 : i64, scratch_operands = 1 : i64, tpu.core_type = #tpu.core_type<tc>, window_params = [{transform_indices = @transform_0, window_bounds = array<i64: 1, 1, 12, 32>}, {pipeline_mode = #tpu.pipeline_mode<synchronous>, transform_indices = @transform_1, window_bounds = array<i64: 5, 5, 32, 64>}, {pipeline_mode = #tpu.pipeline_mode<synchronous>, transform_indices = @transform_2, window_bounds = array<i64: 1, 64>}, {transform_indices = @transform_3, window_bounds = array<i64: 1, 1, 8, 64>}]} {
    %c0_i32 = arith.constant 0 : i32
    %0 = arith.cmpi eq, %arg2, %c0_i32 : i32
    %1 = arith.extui %0 : i1 to i32
    %c0_i32_0 = arith.constant 0 : i32
    %2 = arith.cmpi ne, %1, %c0_i32_0 : i32
    scf.if %2 {
      %cst_40 = arith.constant 0.000000e+00 : f32
      %43 = vector.broadcast %cst_40 : f32 to vector<8x64xf32>
      %c0_41 = arith.constant 0 : index
      %c0_42 = arith.constant 0 : index
      %44 = vector.load %arg7[%c0_41, %c0_42] : memref<8x64xf32, #tpu.memory_space<vmem>>, vector<8x64xf32>
      tpu.vector_store %arg7[%c0_41, %c0_42], %43 {strides = array<i32>} : memref<8x64xf32, #tpu.memory_space<vmem>>, vector<8x64xf32>,
    } else {
    }
    %c0 = arith.constant 0 : index
    %c0_1 = arith.constant 0 : index
    %c0_2 = arith.constant 0 : index
    %c0_3 = arith.constant 0 : index
    %3 = vector.load %arg3[%c0, %c0_1, %c0_2, %c0_3] : memref<1x1x12x32xbf16, #tpu.memory_space<vmem>>, vector<1x1x8x32xbf16>
    %4 = vector.shape_cast %3 : vector<1x1x8x32xbf16> to vector<8x32xbf16>
    %5 = arith.index_cast %arg2 : i32 to index
    %c0_4 = arith.constant 0 : index
    %c0_5 = arith.constant 0 : index
    %c0_6 = arith.constant 0 : index
    %6 = vector.load %arg4[%5, %c0_4, %c0_5, %c0_6] : memref<5x5x32x64xbf16, #tpu.memory_space<vmem>>, vector<1x1x32x64xbf16>
    %7 = vector.shape_cast %6 : vector<1x1x32x64xbf16> to vector<32x64xbf16>
    %cst = arith.constant dense<0.000000e+00> : vector<8x64xf32>
    %8 = tpu.matmul %4, %7, %cst {dimension_numbers = #tpu.dot_dimension_numbers<[1], [0], [0], [1], [0, 0, 1, 1], [], []>} : vector<8x32xbf16>, vector<32x64xbf16>, vector<8x64xf32> -> vector<8x64xf32>
    %c0_7 = arith.constant 0 : index
    %c0_8 = arith.constant 0 : index
    %c1 = arith.constant 1 : index
    %c0_9 = arith.constant 0 : index
    %9 = vector.load %arg3[%c0_7, %c0_8, %c1, %c0_9] : memref<1x1x12x32xbf16, #tpu.memory_space<vmem>>, vector<1x1x8x32xbf16>
    %10 = vector.shape_cast %9 : vector<1x1x8x32xbf16> to vector<8x32xbf16>
    %11 = arith.index_cast %arg2 : i32 to index
    %c1_10 = arith.constant 1 : index
    %c0_11 = arith.constant 0 : index
    %c0_12 = arith.constant 0 : index
    %12 = vector.load %arg4[%11, %c1_10, %c0_11, %c0_12] : memref<5x5x32x64xbf16, #tpu.memory_space<vmem>>, vector<1x1x32x64xbf16>
    %13 = vector.shape_cast %12 : vector<1x1x32x64xbf16> to vector<32x64xbf16>
    %cst_13 = arith.constant dense<0.000000e+00> : vector<8x64xf32>
    %14 = tpu.matmul %10, %13, %cst_13 {dimension_numbers = #tpu.dot_dimension_numbers<[1], [0], [0], [1], [0, 0, 1, 1], [], []>} : vector<8x32xbf16>, vector<32x64xbf16>, vector<8x64xf32> -> vector<8x64xf32>
    %15 = arith.addf %8, %14 : vector<8x64xf32>
    %c0_14 = arith.constant 0 : index
    %c0_15 = arith.constant 0 : index
    %c2 = arith.constant 2 : index
    %c0_16 = arith.constant 0 : index
    %16 = vector.load %arg3[%c0_14, %c0_15, %c2, %c0_16] : memref<1x1x12x32xbf16, #tpu.memory_space<vmem>>, vector<1x1x8x32xbf16>
    %17 = vector.shape_cast %16 : vector<1x1x8x32xbf16> to vector<8x32xbf16>
    %18 = arith.index_cast %arg2 : i32 to index
    %c2_17 = arith.constant 2 : index
    %c0_18 = arith.constant 0 : index
    %c0_19 = arith.constant 0 : index
    %19 = vector.load %arg4[%18, %c2_17, %c0_18, %c0_19] : memref<5x5x32x64xbf16, #tpu.memory_space<vmem>>, vector<1x1x32x64xbf16>
    %20 = vector.shape_cast %19 : vector<1x1x32x64xbf16> to vector<32x64xbf16>
    %cst_20 = arith.constant dense<0.000000e+00> : vector<8x64xf32>
    %21 = tpu.matmul %17, %20, %cst_20 {dimension_numbers = #tpu.dot_dimension_numbers<[1], [0], [0], [1], [0, 0, 1, 1], [], []>} : vector<8x32xbf16>, vector<32x64xbf16>, vector<8x64xf32> -> vector<8x64xf32>
    %22 = arith.addf %15, %21 : vector<8x64xf32>
    %c0_21 = arith.constant 0 : index
    %c0_22 = arith.constant 0 : index
    %c3 = arith.constant 3 : index
    %c0_23 = arith.constant 0 : index
    %23 = vector.load %arg3[%c0_21, %c0_22, %c3, %c0_23] : memref<1x1x12x32xbf16, #tpu.memory_space<vmem>>, vector<1x1x8x32xbf16>
    %24 = vector.shape_cast %23 : vector<1x1x8x32xbf16> to vector<8x32xbf16>
    %25 = arith.index_cast %arg2 : i32 to index
    %c3_24 = arith.constant 3 : index
    %c0_25 = arith.constant 0 : index
    %c0_26 = arith.constant 0 : index
    %26 = vector.load %arg4[%25, %c3_24, %c0_25, %c0_26] : memref<5x5x32x64xbf16, #tpu.memory_space<vmem>>, vector<1x1x32x64xbf16>
    %27 = vector.shape_cast %26 : vector<1x1x32x64xbf16> to vector<32x64xbf16>
    %cst_27 = arith.constant dense<0.000000e+00> : vector<8x64xf32>
    %28 = tpu.matmul %24, %27, %cst_27 {dimension_numbers = #tpu.dot_dimension_numbers<[1], [0], [0], [1], [0, 0, 1, 1], [], []>} : vector<8x32xbf16>, vector<32x64xbf16>, vector<8x64xf32> -> vector<8x64xf32>
    %29 = arith.addf %22, %28 : vector<8x64xf32>
    %c0_28 = arith.constant 0 : index
    %c0_29 = arith.constant 0 : index
    %c4 = arith.constant 4 : index
    %c0_30 = arith.constant 0 : index
    %30 = vector.load %arg3[%c0_28, %c0_29, %c4, %c0_30] : memref<1x1x12x32xbf16, #tpu.memory_space<vmem>>, vector<1x1x8x32xbf16>
    %31 = vector.shape_cast %30 : vector<1x1x8x32xbf16> to vector<8x32xbf16>
    %32 = arith.index_cast %arg2 : i32 to index
    %c4_31 = arith.constant 4 : index
    %c0_32 = arith.constant 0 : index
    %c0_33 = arith.constant 0 : index
    %33 = vector.load %arg4[%32, %c4_31, %c0_32, %c0_33] : memref<5x5x32x64xbf16, #tpu.memory_space<vmem>>, vector<1x1x32x64xbf16>
    %34 = vector.shape_cast %33 : vector<1x1x32x64xbf16> to vector<32x64xbf16>
    %cst_34 = arith.constant dense<0.000000e+00> : vector<8x64xf32>
    %35 = tpu.matmul %31, %34, %cst_34 {dimension_numbers = #tpu.dot_dimension_numbers<[1], [0], [0], [1], [0, 0, 1, 1], [], []>} : vector<8x32xbf16>, vector<32x64xbf16>, vector<8x64xf32> -> vector<8x64xf32>
    %36 = arith.addf %29, %35 : vector<8x64xf32>
    %c0_35 = arith.constant 0 : index
    %c0_36 = arith.constant 0 : index
    %37 = vector.load %arg7[%c0_35, %c0_36] : memref<8x64xf32, #tpu.memory_space<vmem>>, vector<8x64xf32>
    %38 = arith.addf %37, %36 : vector<8x64xf32>
    %c0_37 = arith.constant 0 : index
    %c0_38 = arith.constant 0 : index
    %39 = vector.load %arg7[%c0_37, %c0_38] : memref<8x64xf32, #tpu.memory_space<vmem>>, vector<8x64xf32>
    tpu.vector_store %arg7[%c0_37, %c0_38], %38 {strides = array<i32>} : memref<8x64xf32, #tpu.memory_space<vmem>>, vector<8x64xf32>,
    %c4_i32 = arith.constant 4 : i32
    %40 = arith.cmpi eq, %arg2, %c4_i32 : i32
    %41 = arith.extui %40 : i1 to i32
    %c0_i32_39 = arith.constant 0 : i32
    %42 = arith.cmpi ne, %41, %c0_i32_39 : i32
    scf.if %42 {
      %c0_40 = arith.constant 0 : index
      %c0_41 = arith.constant 0 : index
      %43 = vector.load %arg7[%c0_40, %c0_41] : memref<8x64xf32, #tpu.memory_space<vmem>>, vector<8x64xf32>
      %c0_42 = arith.constant 0 : index
      %c0_43 = arith.constant 0 : index
      %44 = vector.load %arg5[%c0_42, %c0_43] : memref<1x64xf32, #tpu.memory_space<vmem>>, vector<1x64xf32>
      %45 = vector.broadcast %44 : vector<1x64xf32> to vector<8x64xf32>
      %46 = arith.addf %43, %45 : vector<8x64xf32>
      %cst_44 = arith.constant 0.000000e+00 : f32
      %47 = vector.broadcast %cst_44 : f32 to vector<8x64xf32>
      %48 = arith.maximumf %46, %47 : vector<8x64xf32>
      %49 = arith.truncf %48 : vector<8x64xf32> to vector<8x64xbf16>
      %c0_45 = arith.constant 0 : index
      %c0_46 = arith.constant 0 : index
      %c0_47 = arith.constant 0 : index
      %c0_48 = arith.constant 0 : index
      %50 = vector.load %arg6[%c0_45, %c0_46, %c0_47, %c0_48] : memref<1x1x8x64xbf16, #tpu.memory_space<vmem>>, vector<1x1x8x64xbf16>
      %51 = vector.shape_cast %50 : vector<1x1x8x64xbf16> to vector<8x64xbf16>
      %52 = vector.shape_cast %49 : vector<8x64xbf16> to vector<1x1x8x64xbf16>
      tpu.vector_store %arg6[%c0_45, %c0_46, %c0_47, %c0_48], %52 {strides = array<i32>} : memref<1x1x8x64xbf16, #tpu.memory_space<vmem>>, vector<1x1x8x64xbf16>,
    } else {
    }
    return
  }
  func.func @transform_0(%arg0: i32, %arg1: i32, %arg2: i32) -> (i32, i32, i32, i32) {
    %0 = arith.addi %arg1, %arg2 : i32
    %c0_i32 = arith.constant 0 : i32
    %c0_i32_0 = arith.constant 0 : i32
    %c0_i32_1 = arith.constant 0 : i32
    return %arg0, %0, %c0_i32, %c0_i32_0 : i32, i32, i32, i32
  }
  func.func @transform_1(%arg0: i32, %arg1: i32, %arg2: i32) -> (i32, i32, i32, i32) {
    %c0_i32 = arith.constant 0 : i32
    %c0_i32_0 = arith.constant 0 : i32
    %c0_i32_1 = arith.constant 0 : i32
    %c0_i32_2 = arith.constant 0 : i32
    %c0_i32_3 = arith.constant 0 : i32
    return %c0_i32, %c0_i32_0, %c0_i32_1, %c0_i32_2 : i32, i32, i32, i32
  }
  func.func @transform_2(%arg0: i32, %arg1: i32, %arg2: i32) -> (i32, i32) {
    %c0_i32 = arith.constant 0 : i32
    %c0_i32_0 = arith.constant 0 : i32
    %c0_i32_1 = arith.constant 0 : i32
    return %c0_i32, %c0_i32_0 : i32, i32
  }
  func.func @transform_3(%arg0: i32, %arg1: i32, %arg2: i32) -> (i32, i32, i32, i32) {
    %c0_i32 = arith.constant 0 : i32
    %c0_i32_0 = arith.constant 0 : i32
    %c0_i32_1 = arith.constant 0 : i32
    return %arg0, %arg1, %c0_i32, %c0_i32_0 : i32, i32, i32, i32
  }
}

module attributes {stable_mosaic.version = 11 : i64} {
  func.func @_maxpool2x2_kernel(%arg0: i32, %arg1: i32, %arg2: memref<1x2x4x128xbf16, #tpu.memory_space<vmem>>, %arg3: memref<1x1x4x64xbf16, #tpu.memory_space<vmem>>) attributes {dimension_semantics = [#tpu.dimension_semantics<parallel>, #tpu.dimension_semantics<parallel>], iteration_bounds = array<i64: 2, 4>, scalar_prefetch = 0 : i64, scratch_operands = 0 : i64, tpu.core_type = #tpu.core_type<tc>, window_params = [{transform_indices = @transform_0, window_bounds = array<i64: 1, 2, 4, 128>}, {transform_indices = @transform_1, window_bounds = array<i64: 1, 1, 4, 64>}]} {
    %c0 = arith.constant 0 : index
    %c0_0 = arith.constant 0 : index
    %c0_1 = arith.constant 0 : index
    %c0_2 = arith.constant 0 : index
    %0 = vector.load %arg2[%c0, %c0_0, %c0_1, %c0_2] : memref<1x2x4x128xbf16, #tpu.memory_space<vmem>>, vector<1x1x4x128xbf16>
    %1 = vector.shape_cast %0 : vector<1x1x4x128xbf16> to vector<4x128xbf16>
    %c0_3 = arith.constant 0 : index
    %c1 = arith.constant 1 : index
    %c0_4 = arith.constant 0 : index
    %c0_5 = arith.constant 0 : index
    %2 = vector.load %arg2[%c0_3, %c1, %c0_4, %c0_5] : memref<1x2x4x128xbf16, #tpu.memory_space<vmem>>, vector<1x1x4x128xbf16>
    %3 = vector.shape_cast %2 : vector<1x1x4x128xbf16> to vector<4x128xbf16>
    %4 = arith.maximumf %1, %3 : vector<4x128xbf16>
    %5 = vector.extract_strided_slice %4 {offsets = [0, 0], sizes = [4, 64], strides = [1, 1]} : vector<4x128xbf16> to vector<4x64xbf16>
    %6 = vector.extract_strided_slice %4 {offsets = [0, 64], sizes = [4, 64], strides = [1, 1]} : vector<4x128xbf16> to vector<4x64xbf16>
    %7 = arith.maximumf %5, %6 : vector<4x64xbf16>
    %c0_6 = arith.constant 0 : index
    %c0_7 = arith.constant 0 : index
    %c0_8 = arith.constant 0 : index
    %c0_9 = arith.constant 0 : index
    %8 = vector.load %arg3[%c0_6, %c0_7, %c0_8, %c0_9] : memref<1x1x4x64xbf16, #tpu.memory_space<vmem>>, vector<1x1x4x64xbf16>
    %9 = vector.shape_cast %8 : vector<1x1x4x64xbf16> to vector<4x64xbf16>
    %10 = vector.shape_cast %7 : vector<4x64xbf16> to vector<1x1x4x64xbf16>
    tpu.vector_store %arg3[%c0_6, %c0_7, %c0_8, %c0_9], %10 {strides = array<i32>} : memref<1x1x4x64xbf16, #tpu.memory_space<vmem>>, vector<1x1x4x64xbf16>,
    return
  }
  func.func @transform_0(%arg0: i32, %arg1: i32) -> (i32, i32, i32, i32) {
    %c0_i32 = arith.constant 0 : i32
    %c0_i32_0 = arith.constant 0 : i32
    %c0_i32_1 = arith.constant 0 : i32
    return %arg0, %arg1, %c0_i32, %c0_i32_0 : i32, i32, i32, i32
  }
  func.func @transform_1(%arg0: i32, %arg1: i32) -> (i32, i32, i32, i32) {
    %c0_i32 = arith.constant 0 : i32
    %c0_i32_0 = arith.constant 0 : i32
    %c0_i32_1 = arith.constant 0 : i32
    return %arg0, %arg1, %c0_i32, %c0_i32_0 : i32, i32, i32, i32
  }
}

module attributes {stable_mosaic.version = 11 : i64} {
  func.func @_conv_row_kernel(%arg0: i32, %arg1: i32, %arg2: i32, %arg3: memref<1x1x8x64xbf16, #tpu.memory_space<vmem>>, %arg4: memref<5x5x64x128xbf16, #tpu.memory_space<vmem>>, %arg5: memref<1x128xf32, #tpu.memory_space<vmem>>, %arg6: memref<1x1x4x128xbf16, #tpu.memory_space<vmem>>, %arg7: memref<4x128xf32, #tpu.memory_space<vmem>>) attributes {dimension_semantics = [#tpu.dimension_semantics<parallel>, #tpu.dimension_semantics<parallel>, #tpu.dimension_semantics<arbitrary>], iteration_bounds = array<i64: 2, 4, 5>, scalar_prefetch = 0 : i64, scratch_operands = 1 : i64, tpu.core_type = #tpu.core_type<tc>, window_params = [{transform_indices = @transform_0, window_bounds = array<i64: 1, 1, 8, 64>}, {pipeline_mode = #tpu.pipeline_mode<synchronous>, transform_indices = @transform_1, window_bounds = array<i64: 5, 5, 64, 128>}, {pipeline_mode = #tpu.pipeline_mode<synchronous>, transform_indices = @transform_2, window_bounds = array<i64: 1, 128>}, {transform_indices = @transform_3, window_bounds = array<i64: 1, 1, 4, 128>}]} {
    %c0_i32 = arith.constant 0 : i32
    %0 = arith.cmpi eq, %arg2, %c0_i32 : i32
    %1 = arith.extui %0 : i1 to i32
    %c0_i32_0 = arith.constant 0 : i32
    %2 = arith.cmpi ne, %1, %c0_i32_0 : i32
    scf.if %2 {
      %cst_40 = arith.constant 0.000000e+00 : f32
      %43 = vector.broadcast %cst_40 : f32 to vector<4x128xf32>
      %c0_41 = arith.constant 0 : index
      %c0_42 = arith.constant 0 : index
      %44 = vector.load %arg7[%c0_41, %c0_42] : memref<4x128xf32, #tpu.memory_space<vmem>>, vector<4x128xf32>
      tpu.vector_store %arg7[%c0_41, %c0_42], %43 {strides = array<i32>} : memref<4x128xf32, #tpu.memory_space<vmem>>, vector<4x128xf32>,
    } else {
    }
    %c0 = arith.constant 0 : index
    %c0_1 = arith.constant 0 : index
    %c0_2 = arith.constant 0 : index
    %c0_3 = arith.constant 0 : index
    %3 = vector.load %arg3[%c0, %c0_1, %c0_2, %c0_3] : memref<1x1x8x64xbf16, #tpu.memory_space<vmem>>, vector<1x1x4x64xbf16>
    %4 = vector.shape_cast %3 : vector<1x1x4x64xbf16> to vector<4x64xbf16>
    %5 = arith.index_cast %arg2 : i32 to index
    %c0_4 = arith.constant 0 : index
    %c0_5 = arith.constant 0 : index
    %c0_6 = arith.constant 0 : index
    %6 = vector.load %arg4[%5, %c0_4, %c0_5, %c0_6] : memref<5x5x64x128xbf16, #tpu.memory_space<vmem>>, vector<1x1x64x128xbf16>
    %7 = vector.shape_cast %6 : vector<1x1x64x128xbf16> to vector<64x128xbf16>
    %cst = arith.constant dense<0.000000e+00> : vector<4x128xf32>
    %8 = tpu.matmul %4, %7, %cst {dimension_numbers = #tpu.dot_dimension_numbers<[1], [0], [0], [1], [0, 0, 1, 1], [], []>} : vector<4x64xbf16>, vector<64x128xbf16>, vector<4x128xf32> -> vector<4x128xf32>
    %c0_7 = arith.constant 0 : index
    %c0_8 = arith.constant 0 : index
    %c1 = arith.constant 1 : index
    %c0_9 = arith.constant 0 : index
    %9 = vector.load %arg3[%c0_7, %c0_8, %c1, %c0_9] : memref<1x1x8x64xbf16, #tpu.memory_space<vmem>>, vector<1x1x4x64xbf16>
    %10 = vector.shape_cast %9 : vector<1x1x4x64xbf16> to vector<4x64xbf16>
    %11 = arith.index_cast %arg2 : i32 to index
    %c1_10 = arith.constant 1 : index
    %c0_11 = arith.constant 0 : index
    %c0_12 = arith.constant 0 : index
    %12 = vector.load %arg4[%11, %c1_10, %c0_11, %c0_12] : memref<5x5x64x128xbf16, #tpu.memory_space<vmem>>, vector<1x1x64x128xbf16>
    %13 = vector.shape_cast %12 : vector<1x1x64x128xbf16> to vector<64x128xbf16>
    %cst_13 = arith.constant dense<0.000000e+00> : vector<4x128xf32>
    %14 = tpu.matmul %10, %13, %cst_13 {dimension_numbers = #tpu.dot_dimension_numbers<[1], [0], [0], [1], [0, 0, 1, 1], [], []>} : vector<4x64xbf16>, vector<64x128xbf16>, vector<4x128xf32> -> vector<4x128xf32>
    %15 = arith.addf %8, %14 : vector<4x128xf32>
    %c0_14 = arith.constant 0 : index
    %c0_15 = arith.constant 0 : index
    %c2 = arith.constant 2 : index
    %c0_16 = arith.constant 0 : index
    %16 = vector.load %arg3[%c0_14, %c0_15, %c2, %c0_16] : memref<1x1x8x64xbf16, #tpu.memory_space<vmem>>, vector<1x1x4x64xbf16>
    %17 = vector.shape_cast %16 : vector<1x1x4x64xbf16> to vector<4x64xbf16>
    %18 = arith.index_cast %arg2 : i32 to index
    %c2_17 = arith.constant 2 : index
    %c0_18 = arith.constant 0 : index
    %c0_19 = arith.constant 0 : index
    %19 = vector.load %arg4[%18, %c2_17, %c0_18, %c0_19] : memref<5x5x64x128xbf16, #tpu.memory_space<vmem>>, vector<1x1x64x128xbf16>
    %20 = vector.shape_cast %19 : vector<1x1x64x128xbf16> to vector<64x128xbf16>
    %cst_20 = arith.constant dense<0.000000e+00> : vector<4x128xf32>
    %21 = tpu.matmul %17, %20, %cst_20 {dimension_numbers = #tpu.dot_dimension_numbers<[1], [0], [0], [1], [0, 0, 1, 1], [], []>} : vector<4x64xbf16>, vector<64x128xbf16>, vector<4x128xf32> -> vector<4x128xf32>
    %22 = arith.addf %15, %21 : vector<4x128xf32>
    %c0_21 = arith.constant 0 : index
    %c0_22 = arith.constant 0 : index
    %c3 = arith.constant 3 : index
    %c0_23 = arith.constant 0 : index
    %23 = vector.load %arg3[%c0_21, %c0_22, %c3, %c0_23] : memref<1x1x8x64xbf16, #tpu.memory_space<vmem>>, vector<1x1x4x64xbf16>
    %24 = vector.shape_cast %23 : vector<1x1x4x64xbf16> to vector<4x64xbf16>
    %25 = arith.index_cast %arg2 : i32 to index
    %c3_24 = arith.constant 3 : index
    %c0_25 = arith.constant 0 : index
    %c0_26 = arith.constant 0 : index
    %26 = vector.load %arg4[%25, %c3_24, %c0_25, %c0_26] : memref<5x5x64x128xbf16, #tpu.memory_space<vmem>>, vector<1x1x64x128xbf16>
    %27 = vector.shape_cast %26 : vector<1x1x64x128xbf16> to vector<64x128xbf16>
    %cst_27 = arith.constant dense<0.000000e+00> : vector<4x128xf32>
    %28 = tpu.matmul %24, %27, %cst_27 {dimension_numbers = #tpu.dot_dimension_numbers<[1], [0], [0], [1], [0, 0, 1, 1], [], []>} : vector<4x64xbf16>, vector<64x128xbf16>, vector<4x128xf32> -> vector<4x128xf32>
    %29 = arith.addf %22, %28 : vector<4x128xf32>
    %c0_28 = arith.constant 0 : index
    %c0_29 = arith.constant 0 : index
    %c4 = arith.constant 4 : index
    %c0_30 = arith.constant 0 : index
    %30 = vector.load %arg3[%c0_28, %c0_29, %c4, %c0_30] : memref<1x1x8x64xbf16, #tpu.memory_space<vmem>>, vector<1x1x4x64xbf16>
    %31 = vector.shape_cast %30 : vector<1x1x4x64xbf16> to vector<4x64xbf16>
    %32 = arith.index_cast %arg2 : i32 to index
    %c4_31 = arith.constant 4 : index
    %c0_32 = arith.constant 0 : index
    %c0_33 = arith.constant 0 : index
    %33 = vector.load %arg4[%32, %c4_31, %c0_32, %c0_33] : memref<5x5x64x128xbf16, #tpu.memory_space<vmem>>, vector<1x1x64x128xbf16>
    %34 = vector.shape_cast %33 : vector<1x1x64x128xbf16> to vector<64x128xbf16>
    %cst_34 = arith.constant dense<0.000000e+00> : vector<4x128xf32>
    %35 = tpu.matmul %31, %34, %cst_34 {dimension_numbers = #tpu.dot_dimension_numbers<[1], [0], [0], [1], [0, 0, 1, 1], [], []>} : vector<4x64xbf16>, vector<64x128xbf16>, vector<4x128xf32> -> vector<4x128xf32>
    %36 = arith.addf %29, %35 : vector<4x128xf32>
    %c0_35 = arith.constant 0 : index
    %c0_36 = arith.constant 0 : index
    %37 = vector.load %arg7[%c0_35, %c0_36] : memref<4x128xf32, #tpu.memory_space<vmem>>, vector<4x128xf32>
    %38 = arith.addf %37, %36 : vector<4x128xf32>
    %c0_37 = arith.constant 0 : index
    %c0_38 = arith.constant 0 : index
    %39 = vector.load %arg7[%c0_37, %c0_38] : memref<4x128xf32, #tpu.memory_space<vmem>>, vector<4x128xf32>
    tpu.vector_store %arg7[%c0_37, %c0_38], %38 {strides = array<i32>} : memref<4x128xf32, #tpu.memory_space<vmem>>, vector<4x128xf32>,
    %c4_i32 = arith.constant 4 : i32
    %40 = arith.cmpi eq, %arg2, %c4_i32 : i32
    %41 = arith.extui %40 : i1 to i32
    %c0_i32_39 = arith.constant 0 : i32
    %42 = arith.cmpi ne, %41, %c0_i32_39 : i32
    scf.if %42 {
      %c0_40 = arith.constant 0 : index
      %c0_41 = arith.constant 0 : index
      %43 = vector.load %arg7[%c0_40, %c0_41] : memref<4x128xf32, #tpu.memory_space<vmem>>, vector<4x128xf32>
      %c0_42 = arith.constant 0 : index
      %c0_43 = arith.constant 0 : index
      %44 = vector.load %arg5[%c0_42, %c0_43] : memref<1x128xf32, #tpu.memory_space<vmem>>, vector<1x128xf32>
      %45 = vector.broadcast %44 : vector<1x128xf32> to vector<4x128xf32>
      %46 = arith.addf %43, %45 : vector<4x128xf32>
      %cst_44 = arith.constant 0.000000e+00 : f32
      %47 = vector.broadcast %cst_44 : f32 to vector<4x128xf32>
      %48 = arith.maximumf %46, %47 : vector<4x128xf32>
      %49 = arith.truncf %48 : vector<4x128xf32> to vector<4x128xbf16>
      %c0_45 = arith.constant 0 : index
      %c0_46 = arith.constant 0 : index
      %c0_47 = arith.constant 0 : index
      %c0_48 = arith.constant 0 : index
      %50 = vector.load %arg6[%c0_45, %c0_46, %c0_47, %c0_48] : memref<1x1x4x128xbf16, #tpu.memory_space<vmem>>, vector<1x1x4x128xbf16>
      %51 = vector.shape_cast %50 : vector<1x1x4x128xbf16> to vector<4x128xbf16>
      %52 = vector.shape_cast %49 : vector<4x128xbf16> to vector<1x1x4x128xbf16>
      tpu.vector_store %arg6[%c0_45, %c0_46, %c0_47, %c0_48], %52 {strides = array<i32>} : memref<1x1x4x128xbf16, #tpu.memory_space<vmem>>, vector<1x1x4x128xbf16>,
    } else {
    }
    return
  }
  func.func @transform_0(%arg0: i32, %arg1: i32, %arg2: i32) -> (i32, i32, i32, i32) {
    %0 = arith.addi %arg1, %arg2 : i32
    %c0_i32 = arith.constant 0 : i32
    %c0_i32_0 = arith.constant 0 : i32
    %c0_i32_1 = arith.constant 0 : i32
    return %arg0, %0, %c0_i32, %c0_i32_0 : i32, i32, i32, i32
  }
  func.func @transform_1(%arg0: i32, %arg1: i32, %arg2: i32) -> (i32, i32, i32, i32) {
    %c0_i32 = arith.constant 0 : i32
    %c0_i32_0 = arith.constant 0 : i32
    %c0_i32_1 = arith.constant 0 : i32
    %c0_i32_2 = arith.constant 0 : i32
    %c0_i32_3 = arith.constant 0 : i32
    return %c0_i32, %c0_i32_0, %c0_i32_1, %c0_i32_2 : i32, i32, i32, i32
  }
  func.func @transform_2(%arg0: i32, %arg1: i32, %arg2: i32) -> (i32, i32) {
    %c0_i32 = arith.constant 0 : i32
    %c0_i32_0 = arith.constant 0 : i32
    %c0_i32_1 = arith.constant 0 : i32
    return %c0_i32, %c0_i32_0 : i32, i32
  }
  func.func @transform_3(%arg0: i32, %arg1: i32, %arg2: i32) -> (i32, i32, i32, i32) {
    %c0_i32 = arith.constant 0 : i32
    %c0_i32_0 = arith.constant 0 : i32
    %c0_i32_1 = arith.constant 0 : i32
    return %arg0, %arg1, %c0_i32, %c0_i32_0 : i32, i32, i32, i32
  }
}

module attributes {stable_mosaic.version = 11 : i64} {
  func.func @_conv_row_kernel(%arg0: i32, %arg1: i32, %arg2: i32, %arg3: memref<1x1x6x128xbf16, #tpu.memory_space<vmem>>, %arg4: memref<5x5x128x256xbf16, #tpu.memory_space<vmem>>, %arg5: memref<1x256xf32, #tpu.memory_space<vmem>>, %arg6: memref<1x1x2x256xbf16, #tpu.memory_space<vmem>>, %arg7: memref<2x256xf32, #tpu.memory_space<vmem>>) attributes {dimension_semantics = [#tpu.dimension_semantics<parallel>, #tpu.dimension_semantics<parallel>, #tpu.dimension_semantics<arbitrary>], iteration_bounds = array<i64: 2, 2, 5>, scalar_prefetch = 0 : i64, scratch_operands = 1 : i64, tpu.core_type = #tpu.core_type<tc>, window_params = [{transform_indices = @transform_0, window_bounds = array<i64: 1, 1, 6, 128>}, {pipeline_mode = #tpu.pipeline_mode<synchronous>, transform_indices = @transform_1, window_bounds = array<i64: 5, 5, 128, 256>}, {pipeline_mode = #tpu.pipeline_mode<synchronous>, transform_indices = @transform_2, window_bounds = array<i64: 1, 256>}, {transform_indices = @transform_3, window_bounds = array<i64: 1, 1, 2, 256>}]} {
    %c0_i32 = arith.constant 0 : i32
    %0 = arith.cmpi eq, %arg2, %c0_i32 : i32
    %1 = arith.extui %0 : i1 to i32
    %c0_i32_0 = arith.constant 0 : i32
    %2 = arith.cmpi ne, %1, %c0_i32_0 : i32
    scf.if %2 {
      %cst_40 = arith.constant 0.000000e+00 : f32
      %43 = vector.broadcast %cst_40 : f32 to vector<2x256xf32>
      %c0_41 = arith.constant 0 : index
      %c0_42 = arith.constant 0 : index
      %44 = vector.load %arg7[%c0_41, %c0_42] : memref<2x256xf32, #tpu.memory_space<vmem>>, vector<2x256xf32>
      tpu.vector_store %arg7[%c0_41, %c0_42], %43 {strides = array<i32>} : memref<2x256xf32, #tpu.memory_space<vmem>>, vector<2x256xf32>,
    } else {
    }
    %c0 = arith.constant 0 : index
    %c0_1 = arith.constant 0 : index
    %c0_2 = arith.constant 0 : index
    %c0_3 = arith.constant 0 : index
    %3 = vector.load %arg3[%c0, %c0_1, %c0_2, %c0_3] : memref<1x1x6x128xbf16, #tpu.memory_space<vmem>>, vector<1x1x2x128xbf16>
    %4 = vector.shape_cast %3 : vector<1x1x2x128xbf16> to vector<2x128xbf16>
    %5 = arith.index_cast %arg2 : i32 to index
    %c0_4 = arith.constant 0 : index
    %c0_5 = arith.constant 0 : index
    %c0_6 = arith.constant 0 : index
    %6 = vector.load %arg4[%5, %c0_4, %c0_5, %c0_6] : memref<5x5x128x256xbf16, #tpu.memory_space<vmem>>, vector<1x1x128x256xbf16>
    %7 = vector.shape_cast %6 : vector<1x1x128x256xbf16> to vector<128x256xbf16>
    %cst = arith.constant dense<0.000000e+00> : vector<2x256xf32>
    %8 = tpu.matmul %4, %7, %cst {dimension_numbers = #tpu.dot_dimension_numbers<[1], [0], [0], [1], [0, 0, 1, 1], [], []>} : vector<2x128xbf16>, vector<128x256xbf16>, vector<2x256xf32> -> vector<2x256xf32>
    %c0_7 = arith.constant 0 : index
    %c0_8 = arith.constant 0 : index
    %c1 = arith.constant 1 : index
    %c0_9 = arith.constant 0 : index
    %9 = vector.load %arg3[%c0_7, %c0_8, %c1, %c0_9] : memref<1x1x6x128xbf16, #tpu.memory_space<vmem>>, vector<1x1x2x128xbf16>
    %10 = vector.shape_cast %9 : vector<1x1x2x128xbf16> to vector<2x128xbf16>
    %11 = arith.index_cast %arg2 : i32 to index
    %c1_10 = arith.constant 1 : index
    %c0_11 = arith.constant 0 : index
    %c0_12 = arith.constant 0 : index
    %12 = vector.load %arg4[%11, %c1_10, %c0_11, %c0_12] : memref<5x5x128x256xbf16, #tpu.memory_space<vmem>>, vector<1x1x128x256xbf16>
    %13 = vector.shape_cast %12 : vector<1x1x128x256xbf16> to vector<128x256xbf16>
    %cst_13 = arith.constant dense<0.000000e+00> : vector<2x256xf32>
    %14 = tpu.matmul %10, %13, %cst_13 {dimension_numbers = #tpu.dot_dimension_numbers<[1], [0], [0], [1], [0, 0, 1, 1], [], []>} : vector<2x128xbf16>, vector<128x256xbf16>, vector<2x256xf32> -> vector<2x256xf32>
    %15 = arith.addf %8, %14 : vector<2x256xf32>
    %c0_14 = arith.constant 0 : index
    %c0_15 = arith.constant 0 : index
    %c2 = arith.constant 2 : index
    %c0_16 = arith.constant 0 : index
    %16 = vector.load %arg3[%c0_14, %c0_15, %c2, %c0_16] : memref<1x1x6x128xbf16, #tpu.memory_space<vmem>>, vector<1x1x2x128xbf16>
    %17 = vector.shape_cast %16 : vector<1x1x2x128xbf16> to vector<2x128xbf16>
    %18 = arith.index_cast %arg2 : i32 to index
    %c2_17 = arith.constant 2 : index
    %c0_18 = arith.constant 0 : index
    %c0_19 = arith.constant 0 : index
    %19 = vector.load %arg4[%18, %c2_17, %c0_18, %c0_19] : memref<5x5x128x256xbf16, #tpu.memory_space<vmem>>, vector<1x1x128x256xbf16>
    %20 = vector.shape_cast %19 : vector<1x1x128x256xbf16> to vector<128x256xbf16>
    %cst_20 = arith.constant dense<0.000000e+00> : vector<2x256xf32>
    %21 = tpu.matmul %17, %20, %cst_20 {dimension_numbers = #tpu.dot_dimension_numbers<[1], [0], [0], [1], [0, 0, 1, 1], [], []>} : vector<2x128xbf16>, vector<128x256xbf16>, vector<2x256xf32> -> vector<2x256xf32>
    %22 = arith.addf %15, %21 : vector<2x256xf32>
    %c0_21 = arith.constant 0 : index
    %c0_22 = arith.constant 0 : index
    %c3 = arith.constant 3 : index
    %c0_23 = arith.constant 0 : index
    %23 = vector.load %arg3[%c0_21, %c0_22, %c3, %c0_23] : memref<1x1x6x128xbf16, #tpu.memory_space<vmem>>, vector<1x1x2x128xbf16>
    %24 = vector.shape_cast %23 : vector<1x1x2x128xbf16> to vector<2x128xbf16>
    %25 = arith.index_cast %arg2 : i32 to index
    %c3_24 = arith.constant 3 : index
    %c0_25 = arith.constant 0 : index
    %c0_26 = arith.constant 0 : index
    %26 = vector.load %arg4[%25, %c3_24, %c0_25, %c0_26] : memref<5x5x128x256xbf16, #tpu.memory_space<vmem>>, vector<1x1x128x256xbf16>
    %27 = vector.shape_cast %26 : vector<1x1x128x256xbf16> to vector<128x256xbf16>
    %cst_27 = arith.constant dense<0.000000e+00> : vector<2x256xf32>
    %28 = tpu.matmul %24, %27, %cst_27 {dimension_numbers = #tpu.dot_dimension_numbers<[1], [0], [0], [1], [0, 0, 1, 1], [], []>} : vector<2x128xbf16>, vector<128x256xbf16>, vector<2x256xf32> -> vector<2x256xf32>
    %29 = arith.addf %22, %28 : vector<2x256xf32>
    %c0_28 = arith.constant 0 : index
    %c0_29 = arith.constant 0 : index
    %c4 = arith.constant 4 : index
    %c0_30 = arith.constant 0 : index
    %30 = vector.load %arg3[%c0_28, %c0_29, %c4, %c0_30] : memref<1x1x6x128xbf16, #tpu.memory_space<vmem>>, vector<1x1x2x128xbf16>
    %31 = vector.shape_cast %30 : vector<1x1x2x128xbf16> to vector<2x128xbf16>
    %32 = arith.index_cast %arg2 : i32 to index
    %c4_31 = arith.constant 4 : index
    %c0_32 = arith.constant 0 : index
    %c0_33 = arith.constant 0 : index
    %33 = vector.load %arg4[%32, %c4_31, %c0_32, %c0_33] : memref<5x5x128x256xbf16, #tpu.memory_space<vmem>>, vector<1x1x128x256xbf16>
    %34 = vector.shape_cast %33 : vector<1x1x128x256xbf16> to vector<128x256xbf16>
    %cst_34 = arith.constant dense<0.000000e+00> : vector<2x256xf32>
    %35 = tpu.matmul %31, %34, %cst_34 {dimension_numbers = #tpu.dot_dimension_numbers<[1], [0], [0], [1], [0, 0, 1, 1], [], []>} : vector<2x128xbf16>, vector<128x256xbf16>, vector<2x256xf32> -> vector<2x256xf32>
    %36 = arith.addf %29, %35 : vector<2x256xf32>
    %c0_35 = arith.constant 0 : index
    %c0_36 = arith.constant 0 : index
    %37 = vector.load %arg7[%c0_35, %c0_36] : memref<2x256xf32, #tpu.memory_space<vmem>>, vector<2x256xf32>
    %38 = arith.addf %37, %36 : vector<2x256xf32>
    %c0_37 = arith.constant 0 : index
    %c0_38 = arith.constant 0 : index
    %39 = vector.load %arg7[%c0_37, %c0_38] : memref<2x256xf32, #tpu.memory_space<vmem>>, vector<2x256xf32>
    tpu.vector_store %arg7[%c0_37, %c0_38], %38 {strides = array<i32>} : memref<2x256xf32, #tpu.memory_space<vmem>>, vector<2x256xf32>,
    %c4_i32 = arith.constant 4 : i32
    %40 = arith.cmpi eq, %arg2, %c4_i32 : i32
    %41 = arith.extui %40 : i1 to i32
    %c0_i32_39 = arith.constant 0 : i32
    %42 = arith.cmpi ne, %41, %c0_i32_39 : i32
    scf.if %42 {
      %c0_40 = arith.constant 0 : index
      %c0_41 = arith.constant 0 : index
      %43 = vector.load %arg7[%c0_40, %c0_41] : memref<2x256xf32, #tpu.memory_space<vmem>>, vector<2x256xf32>
      %c0_42 = arith.constant 0 : index
      %c0_43 = arith.constant 0 : index
      %44 = vector.load %arg5[%c0_42, %c0_43] : memref<1x256xf32, #tpu.memory_space<vmem>>, vector<1x256xf32>
      %45 = vector.broadcast %44 : vector<1x256xf32> to vector<2x256xf32>
      %46 = arith.addf %43, %45 : vector<2x256xf32>
      %cst_44 = arith.constant 0.000000e+00 : f32
      %47 = vector.broadcast %cst_44 : f32 to vector<2x256xf32>
      %48 = arith.maximumf %46, %47 : vector<2x256xf32>
      %49 = arith.truncf %48 : vector<2x256xf32> to vector<2x256xbf16>
      %c0_45 = arith.constant 0 : index
      %c0_46 = arith.constant 0 : index
      %c0_47 = arith.constant 0 : index
      %c0_48 = arith.constant 0 : index
      %50 = vector.load %arg6[%c0_45, %c0_46, %c0_47, %c0_48] : memref<1x1x2x256xbf16, #tpu.memory_space<vmem>>, vector<1x1x2x256xbf16>
      %51 = vector.shape_cast %50 : vector<1x1x2x256xbf16> to vector<2x256xbf16>
      %52 = vector.shape_cast %49 : vector<2x256xbf16> to vector<1x1x2x256xbf16>
      tpu.vector_store %arg6[%c0_45, %c0_46, %c0_47, %c0_48], %52 {strides = array<i32>} : memref<1x1x2x256xbf16, #tpu.memory_space<vmem>>, vector<1x1x2x256xbf16>,
    } else {
    }
    return
  }
  func.func @transform_0(%arg0: i32, %arg1: i32, %arg2: i32) -> (i32, i32, i32, i32) {
    %0 = arith.addi %arg1, %arg2 : i32
    %c0_i32 = arith.constant 0 : i32
    %c0_i32_0 = arith.constant 0 : i32
    %c0_i32_1 = arith.constant 0 : i32
    return %arg0, %0, %c0_i32, %c0_i32_0 : i32, i32, i32, i32
  }
  func.func @transform_1(%arg0: i32, %arg1: i32, %arg2: i32) -> (i32, i32, i32, i32) {
    %c0_i32 = arith.constant 0 : i32
    %c0_i32_0 = arith.constant 0 : i32
    %c0_i32_1 = arith.constant 0 : i32
    %c0_i32_2 = arith.constant 0 : i32
    %c0_i32_3 = arith.constant 0 : i32
    return %c0_i32, %c0_i32_0, %c0_i32_1, %c0_i32_2 : i32, i32, i32, i32
  }
  func.func @transform_2(%arg0: i32, %arg1: i32, %arg2: i32) -> (i32, i32) {
    %c0_i32 = arith.constant 0 : i32
    %c0_i32_0 = arith.constant 0 : i32
    %c0_i32_1 = arith.constant 0 : i32
    return %c0_i32, %c0_i32_0 : i32, i32
  }
  func.func @transform_3(%arg0: i32, %arg1: i32, %arg2: i32) -> (i32, i32, i32, i32) {
    %c0_i32 = arith.constant 0 : i32
    %c0_i32_0 = arith.constant 0 : i32
    %c0_i32_1 = arith.constant 0 : i32
    return %arg0, %arg1, %c0_i32, %c0_i32_0 : i32, i32, i32, i32
  }
}

module attributes {stable_mosaic.version = 11 : i64} {
  func.func @_maxpool2x2_kernel(%arg0: i32, %arg1: i32, %arg2: memref<1x2x2x256xbf16, #tpu.memory_space<vmem>>, %arg3: memref<1x1x2x128xbf16, #tpu.memory_space<vmem>>) attributes {dimension_semantics = [#tpu.dimension_semantics<parallel>, #tpu.dimension_semantics<parallel>], iteration_bounds = array<i64: 2, 2>, scalar_prefetch = 0 : i64, scratch_operands = 0 : i64, tpu.core_type = #tpu.core_type<tc>, window_params = [{transform_indices = @transform_0, window_bounds = array<i64: 1, 2, 2, 256>}, {transform_indices = @transform_1, window_bounds = array<i64: 1, 1, 2, 128>}]} {
    %c0 = arith.constant 0 : index
    %c0_0 = arith.constant 0 : index
    %c0_1 = arith.constant 0 : index
    %c0_2 = arith.constant 0 : index
    %0 = vector.load %arg2[%c0, %c0_0, %c0_1, %c0_2] : memref<1x2x2x256xbf16, #tpu.memory_space<vmem>>, vector<1x1x2x256xbf16>
    %1 = vector.shape_cast %0 : vector<1x1x2x256xbf16> to vector<2x256xbf16>
    %c0_3 = arith.constant 0 : index
    %c1 = arith.constant 1 : index
    %c0_4 = arith.constant 0 : index
    %c0_5 = arith.constant 0 : index
    %2 = vector.load %arg2[%c0_3, %c1, %c0_4, %c0_5] : memref<1x2x2x256xbf16, #tpu.memory_space<vmem>>, vector<1x1x2x256xbf16>
    %3 = vector.shape_cast %2 : vector<1x1x2x256xbf16> to vector<2x256xbf16>
    %4 = arith.maximumf %1, %3 : vector<2x256xbf16>
    %5 = vector.extract_strided_slice %4 {offsets = [0, 0], sizes = [2, 128], strides = [1, 1]} : vector<2x256xbf16> to vector<2x128xbf16>
    %6 = vector.extract_strided_slice %4 {offsets = [0, 128], sizes = [2, 128], strides = [1, 1]} : vector<2x256xbf16> to vector<2x128xbf16>
    %7 = arith.maximumf %5, %6 : vector<2x128xbf16>
    %c0_6 = arith.constant 0 : index
    %c0_7 = arith.constant 0 : index
    %c0_8 = arith.constant 0 : index
    %c0_9 = arith.constant 0 : index
    %8 = vector.load %arg3[%c0_6, %c0_7, %c0_8, %c0_9] : memref<1x1x2x128xbf16, #tpu.memory_space<vmem>>, vector<1x1x2x128xbf16>
    %9 = vector.shape_cast %8 : vector<1x1x2x128xbf16> to vector<2x128xbf16>
    %10 = vector.shape_cast %7 : vector<2x128xbf16> to vector<1x1x2x128xbf16>
    tpu.vector_store %arg3[%c0_6, %c0_7, %c0_8, %c0_9], %10 {strides = array<i32>} : memref<1x1x2x128xbf16, #tpu.memory_space<vmem>>, vector<1x1x2x128xbf16>,
    return
  }
  func.func @transform_0(%arg0: i32, %arg1: i32) -> (i32, i32, i32, i32) {
    %c0_i32 = arith.constant 0 : i32
    %c0_i32_0 = arith.constant 0 : i32
    %c0_i32_1 = arith.constant 0 : i32
    return %arg0, %arg1, %c0_i32, %c0_i32_0 : i32, i32, i32, i32
  }
  func.func @transform_1(%arg0: i32, %arg1: i32) -> (i32, i32, i32, i32) {
    %c0_i32 = arith.constant 0 : i32
    %c0_i32_0 = arith.constant 0 : i32
    %c0_i32_1 = arith.constant 0 : i32
    return %arg0, %arg1, %c0_i32, %c0_i32_0 : i32, i32, i32, i32
  }
}

module attributes {stable_mosaic.version = 11 : i64} {
  func.func @_conv_row_kernel(%arg0: i32, %arg1: i32, %arg2: i32, %arg3: memref<1x1x2x256xbf16, #tpu.memory_space<vmem>>, %arg4: memref<1x1x256x128xbf16, #tpu.memory_space<vmem>>, %arg5: memref<1x128xf32, #tpu.memory_space<vmem>>, %arg6: memref<1x1x2x128xf32, #tpu.memory_space<vmem>>, %arg7: memref<2x128xf32, #tpu.memory_space<vmem>>) attributes {dimension_semantics = [#tpu.dimension_semantics<parallel>, #tpu.dimension_semantics<parallel>, #tpu.dimension_semantics<arbitrary>], iteration_bounds = array<i64: 2, 2, 1>, scalar_prefetch = 0 : i64, scratch_operands = 1 : i64, tpu.core_type = #tpu.core_type<tc>, window_params = [{transform_indices = @transform_0, window_bounds = array<i64: 1, 1, 2, 256>}, {pipeline_mode = #tpu.pipeline_mode<synchronous>, transform_indices = @transform_1, window_bounds = array<i64: 1, 1, 256, 128>}, {pipeline_mode = #tpu.pipeline_mode<synchronous>, transform_indices = @transform_2, window_bounds = array<i64: 1, 128>}, {transform_indices = @transform_3, window_bounds = array<i64: 1, 1, 2, 128>}]} {
    %c0_i32 = arith.constant 0 : i32
    %0 = arith.cmpi eq, %arg2, %c0_i32 : i32
    %1 = arith.extui %0 : i1 to i32
    %c0_i32_0 = arith.constant 0 : i32
    %2 = arith.cmpi ne, %1, %c0_i32_0 : i32
    scf.if %2 {
      %cst_13 = arith.constant 0.000000e+00 : f32
      %15 = vector.broadcast %cst_13 : f32 to vector<2x128xf32>
      %c0_14 = arith.constant 0 : index
      %c0_15 = arith.constant 0 : index
      %16 = vector.load %arg7[%c0_14, %c0_15] : memref<2x128xf32, #tpu.memory_space<vmem>>, vector<2x128xf32>
      tpu.vector_store %arg7[%c0_14, %c0_15], %15 {strides = array<i32>} : memref<2x128xf32, #tpu.memory_space<vmem>>, vector<2x128xf32>,
    } else {
    }
    %c0 = arith.constant 0 : index
    %c0_1 = arith.constant 0 : index
    %c0_2 = arith.constant 0 : index
    %c0_3 = arith.constant 0 : index
    %3 = vector.load %arg3[%c0, %c0_1, %c0_2, %c0_3] : memref<1x1x2x256xbf16, #tpu.memory_space<vmem>>, vector<1x1x2x256xbf16>
    %4 = vector.shape_cast %3 : vector<1x1x2x256xbf16> to vector<2x256xbf16>
    %5 = arith.index_cast %arg2 : i32 to index
    %c0_4 = arith.constant 0 : index
    %c0_5 = arith.constant 0 : index
    %c0_6 = arith.constant 0 : index
    %6 = vector.load %arg4[%5, %c0_4, %c0_5, %c0_6] : memref<1x1x256x128xbf16, #tpu.memory_space<vmem>>, vector<1x1x256x128xbf16>
    %7 = vector.shape_cast %6 : vector<1x1x256x128xbf16> to vector<256x128xbf16>
    %cst = arith.constant dense<0.000000e+00> : vector<2x128xf32>
    %8 = tpu.matmul %4, %7, %cst {dimension_numbers = #tpu.dot_dimension_numbers<[1], [0], [0], [1], [0, 0, 1, 1], [], []>} : vector<2x256xbf16>, vector<256x128xbf16>, vector<2x128xf32> -> vector<2x128xf32>
    %c0_7 = arith.constant 0 : index
    %c0_8 = arith.constant 0 : index
    %9 = vector.load %arg7[%c0_7, %c0_8] : memref<2x128xf32, #tpu.memory_space<vmem>>, vector<2x128xf32>
    %10 = arith.addf %9, %8 : vector<2x128xf32>
    %c0_9 = arith.constant 0 : index
    %c0_10 = arith.constant 0 : index
    %11 = vector.load %arg7[%c0_9, %c0_10] : memref<2x128xf32, #tpu.memory_space<vmem>>, vector<2x128xf32>
    tpu.vector_store %arg7[%c0_9, %c0_10], %10 {strides = array<i32>} : memref<2x128xf32, #tpu.memory_space<vmem>>, vector<2x128xf32>,
    %c0_i32_11 = arith.constant 0 : i32
    %12 = arith.cmpi eq, %arg2, %c0_i32_11 : i32
    %13 = arith.extui %12 : i1 to i32
    %c0_i32_12 = arith.constant 0 : i32
    %14 = arith.cmpi ne, %13, %c0_i32_12 : i32
    scf.if %14 {
      %c0_13 = arith.constant 0 : index
      %c0_14 = arith.constant 0 : index
      %15 = vector.load %arg7[%c0_13, %c0_14] : memref<2x128xf32, #tpu.memory_space<vmem>>, vector<2x128xf32>
      %c0_15 = arith.constant 0 : index
      %c0_16 = arith.constant 0 : index
      %16 = vector.load %arg5[%c0_15, %c0_16] : memref<1x128xf32, #tpu.memory_space<vmem>>, vector<1x128xf32>
      %17 = vector.broadcast %16 : vector<1x128xf32> to vector<2x128xf32>
      %18 = arith.addf %15, %17 : vector<2x128xf32>
      %19 = tpu.iota {dimensions = array<i32: 1>} : vector<2x128xi32>
      %c0_i32_17 = arith.constant 0 : i32
      %20 = vector.broadcast %c0_i32_17 : i32 to vector<2x128xi32>
      %21 = arith.cmpi eq, %19, %20 : vector<2x128xi32>
      %22 = arith.negf %18 : vector<2x128xf32>
      %23 = math.exp %22 : vector<2x128xf32>
      %cst_18 = arith.constant 1.000000e+00 : f32
      %24 = vector.broadcast %cst_18 : f32 to vector<2x128xf32>
      %25 = arith.addf %24, %23 : vector<2x128xf32>
      %26 = arith.divf %24, %25 : vector<2x128xf32>
      %27 = arith.select %21, %26, %18 : vector<2x128xi1>, vector<2x128xf32>
      %c0_19 = arith.constant 0 : index
      %c0_20 = arith.constant 0 : index
      %c0_21 = arith.constant 0 : index
      %c0_22 = arith.constant 0 : index
      %28 = vector.load %arg6[%c0_19, %c0_20, %c0_21, %c0_22] : memref<1x1x2x128xf32, #tpu.memory_space<vmem>>, vector<1x1x2x128xf32>
      %29 = vector.shape_cast %28 : vector<1x1x2x128xf32> to vector<2x128xf32>
      %30 = vector.shape_cast %27 : vector<2x128xf32> to vector<1x1x2x128xf32>
      tpu.vector_store %arg6[%c0_19, %c0_20, %c0_21, %c0_22], %30 {strides = array<i32>} : memref<1x1x2x128xf32, #tpu.memory_space<vmem>>, vector<1x1x2x128xf32>,
    } else {
    }
    return
  }
  func.func @transform_0(%arg0: i32, %arg1: i32, %arg2: i32) -> (i32, i32, i32, i32) {
    %0 = arith.addi %arg1, %arg2 : i32
    %c0_i32 = arith.constant 0 : i32
    %c0_i32_0 = arith.constant 0 : i32
    %c0_i32_1 = arith.constant 0 : i32
    return %arg0, %0, %c0_i32, %c0_i32_0 : i32, i32, i32, i32
  }
  func.func @transform_1(%arg0: i32, %arg1: i32, %arg2: i32) -> (i32, i32, i32, i32) {
    %c0_i32 = arith.constant 0 : i32
    %c0_i32_0 = arith.constant 0 : i32
    %c0_i32_1 = arith.constant 0 : i32
    %c0_i32_2 = arith.constant 0 : i32
    %c0_i32_3 = arith.constant 0 : i32
    return %c0_i32, %c0_i32_0, %c0_i32_1, %c0_i32_2 : i32, i32, i32, i32
  }
  func.func @transform_2(%arg0: i32, %arg1: i32, %arg2: i32) -> (i32, i32) {
    %c0_i32 = arith.constant 0 : i32
    %c0_i32_0 = arith.constant 0 : i32
    %c0_i32_1 = arith.constant 0 : i32
    return %c0_i32, %c0_i32_0 : i32, i32
  }
  func.func @transform_3(%arg0: i32, %arg1: i32, %arg2: i32) -> (i32, i32, i32, i32) {
    %c0_i32 = arith.constant 0 : i32
    %c0_i32_0 = arith.constant 0 : i32
    %c0_i32_1 = arith.constant 0 : i32
    return %arg0, %arg1, %c0_i32, %c0_i32_0 : i32, i32, i32, i32
  }
}

module attributes {stable_mosaic.version = 11 : i64} {
  func.func @_conv_row_kernel(%arg0: i32, %arg1: i32, %arg2: i32, %arg3: memref<1x1x4x256xbf16, #tpu.memory_space<vmem>>, %arg4: memref<3x3x256x256xbf16, #tpu.memory_space<vmem>>, %arg5: memref<1x256xf32, #tpu.memory_space<vmem>>, %arg6: memref<1x1x2x256xbf16, #tpu.memory_space<vmem>>, %arg7: memref<2x256xf32, #tpu.memory_space<vmem>>) attributes {dimension_semantics = [#tpu.dimension_semantics<parallel>, #tpu.dimension_semantics<parallel>, #tpu.dimension_semantics<arbitrary>], iteration_bounds = array<i64: 2, 2, 3>, scalar_prefetch = 0 : i64, scratch_operands = 1 : i64, tpu.core_type = #tpu.core_type<tc>, window_params = [{transform_indices = @transform_0, window_bounds = array<i64: 1, 1, 4, 256>}, {pipeline_mode = #tpu.pipeline_mode<synchronous>, transform_indices = @transform_1, window_bounds = array<i64: 3, 3, 256, 256>}, {pipeline_mode = #tpu.pipeline_mode<synchronous>, transform_indices = @transform_2, window_bounds = array<i64: 1, 256>}, {transform_indices = @transform_3, window_bounds = array<i64: 1, 1, 2, 256>}]} {
    %c0_i32 = arith.constant 0 : i32
    %0 = arith.cmpi eq, %arg2, %c0_i32 : i32
    %1 = arith.extui %0 : i1 to i32
    %c0_i32_0 = arith.constant 0 : i32
    %2 = arith.cmpi ne, %1, %c0_i32_0 : i32
    scf.if %2 {
      %cst_26 = arith.constant 0.000000e+00 : f32
      %29 = vector.broadcast %cst_26 : f32 to vector<2x256xf32>
      %c0_27 = arith.constant 0 : index
      %c0_28 = arith.constant 0 : index
      %30 = vector.load %arg7[%c0_27, %c0_28] : memref<2x256xf32, #tpu.memory_space<vmem>>, vector<2x256xf32>
      tpu.vector_store %arg7[%c0_27, %c0_28], %29 {strides = array<i32>} : memref<2x256xf32, #tpu.memory_space<vmem>>, vector<2x256xf32>,
    } else {
    }
    %c0 = arith.constant 0 : index
    %c0_1 = arith.constant 0 : index
    %c0_2 = arith.constant 0 : index
    %c0_3 = arith.constant 0 : index
    %3 = vector.load %arg3[%c0, %c0_1, %c0_2, %c0_3] : memref<1x1x4x256xbf16, #tpu.memory_space<vmem>>, vector<1x1x2x256xbf16>
    %4 = vector.shape_cast %3 : vector<1x1x2x256xbf16> to vector<2x256xbf16>
    %5 = arith.index_cast %arg2 : i32 to index
    %c0_4 = arith.constant 0 : index
    %c0_5 = arith.constant 0 : index
    %c0_6 = arith.constant 0 : index
    %6 = vector.load %arg4[%5, %c0_4, %c0_5, %c0_6] : memref<3x3x256x256xbf16, #tpu.memory_space<vmem>>, vector<1x1x256x256xbf16>
    %7 = vector.shape_cast %6 : vector<1x1x256x256xbf16> to vector<256x256xbf16>
    %cst = arith.constant dense<0.000000e+00> : vector<2x256xf32>
    %8 = tpu.matmul %4, %7, %cst {dimension_numbers = #tpu.dot_dimension_numbers<[1], [0], [0], [1], [0, 0, 1, 1], [], []>} : vector<2x256xbf16>, vector<256x256xbf16>, vector<2x256xf32> -> vector<2x256xf32>
    %c0_7 = arith.constant 0 : index
    %c0_8 = arith.constant 0 : index
    %c1 = arith.constant 1 : index
    %c0_9 = arith.constant 0 : index
    %9 = vector.load %arg3[%c0_7, %c0_8, %c1, %c0_9] : memref<1x1x4x256xbf16, #tpu.memory_space<vmem>>, vector<1x1x2x256xbf16>
    %10 = vector.shape_cast %9 : vector<1x1x2x256xbf16> to vector<2x256xbf16>
    %11 = arith.index_cast %arg2 : i32 to index
    %c1_10 = arith.constant 1 : index
    %c0_11 = arith.constant 0 : index
    %c0_12 = arith.constant 0 : index
    %12 = vector.load %arg4[%11, %c1_10, %c0_11, %c0_12] : memref<3x3x256x256xbf16, #tpu.memory_space<vmem>>, vector<1x1x256x256xbf16>
    %13 = vector.shape_cast %12 : vector<1x1x256x256xbf16> to vector<256x256xbf16>
    %cst_13 = arith.constant dense<0.000000e+00> : vector<2x256xf32>
    %14 = tpu.matmul %10, %13, %cst_13 {dimension_numbers = #tpu.dot_dimension_numbers<[1], [0], [0], [1], [0, 0, 1, 1], [], []>} : vector<2x256xbf16>, vector<256x256xbf16>, vector<2x256xf32> -> vector<2x256xf32>
    %15 = arith.addf %8, %14 : vector<2x256xf32>
    %c0_14 = arith.constant 0 : index
    %c0_15 = arith.constant 0 : index
    %c2 = arith.constant 2 : index
    %c0_16 = arith.constant 0 : index
    %16 = vector.load %arg3[%c0_14, %c0_15, %c2, %c0_16] : memref<1x1x4x256xbf16, #tpu.memory_space<vmem>>, vector<1x1x2x256xbf16>
    %17 = vector.shape_cast %16 : vector<1x1x2x256xbf16> to vector<2x256xbf16>
    %18 = arith.index_cast %arg2 : i32 to index
    %c2_17 = arith.constant 2 : index
    %c0_18 = arith.constant 0 : index
    %c0_19 = arith.constant 0 : index
    %19 = vector.load %arg4[%18, %c2_17, %c0_18, %c0_19] : memref<3x3x256x256xbf16, #tpu.memory_space<vmem>>, vector<1x1x256x256xbf16>
    %20 = vector.shape_cast %19 : vector<1x1x256x256xbf16> to vector<256x256xbf16>
    %cst_20 = arith.constant dense<0.000000e+00> : vector<2x256xf32>
    %21 = tpu.matmul %17, %20, %cst_20 {dimension_numbers = #tpu.dot_dimension_numbers<[1], [0], [0], [1], [0, 0, 1, 1], [], []>} : vector<2x256xbf16>, vector<256x256xbf16>, vector<2x256xf32> -> vector<2x256xf32>
    %22 = arith.addf %15, %21 : vector<2x256xf32>
    %c0_21 = arith.constant 0 : index
    %c0_22 = arith.constant 0 : index
    %23 = vector.load %arg7[%c0_21, %c0_22] : memref<2x256xf32, #tpu.memory_space<vmem>>, vector<2x256xf32>
    %24 = arith.addf %23, %22 : vector<2x256xf32>
    %c0_23 = arith.constant 0 : index
    %c0_24 = arith.constant 0 : index
    %25 = vector.load %arg7[%c0_23, %c0_24] : memref<2x256xf32, #tpu.memory_space<vmem>>, vector<2x256xf32>
    tpu.vector_store %arg7[%c0_23, %c0_24], %24 {strides = array<i32>} : memref<2x256xf32, #tpu.memory_space<vmem>>, vector<2x256xf32>,
    %c2_i32 = arith.constant 2 : i32
    %26 = arith.cmpi eq, %arg2, %c2_i32 : i32
    %27 = arith.extui %26 : i1 to i32
    %c0_i32_25 = arith.constant 0 : i32
    %28 = arith.cmpi ne, %27, %c0_i32_25 : i32
    scf.if %28 {
      %c0_26 = arith.constant 0 : index
      %c0_27 = arith.constant 0 : index
      %29 = vector.load %arg7[%c0_26, %c0_27] : memref<2x256xf32, #tpu.memory_space<vmem>>, vector<2x256xf32>
      %c0_28 = arith.constant 0 : index
      %c0_29 = arith.constant 0 : index
      %30 = vector.load %arg5[%c0_28, %c0_29] : memref<1x256xf32, #tpu.memory_space<vmem>>, vector<1x256xf32>
      %31 = vector.broadcast %30 : vector<1x256xf32> to vector<2x256xf32>
      %32 = arith.addf %29, %31 : vector<2x256xf32>
      %cst_30 = arith.constant 0.000000e+00 : f32
      %33 = vector.broadcast %cst_30 : f32 to vector<2x256xf32>
      %34 = arith.maximumf %32, %33 : vector<2x256xf32>
      %35 = arith.truncf %34 : vector<2x256xf32> to vector<2x256xbf16>
      %c0_31 = arith.constant 0 : index
      %c0_32 = arith.constant 0 : index
      %c0_33 = arith.constant 0 : index
      %c0_34 = arith.constant 0 : index
      %36 = vector.load %arg6[%c0_31, %c0_32, %c0_33, %c0_34] : memref<1x1x2x256xbf16, #tpu.memory_space<vmem>>, vector<1x1x2x256xbf16>
      %37 = vector.shape_cast %36 : vector<1x1x2x256xbf16> to vector<2x256xbf16>
      %38 = vector.shape_cast %35 : vector<2x256xbf16> to vector<1x1x2x256xbf16>
      tpu.vector_store %arg6[%c0_31, %c0_32, %c0_33, %c0_34], %38 {strides = array<i32>} : memref<1x1x2x256xbf16, #tpu.memory_space<vmem>>, vector<1x1x2x256xbf16>,
    } else {
    }
    return
  }
  func.func @transform_0(%arg0: i32, %arg1: i32, %arg2: i32) -> (i32, i32, i32, i32) {
    %0 = arith.addi %arg1, %arg2 : i32
    %c0_i32 = arith.constant 0 : i32
    %c0_i32_0 = arith.constant 0 : i32
    %c0_i32_1 = arith.constant 0 : i32
    return %arg0, %0, %c0_i32, %c0_i32_0 : i32, i32, i32, i32
  }
  func.func @transform_1(%arg0: i32, %arg1: i32, %arg2: i32) -> (i32, i32, i32, i32) {
    %c0_i32 = arith.constant 0 : i32
    %c0_i32_0 = arith.constant 0 : i32
    %c0_i32_1 = arith.constant 0 : i32
    %c0_i32_2 = arith.constant 0 : i32
    %c0_i32_3 = arith.constant 0 : i32
    return %c0_i32, %c0_i32_0, %c0_i32_1, %c0_i32_2 : i32, i32, i32, i32
  }
  func.func @transform_2(%arg0: i32, %arg1: i32, %arg2: i32) -> (i32, i32) {
    %c0_i32 = arith.constant 0 : i32
    %c0_i32_0 = arith.constant 0 : i32
    %c0_i32_1 = arith.constant 0 : i32
    return %c0_i32, %c0_i32_0 : i32, i32
  }
  func.func @transform_3(%arg0: i32, %arg1: i32, %arg2: i32) -> (i32, i32, i32, i32) {
    %c0_i32 = arith.constant 0 : i32
    %c0_i32_0 = arith.constant 0 : i32
    %c0_i32_1 = arith.constant 0 : i32
    return %arg0, %arg1, %c0_i32, %c0_i32_0 : i32, i32, i32, i32
  }
}

</mosaic_0001>

<bundles_post_ra>
// kernel: rpn_head_forward.11
= control target key start
LH: loop header
LB: loop body
LE: loop exit
PB: predicated region body
PF: predicated region fallthrough
CT: control target
= control target key end

     0   :  { %s1070_s12 = smov 0   ;;  %s1072_s13 = smov 0   ;;  %s1211_s0 = inlined_call_operand.vmem [shape: bf16[2,36,36,8], index: 0, kind: input, shape index: {}]   ;;  %s1212_s1 = inlined_call_operand.vmem [shape: bf16[5,5,8,16], index: 1, kind: input, shape index: {}]   ;;  %s1213_s2 = inlined_call_operand.vmem [shape: f32[1,16], index: 2, kind: input, shape index: {}]   ;;  %s1214_s3 = inlined_call_operand.vmem [shape: bf16[2,32,32,16], index: 3, kind: output, shape index: {}]  }
   0x1   :  { %s1074_s14 = smov 0   ;;  %s1076_s15 = smov 0  }
   0x2   :  { %s1078_s16 = smov 0   ;;  %s1080_s17 = smov 0  }
   0x3   :  { %s1082_s18 = smov 0  }
   0x4 LB: > { %s25_s19 = sadd.s32 1, %s1035_s15  ;;  %s28_s20 = sadd.s32 1, %s1039_s16  ;;  %s1047_s18 = sphi %s1082_s18, %s13_s18   ;;  %s1043_s17 = sphi %s1080_s17, %s1220_s17   ;;  %s1039_s16 = sphi %s1078_s16, %s1219_s16   ;;  %s1035_s15 = sphi %s1076_s15, %s1218_s15   ;;  %s1031_s14 = sphi %s1074_s14, %s1217_s14   ;;  %s1027_s13 = sphi %s1072_s13, %s1216_s13   ;;  %s1023_s12 = sphi %s1070_s12, %s1215_s12  }
   0x5   : > { %p26_p0 = scmp.ge.s32.totalorder %s25_s19, 5  ;;  %p818_p1 = scmp.ge.s32.totalorder %s1047_s18, 1 }
   0x6   : > { %p168_p2 = scmp.lt.s32.totalorder %s1047_s18, 321  ;;  %s32_s21 = sadd.s32 1, %s1043_s17 }
   0x7   : > { %s1222_s19 = smov (%p26_p0, %s25_s19), 0  ;;  %s1224_s20 = smov (!%p26_p0, %s28_s20), %s1039_s16 }
   0x8   : > { %p169_p3 = pnand %p818_p1, %p168_p2  ;;  %p30_p4 = scmp.ge.s32.totalorder %s1224_s20, 32 }
   0x9   : > { %s201_s22 = sadd.s32 (!%p169_p3), %s1023_s12, %s1027_s13  ;;  %p202_p6 = scmp.lt.s32.totalorder (!%p169_p3), %s1031_s14, 1 }
   0xa   : > { %s1226_s20 = smov (%p30_p4, %s1224_s20), 0  ;;  %s1228_s21 = smov (!%p30_p4, %s32_s21), %s1043_s17 }
   0xb   : > { %p34_p5 = scmp.ge.s32.totalorder %s1228_s21, 2  ;;  %172 = sbr.rel (%p169_p3) target bundleno = 294 (0x126), region = 32 }
   0xc   : > { %p204_p7 = scmp.lt.s32.totalorder (!%p169_p3), %s201_s22, 35  ;;  %p214_p8 = scmp.lt.s32.totalorder (!%p169_p3), %s1027_s13, 31 }
   0xd   : > { %s1230_s21 = smov (%p34_p5, %s1228_s21), 0  ;;  %p823_p9 = scmp.ne.s32.totalorder (!%p169_p3), %s1023_s12, 0 }
  0x12   : > { %s1232_s14 = smov (!%p202_p6, %s1031_s14), 1  ;;  %s1234_s22 = smov (!%p204_p7, %s201_s22), 35 }
  0x13   : > { %s929_s23 = smul.u32 180, %s1232_s14  ;;  %s821_s25 = sshll.u32 %s1232_s14, 7  ;;  %vm226_vm0 = vcmask (!%p823_p9), 130048   ;;  %v1049_v0 = vmov (!%p823_p9), 0.0  }
  0x14   : > { %s928_s24 = smul.u32 5, %s1234_s22  ;;  %s1236_s13 = smov (!%p214_p8, %s1027_s13), 31  ;;  %227 = vst.msk [vmem:[#allocation2] sm:$0xff] (!%p823_p9), %vm226_vm0, %v1049_v0  ;;  %228 = vst.msk [vmem:[#allocation2 + $0x8] sm:$0xff] (!%p823_p9), %vm226_vm0, %v1049_v0 }
  0x15   : > { %s820_s28 = sshll.u32 %s1236_s13, 2  ;;  %225 = sbr.rel (%p823_p9) target bundleno = 28 (0x1c), region = 36  ;;  %229 = vst.msk [vmem:[#allocation2 + $0x10] sm:$0xff] (!%p823_p9), %vm226_vm0, %v1049_v0  ;;  %230 = vst.msk [vmem:[#allocation2 + $0x18] sm:$0xff] (!%p823_p9), %vm226_vm0, %v1049_v0 }
  0x16   : > { %s208_s26 = sadd.s32 %s929_s23, %s928_s24  ;;  %s218_s5 = sadd.s32 %s821_s25, %s820_s28 }
  0x17   : > { %s819_s27 = sshll.u32 %s208_s26, 2  ;;  %s822_s6 = sshll.u32 %s218_s5, 2 }
  0x18   : > { %s1123_s4 = scalar_lea.vmem %s1211_s0, %s819_s27  ;;  %s1128_s9 = scalar_lea.vmem %s1214_s3, %s822_s6 }
  0x1c PF: > { %s857_s10 = smul.u32 20, %s1023_s12  ;;  %vm285_vm1 = vcmask 1043456   ;;  %v232_v1 = vld [vmem:[%s1123_s4 + $0x4] sm:$0xf]  ;;  %v1134_v2 = vld [vmem:[%s1123_s4 + $0x8] sm:$0xff]   ;;  %vm278_vm2 = vcmask 64512  }
  0x1d   : > { %v394_v3 = vld [vmem:[%s1123_s4] sm:$0xe]  ;;  %vm402_vm3 = vcmask 1046528   ;;  %v989_v5 = vld [vmem:[%s1123_s4 + $0x10] ss:$0 sps:$4 sm:$0x11]  }
  0x1e   : > { %s1140_s14 = scalar_lea.vmem %s1212_s1, %s857_s10  ;;  %v836_v4 = vcombine.low %v394_v3, %v232_v1  ;;  %v404_v8 = vrot.slane %v1134_v2, 1  ;;  %v266_v9 = vshll.u32 %v1134_v2, 16  ;;  %v406_v13 = vrot.slane %v989_v5, 1  ;;  %v231_v16 = vld [vmem:[%s1123_s4] sm:$0xf]  ;;  %v640_v63 = vld [vmem:[#allocation2 + $0x10] sm:$0xff] }
  0x1f   : > { %v835_v6 = vld [vmem:[%s1140_s14 + $0x8] sm:$0xf]  ;;  %v826_v7 = vld [vmem:[%s1140_s14 + $0x4] sm:$0xf]  ;;  %v840_v14 = vld [vmem:[%s1140_s14 + $0xc] sm:$0xf]  ;;  %v827_v20 = vcombine.low %v231_v16, %v232_v1 }
  0x20   : > { %925 = vmatprep.subr.msk.bf16.mxu0 %vm285_vm1, %v835_v6  ;;  %v415_v10 = vsel %vm285_vm1, %v835_v6, 0  ;;  %923 = vmatprep.subr.msk.bf16.mxu1 %vm285_vm1, %v826_v7  ;;  %v403_v11 = vrot.slane %v836_v4, 1  ;;  %v287_v12 = vsel %vm285_vm1, %v826_v7, 0  ;;  %v507_v15 = vsel %vm285_vm1, %v840_v14, 0  ;;  %v238_v22 = vld [vmem:[%s1140_s14] sm:$0xf] }
  0x21   : > { %890 = vmatpush3.bf16.msra.mxu0 %v415_v10  ;;  %878 = vmatpush3.bf16.msra.mxu1 %v287_v12  ;;  %v268_v17 = vrot.slane %v266_v9, 1  ;;  %v407_v19 = vsel %vm402_vm3, %v404_v8, %v406_v13  ;;  %v270_v21 = vshrl.u32 %v1134_v2, 16  ;;  %vm257_vm4 = vsmask.f32 7424  ;;  %v845_v34 = vld [vmem:[%s1140_s14 + $0x10] sm:$0xf] }
  0x22   : > { %v405_v18 = vsel %vm402_vm3, %v403_v11, %v404_v8  ;;  %926 = vmatprep.subr.msk.bf16.mxu0 %vm285_vm1, %v840_v14  ;;  %v488_v23 = vrot.slane %v266_v9, 2  ;;  %v274_v24 = vshll.u32 %v989_v5, 16  ;;  %924 = vmatprep.subr.msk.bf16.mxu1 %vm285_vm1, %v238_v22  ;;  %v480_v25 = vshrl.u32 %v836_v4, 16  ;;  %v991_v29 = vld [vmem:[%s1123_s4 + $0x10] ss:$0 sps:$4 sm:$0x33]  }
  0x23   : > { %891 = vmatprep.mubr.msk.bf16.mxu0 %vm278_vm2, %v405_v18  ;;  %v259_v26 = vshrl.u32 %v827_v20, 16  ;;  %v261_v27 = vshll.u32 %v827_v20, 16  ;;  %v483_v28 = vshll.u32 %v836_v4, 16  ;;  %v272_v30 = vor.u32 %v270_v21, %v268_v17  ;;  %v562_v39 = vld [vmem:[%s1123_s4] sm:$0xc]  ;;  %v641_v6 = vld [vmem:[#allocation2 + $0x18] sm:$0xff] }
  0x24   : > { %892 = vmatmul.mubr.msk.bf16.vlgmr.msra.gmra.mrb[0].mxu0 %vm278_vm2, %v407_v19  ;;  %v276_v31 = vrot.slane %v274_v24, 1  ;;  %v482_v32 = vrot.slane %v480_v25, 1  ;;  %v487_v33 = vrot.slane %v270_v21, 1  ;;  %v492_v37 = vshrl.u32 %v991_v29, 16  ;;  %v638_v3 = vld [vmem:[#allocation2] sm:$0xff]  ;;  %p849_p10 = scmp.ne.s32.totalorder %s1023_s12, 4 }
  0x25   : > { %896 = vmatpush3.bf16.msra.mxu0 %v507_v15  ;;  %v263_v35 = vrot.slane %v261_v27, 1  ;;  %v485_v36 = vrot.slane %v483_v28, 2  ;;  %v495_v38 = vshll.u32 %v991_v29, 16  ;;  %vm478_vm5 = vsmask.f32 6400 }
  0x26   : > { %927 = vmatprep.subr.msk.bf16.mxu0 %vm285_vm1, %v845_v34  ;;  %v489_v40 = vor.u32 %v488_v23, %v487_v33  ;;  %v846_v41 = vcombine.low %v562_v39, %v232_v1  ;;  %v494_v44 = vrot.slane %v492_v37, 1  ;;  %v277_v46 = vsel %vm257_vm4, %v272_v30, %v276_v31  ;;  %v850_v15 = vld [vmem:[%s1213_s2] ss:$0 sm:$0xff] (!%p849_p10) }
  0x27   : > { %v264_v42 = vor.u32 %v263_v35, %v259_v26  ;;  %v486_v43 = vor.u32 %v485_v36, %v482_v32  ;;  %v497_v45 = vrot.slane %v495_v38, 2  ;;  %v343_v47 = vsel %vm285_vm1, %v238_v22, 0 }
  0x28   : > { %v571_v48 = vrot.slane %v846_v41, 2  ;;  %v572_v52 = vrot.slane %v1134_v2, 2  ;;  %vm570_vm6 = vcmask 1045504   ;;  %v583_v54 = vsel %vm285_vm1, %v845_v34, 0 }
  0x29   : > { %v269_v49 = vsel %vm257_vm4, %v264_v42, %v268_v17  ;;  %v490_v50 = vsel %vm478_vm5, %v486_v43, %v489_v40  ;;  %v498_v51 = vor.u32 %v497_v45, %v494_v44  ;;  %v574_v56 = vrot.slane %v991_v29, 2 }
  0x2a   : > { %879 = vmatprep.mubr.msk.bf16.mxu1 %vm278_vm2, %v269_v49  ;;  %897 = vmatprep.mubr.msk.bf16.mxu0 %vm278_vm2, %v490_v50  ;;  %v573_v55 = vsel %vm570_vm6, %v571_v48, %v572_v52  ;;  %vm646_vm7 = vcmask 130048   ;;  %vm690_vm8 = vcmask (!%p849_p10), 125952  }
  0x2b   : > { %880 = vmatmul.mubr.msk.bf16.vlgmr.msra.gmra.mrb[0].mxu1 %vm278_vm2, %v277_v46  ;;  %v499_v53 = vsel %vm478_vm5, %v489_v40, %v498_v51  ;;  %v575_v57 = vsel %vm570_vm6, %v572_v52, %v574_v56 }
  0x2c   : > { %884 = vmatpush3.bf16.msra.mxu1 %v343_v47  ;;  %885 = vmatprep.mubr.msk.bf16.mxu1 %vm278_vm2, %v827_v20 }
  0x30   : > { %898 = vmatmul.mubr.msk.bf16.vlgmr.msra.gmra.mrb[0].mxu0 %vm278_vm2, %v499_v53 }
  0x31   : > { %902 = vmatpush3.bf16.msra.mxu0 %v583_v54  ;;  %903 = vmatprep.mubr.msk.bf16.mxu0 %vm278_vm2, %v573_v55 }
  0x37   : > { %886 = vmatmul.mubr.msk.bf16.vlgmr.msra.gmra.mrb[0].mxu1 %vm278_vm2, %v1134_v2  ;;  %v639_v2 = vld [vmem:[#allocation2 + $0x8] sm:$0xff] }
  0x3c   : > { %904 = vmatmul.mubr.msk.bf16.vlgmr.msra.gmra.mrb[0].mxu0 %vm278_vm2, %v575_v57 }
 0x10a   : > { %v887_v58 = vpop.f32.mrb[0].mxu1 }
 0x10b   : > { %v379_v59 = vpop.f32.mrb[1].mxu1 }
 0x10c   : > { %v888_v60 = vpop.f32.mrb[2].mxu1 }
 0x10d   : > { %v382_v61 = vpop.f32.mrb[3].mxu1 }
 0x10f   : > { %v905_v62 = vpop.f32.mrb[0].mxu0 }
 0x110   : > { %v907_v0 = vadd.f32 %v905_v62, %v887_v58  ;;  %v619_v1 = vpop.f32.mrb[1].mxu0 }
 0x111   : > { %v908_v4 = vadd.f32 %v619_v1, %v379_v59  ;;  %v906_v5 = vpop.f32.mrb[2].mxu0  ;;  %654 = sbr.rel (%p849_p10) target bundleno = 294 (0x126), region = 40 }
 0x112   : > { %v644_v7 = vadd.f32 %v907_v0, %v640_v63  ;;  %v909_v8 = vadd.f32 %v906_v5, %v888_v60  ;;  %v622_v9 = vpop.f32.mrb[3].mxu0 }
 0x113   : > { %v642_v10 = vadd.f32 %v908_v4, %v638_v3  ;;  %v910_v11 = vadd.f32 %v622_v9, %v382_v61 }
 0x114   : > { %649 = vst.msk [vmem:[#allocation2 + $0x10] sm:$0xff] %vm646_vm7, %v644_v7  ;;  %v645_v12 = vadd.f32 %v909_v8, %v641_v6 }
 0x115   : > { %647 = vst.msk [vmem:[#allocation2] sm:$0xff] %vm646_vm7, %v642_v10  ;;  %v643_v13 = vadd.f32 %v910_v11, %v639_v2 }
 0x116   : > { %650 = vst.msk [vmem:[#allocation2 + $0x18] sm:$0xff] %vm646_vm7, %v645_v12 }
 0x117   : > { %648 = vst.msk [vmem:[#allocation2 + $0x8] sm:$0xff] %vm646_vm7, %v643_v13 }
 0x11b   : > { %v657_v19 = vld [vmem:[#allocation2 + $0x10] sm:$0xff] }
 0x11c   : > { %v655_v14 = vld [vmem:[#allocation2] sm:$0xff]  ;;  %v668_v21 = vadd.f32 %v850_v15, %v657_v19 }
 0x11d   : > { %v666_v17 = vadd.f32 %v850_v15, %v655_v14  ;;  %v658_v20 = vld [vmem:[#allocation2 + $0x18] sm:$0xff] }
 0x11e   : > { %v656_v16 = vld [vmem:[#allocation2 + $0x8] sm:$0xff]  ;;  %v669_v22 = vadd.f32 %v850_v15, %v658_v20  ;;  %v672_v25 = vmax.f32 %v668_v21, 0.0 }
 0x11f   : > { %v667_v18 = vadd.f32 %v850_v15, %v656_v16  ;;  %v670_v23 = vmax.f32 %v666_v17, 0.0 }
 0x120   : > { %v673_v26 = vmax.f32 %v669_v22, 0.0  ;;  %v860_v29 = vpack.c.bf16 %v672_v25, %v672_v25 }
 0x121   : > { %v671_v24 = vmax.f32 %v667_v18, 0.0  ;;  %v858_v27 = vpack.c.bf16 %v670_v23, %v670_v23 }
 0x122   : > { %v861_v30 = vpack.c.bf16 %v673_v26, %v673_v26  ;;  %693 = vst.msk [vmem:[%s1128_s9 + $0x8] sm:$0xf] %vm690_vm8, %v860_v29 }
 0x123   : > { %v859_v28 = vpack.c.bf16 %v671_v24, %v671_v24  ;;  %691 = vst.msk [vmem:[%s1128_s9] sm:$0xf] %vm690_vm8, %v858_v27 }
 0x124   : > { %694 = vst.msk [vmem:[%s1128_s9 + $0xc] sm:$0xf] %vm690_vm8, %v861_v30 }
 0x125   : > { %692 = vst.msk [vmem:[%s1128_s9 + $0x4] sm:$0xf] %vm690_vm8, %v859_v28 }
 0x126 PF: > { %s13_s18 = sadd.s32 1, %s1047_s18   ;;  %s1215_s12 = smov %s1035_s15 }
 0x127   : > { %p10_p11 = scmp.ge.s32.totalorder %s13_s18, 322   ;;  %s1216_s13 = smov %s1039_s16 }
 0x128   : > { %s1217_s14 = smov %s1043_s17  ;;  %s1218_s15 = smov %s1222_s19 }
 0x129   : > { %s1219_s16 = smov %s1226_s20  ;;  %s1220_s17 = smov %s1230_s21 }
 0x12a   :  { %12 = sbr.rel (!%p10_p11) target bundleno = 4 (0x4), region = 75 }

// kernel: rpn_head_forward.12
= control target key start
LH: loop header
LB: loop body
LE: loop exit
PB: predicated region body
PF: predicated region fallthrough
CT: control target
= control target key end

     0   :  { %s381_s6 = smov 0   ;;  %s383_s7 = smov 0   ;;  %s437_s0 = inlined_call_operand.vmem [shape: bf16[2,32,16,32], index: 0, kind: input, shape index: {}]   ;;  %s438_s1 = inlined_call_operand.vmem [shape: bf16[2,16,16,16], index: 1, kind: output, shape index: {}]  }
   0x1   :  { %s385_s8 = smov 0   ;;  %s387_s9 = smov 0  }
   0x2   :  { %s389_s10 = smov 0  }
   0x3 LB: > { %s20_s11 = sadd.s32 1, %s360_s8  ;;  %s23_s12 = sadd.s32 1, %s364_s9  ;;  %s368_s10 = sphi %s389_s10, %s11_s10   ;;  %s364_s9 = sphi %s387_s9, %s442_s9   ;;  %s360_s8 = sphi %s385_s8, %s441_s8   ;;  %s356_s7 = sphi %s383_s7, %s440_s7   ;;  %s352_s6 = sphi %s381_s6, %s439_s6  }
   0x4   : > { %p21_p0 = scmp.ge.s32.totalorder %s20_s11, 16  ;;  %p277_p1 = scmp.ge.s32.totalorder %s368_s10, 1 }
   0x5   : > { %p109_p2 = scmp.lt.s32.totalorder %s368_s10, 33 }
   0x6   : > { %s444_s11 = smov (%p21_p0, %s20_s11), 0  ;;  %s446_s12 = smov (!%p21_p0, %s23_s12), %s364_s9 }
   0x7   : > { %p110_p3 = pnand %p277_p1, %p109_p2  ;;  %p25_p4 = scmp.ge.s32.totalorder %s446_s12, 2 }
   0x8   : > { %s278_s13 = sshll.u32 (!%p110_p3), %s352_s6, 1  ;;  %p139_p5 = scmp.lt.s32.totalorder (!%p110_p3), %s356_s7, 1  ;;  %vm175_vm0 = vcmask (!%p110_p3), 125952  }
   0x9   : > { %s448_s12 = smov (%p25_p4, %s446_s12), 0  ;;  %113 = sbr.rel (%p110_p3) target bundleno = 146 (0x92), region = 24 }
   0xa   : > { %p141_p6 = scmp.lt.s32.totalorder (!%p110_p3), %s278_s13, 31  ;;  %s370_s21 = smov (!%p110_p3), 112  }
   0xb   : > { %p151_p7 = scmp.lt.s32.totalorder (!%p110_p3), %s352_s6, 15 }
  0x10   : > { %s450_s7 = smov (!%p139_p5, %s356_s7), 1  ;;  %s452_s13 = smov (!%p141_p6, %s278_s13), 31 }
  0x11   : > { %s280_s14 = sshll.u32 %s450_s7, 6  ;;  %s279_s15 = sshll.u32 %s452_s13, 1 }
  0x12   : > { %s145_s16 = sadd.s32 %s280_s14, %s279_s15  ;;  %s454_s6 = smov (!%p151_p7, %s352_s6), 15 }
  0x13   : > { %s281_s17 = sshll.u32 %s145_s16, 2  ;;  %s282_s22 = sshll.u32 %s454_s6, 1 }
  0x14   : > { %s147_s20 = scalar_lea.vmem %s437_s0, %s281_s17  ;;  %s283_s23 = sshll.u32 %s450_s7, 5 }
  0x15   : > { %v158_v0 = vld [vmem:[%s147_s20] sm:$0xf]  ;;  %v285_v1 = vld [vmem:[%s147_s20 + $0x8] sm:$0xf]  ;;  %v159_v2 = vld [vmem:[%s147_s20 + $0x4] sm:$0xf]  ;;  %s155_s24 = sadd.s32 %s283_s23, %s282_s22 }
  0x16   : > { %v163_v3 = vmax.bf16 %v285_v1, %v158_v0  ;;  %v286_v4 = vld [vmem:[%s147_s20 + $0xc] sm:$0xf]  ;;  %s284_s25 = sshll.u32 %s155_s24, 2 }
  0x17   : > { %v164_v5 = vmax.bf16 %v286_v4, %v159_v2  ;;  %s157_s28 = scalar_lea.vmem %s438_s1, %s284_s25 }
  0x18   : > { %167 = vrot.lane.b32.xlu0 %v163_v3, %s370_s21 }
  0x1c   : > { %169 = vrot.lane.b32.xlu0 %v164_v5, %s370_s21 }
  0x8a   : > { %v168_v6 = vpop.permute.xlu0 %167 }
  0x8b   : > { %v173_v7 = vmax.bf16 %v168_v6, %v163_v3 }
  0x8d   : > { %176 = vst.msk [vmem:[%s157_s28] sm:$0xf] %vm175_vm0, %v173_v7 }
  0x8e   : > { %v170_v8 = vpop.permute.xlu0 %169 }
  0x8f   : > { %v174_v9 = vmax.bf16 %v170_v8, %v164_v5 }
  0x91   : > { %177 = vst.msk [vmem:[%s157_s28 + $0x4] sm:$0xf] %vm175_vm0, %v174_v9 }
  0x92 PF: > { %s11_s10 = sadd.s32 1, %s368_s10   ;;  %s439_s6 = smov %s360_s8 }
  0x93   : > { %p8_p8 = scmp.ge.s32.totalorder %s11_s10, 34   ;;  %s440_s7 = smov %s364_s9 }
  0x94   : > { %s441_s8 = smov %s444_s11  ;;  %s442_s9 = smov %s448_s12 }
  0x95   :  { %10 = sbr.rel (!%p8_p8) target bundleno = 3 (0x3), region = 55 }

// kernel: rpn_head_forward.13
= control target key start
LH: loop header
LB: loop body
LE: loop exit
PB: predicated region body
PF: predicated region fallthrough
CT: control target
= control target key end

     0   :  { %s963_s12 = smov 0   ;;  %s965_s13 = smov 0   ;;  %s1078_s0 = inlined_call_operand.vmem [shape: bf16[2,20,20,16], index: 0, kind: input, shape index: {}]   ;;  %s1079_s1 = inlined_call_operand.vmem [shape: bf16[5,5,16,32], index: 1, kind: input, shape index: {}]   ;;  %s1080_s2 = inlined_call_operand.vmem [shape: f32[1,32], index: 2, kind: input, shape index: {}]   ;;  %s1081_s3 = inlined_call_operand.vmem [shape: bf16[2,16,16,32], index: 3, kind: output, shape index: {}]  }
   0x1   :  { %s967_s14 = smov 0   ;;  %s969_s15 = smov 0  }
   0x2   :  { %s971_s16 = smov 0   ;;  %s973_s17 = smov 0  }
   0x3   :  { %s975_s18 = smov 0  }
   0x4 LB: > { %s25_s19 = sadd.s32 1, %s926_s15  ;;  %s28_s20 = sadd.s32 1, %s930_s16  ;;  %s938_s18 = sphi %s975_s18, %s13_s18   ;;  %s934_s17 = sphi %s973_s17, %s1087_s17   ;;  %s930_s16 = sphi %s971_s16, %s1086_s16   ;;  %s926_s15 = sphi %s969_s15, %s1085_s15   ;;  %s922_s14 = sphi %s967_s14, %s1084_s14   ;;  %s918_s13 = sphi %s965_s13, %s1083_s13   ;;  %s914_s12 = sphi %s963_s12, %s1082_s12  }
   0x5   : > { %p26_p0 = scmp.ge.s32.totalorder %s25_s19, 5  ;;  %p730_p1 = scmp.ge.s32.totalorder %s938_s18, 1 }
   0x6   : > { %p168_p2 = scmp.lt.s32.totalorder %s938_s18, 161  ;;  %s32_s21 = sadd.s32 1, %s934_s17 }
   0x7   : > { %s1089_s19 = smov (%p26_p0, %s25_s19), 0  ;;  %s1091_s20 = smov (!%p26_p0, %s28_s20), %s930_s16 }
   0x8   : > { %p169_p3 = pnand %p730_p1, %p168_p2  ;;  %p30_p4 = scmp.ge.s32.totalorder %s1091_s20, 16 }
   0x9   : > { %s201_s22 = sadd.s32 (!%p169_p3), %s914_s12, %s918_s13  ;;  %p202_p6 = scmp.lt.s32.totalorder (!%p169_p3), %s922_s14, 1 }
   0xa   : > { %s1093_s20 = smov (%p30_p4, %s1091_s20), 0  ;;  %s1095_s21 = smov (!%p30_p4, %s32_s21), %s934_s17 }
   0xb   : > { %p34_p5 = scmp.ge.s32.totalorder %s1095_s21, 2  ;;  %172 = sbr.rel (%p169_p3) target bundleno = 287 (0x11f), region = 32 }
   0xc   : > { %p204_p7 = scmp.lt.s32.totalorder (!%p169_p3), %s201_s22, 19  ;;  %p214_p8 = scmp.lt.s32.totalorder (!%p169_p3), %s918_s13, 15 }
   0xd   : > { %s1097_s21 = smov (%p34_p5, %s1095_s21), 0  ;;  %p735_p9 = scmp.ne.s32.totalorder (!%p169_p3), %s914_s12, 0 }
  0x12   : > { %s1099_s14 = smov (!%p202_p6, %s922_s14), 1  ;;  %s1101_s22 = smov (!%p204_p7, %s201_s22), 19 }
  0x13   : > { %s814_s23 = smul.u32 60, %s1099_s14  ;;  %s733_s25 = sshll.u32 %s1099_s14, 5  ;;  %vm226_vm0 = vcmask (!%p735_p9), 261120   ;;  %v940_v0 = vmov (!%p735_p9), 0.0  }
  0x14   : > { %s813_s24 = smul.u32 3, %s1101_s22  ;;  %s1103_s13 = smov (!%p214_p8, %s918_s13), 15  ;;  %227 = vst.msk [vmem:[#allocation2] sm:$0xff] (!%p735_p9), %vm226_vm0, %v940_v0  ;;  %228 = vst.msk [vmem:[#allocation2 + $0x8] sm:$0xff] (!%p735_p9), %vm226_vm0, %v940_v0 }
  0x15   : > { %s732_s28 = sshll.u32 %s1103_s13, 1  ;;  %225 = sbr.rel (%p735_p9) target bundleno = 28 (0x1c), region = 36 }
  0x16   : > { %s208_s26 = sadd.s32 %s814_s23, %s813_s24  ;;  %s218_s5 = sadd.s32 %s733_s25, %s732_s28 }
  0x17   : > { %s731_s27 = sshll.u32 %s208_s26, 2  ;;  %s734_s6 = sshll.u32 %s218_s5, 2 }
  0x18   : > { %s1016_s4 = scalar_lea.vmem %s1078_s0, %s731_s27  ;;  %s1021_s9 = scalar_lea.vmem %s1081_s3, %s734_s6 }
  0x1c PF: > { %s770_s10 = smul.u32 40, %s914_s12  ;;  %v229_v1 = vld [vmem:[%s1016_s4] sm:$0xf]  ;;  %v941_v2 = vmov 0.0   ;;  %v230_v3 = vld [vmem:[%s1016_s4 + $0x4] sm:$0xf] }
  0x1d   : > { %783 = vmatprep.subr.bf16.mxu0 %v941_v2  ;;  %789 = vmatprep.subr.bf16.mxu1 %v941_v2  ;;  %vm942_vm1 = vmmov 0   ;;  %v740_v4 = vcombine.low %v229_v1, %v230_v3  ;;  %v877_v5 = vld [vmem:[%s1016_s4 + $0x8] ss:$0 sps:$4 sm:$0x11]   ;;  %v363_v6 = vld [vmem:[%s1016_s4] sm:$0xe] }
  0x1e   : > { %s1030_s14 = scalar_lea.vmem %s1079_s1, %s770_s10  ;;  %785 = vmatprep.mubr.msk.bf16.mxu0 %vm942_vm1, %v941_v2  ;;  %791 = vmatprep.mubr.msk.bf16.mxu1 %vm942_vm1, %v941_v2  ;;  %vm269_vm2 = vcmask 130048   ;;  %v749_v10 = vcombine.low %v363_v6, %v230_v3  ;;  %v259_v12 = vshll.u32 %v877_v5, 16  ;;  %vm250_vm3 = vsmask.f32 7424  ;;  %v507_v31 = vld [vmem:[%s1016_s4] sm:$0xc] }
  0x1f   : > { %v874_v7 = vld [vmem:[%s1030_s14 + $0x8] sm:$0xff]   ;;  %v875_v8 = vld [vmem:[%s1030_s14] sm:$0xff]   ;;  %v252_v9 = vshrl.u32 %v740_v4, 16  ;;  %v254_v11 = vshll.u32 %v740_v4, 16  ;;  %v879_v15 = vld [vmem:[%s1030_s14 + $0x18] sm:$0xff]   ;;  %v374_v27 = vrot.slane %v877_v5, 1  ;;  %v761_v36 = vcombine.low %v507_v31, %v230_v3 }
  0x20   : > { %784 = vmatpush3.bf16.msra.mxu0 %v874_v7  ;;  %790 = vmatpush3.bf16.msra.mxu1 %v875_v8  ;;  %v261_v14 = vrot.slane %v259_v12, 1  ;;  %v439_v16 = vshrl.u32 %v749_v10, 16  ;;  %v878_v18 = vld [vmem:[%s1030_s14 + $0x10] sm:$0xff]   ;;  %v882_v19 = vld [vmem:[%s1016_s4 + $0x8] ss:$0 sps:$4 sm:$0x33]  }
  0x21   : > { %795 = vmatprep.subr.bf16.mxu0 %v941_v2  ;;  %v256_v13 = vrot.slane %v254_v11, 1  ;;  %801 = vmatprep.subr.bf16.mxu1 %v941_v2  ;;  %v442_v20 = vshll.u32 %v749_v10, 16  ;;  %v447_v24 = vshrl.u32 %v882_v19, 16  ;;  %v450_v25 = vshll.u32 %v882_v19, 16  ;;  %v881_v34 = vld [vmem:[%s1030_s14 + $0x20] sm:$0xff]   ;;  %v573_v3 = vld [vmem:[#allocation2 + $0x8] sm:$0xff] }
  0x22   : > { %v441_v21 = vrot.slane %v439_v16, 1  ;;  %v373_v26 = vrot.slane %v749_v10, 1  ;;  %vm372_vm4 = vcmask 1046528   ;;  %vm437_vm5 = vsmask.f32 6400  ;;  %v572_v63 = vld [vmem:[#allocation2] sm:$0xff] }
  0x23   : > { %v257_v17 = vor.u32 %v256_v13, %v252_v9  ;;  %792 = vmatmul.mubr.msk.bf16.vlgmr.msra.gmra.mrb[0].mxu1 %vm269_vm2, %v740_v4  ;;  %v444_v23 = vrot.slane %v442_v20, 2  ;;  %v449_v29 = vrot.slane %v447_v24, 1  ;;  %v452_v30 = vrot.slane %v450_v25, 2  ;;  %p764_p10 = scmp.ne.s32.totalorder %s914_s12, 4 }
  0x24   : > { %802 = vmatpush3.bf16.msra.mxu1 %v879_v15  ;;  %803 = vmatprep.mubr.msk.bf16.mxu1 %vm942_vm1, %v941_v2  ;;  %v375_v33 = vsel %vm372_vm4, %v373_v26, %v374_v27  ;;  %v517_v37 = vrot.slane %v761_v36, 2  ;;  %v518_v38 = vrot.slane %v882_v19, 2  ;;  %vm516_vm6 = vcmask 1045504   ;;  %v765_v9 = vld [vmem:[%s1080_s2] ss:$0 sm:$0xff] (!%p764_p10) }
  0x25   : > { %v262_v22 = vsel %vm250_vm3, %v257_v17, %v261_v14  ;;  %v445_v28 = vor.u32 %v444_v23, %v441_v21  ;;  %v453_v32 = vor.u32 %v452_v30, %v449_v29  ;;  %vm576_vm7 = vcmask 261120  }
  0x26   : > { %786 = vmatmul.mubr.msk.bf16.vlgmr.msra.gmra.mrb[0].mxu0 %vm269_vm2, %v262_v22  ;;  %v519_v39 = vsel %vm516_vm6, %v517_v37, %v518_v38  ;;  %vm604_vm8 = vcmask (!%p764_p10), 257024  }
  0x27   : > { %796 = vmatpush3.bf16.msra.mxu0 %v878_v18  ;;  %797 = vmatprep.mubr.msk.bf16.mxu0 %vm942_vm1, %v941_v2  ;;  %v454_v35 = vsel %vm437_vm5, %v445_v28, %v453_v32 }
  0x28   : > { %807 = vmatprep.subr.bf16.mxu0 %v941_v2 }
  0x2b   : > { %804 = vmatmul.mubr.msk.bf16.vlgmr.msra.gmra.mrb[4].mxu1 %vm269_vm2, %v454_v35 }
  0x2e   : > { %798 = vmatmul.mubr.msk.bf16.vlgmr.msra.gmra.mrb[4].mxu0 %vm269_vm2, %v375_v33 }
  0x2f   : > { %808 = vmatpush3.bf16.msra.mxu0 %v881_v34  ;;  %809 = vmatprep.mubr.msk.bf16.mxu0 %vm942_vm1, %v941_v2 }
  0x36   : > { %810 = vmatmul.mubr.msk.bf16.vlgmr.msra.gmra.mrb[8].mxu0 %vm269_vm2, %v519_v39 }
  0xf6   : > { %v356_v40 = vpop.f32.mrb[0].mxu1 }
  0xf7   : > { %v793_v41 = vpop.f32.mrb[1].mxu1 }
  0xf8   : > { %v359_v42 = vpop.f32.mrb[2].mxu1 }
  0xf9   : > { %v307_v43 = vpop.f32.mrb[0].mxu0  ;;  %v794_v44 = vpop.f32.mrb[3].mxu1 }
  0xfa   : > { %v357_v45 = vadd.f32 %v356_v40, %v307_v43  ;;  %v787_v46 = vpop.f32.mrb[1].mxu0 }
  0xfb   : > { %v310_v47 = vpop.f32.mrb[2].mxu0 }
  0xfc   : > { %v360_v48 = vadd.f32 %v359_v42, %v310_v47  ;;  %v788_v49 = vpop.f32.mrb[3].mxu0 }
  0xfe   : > { %v498_v50 = vpop.f32.mrb[4].mxu1 }
  0xff   : > { %v805_v51 = vpop.f32.mrb[5].mxu1 }
 0x100   : > { %v501_v53 = vpop.f32.mrb[6].mxu1 }
 0x101   : > { %v419_v52 = vpop.f32.mrb[4].mxu0  ;;  %v806_v56 = vpop.f32.mrb[7].mxu1 }
 0x102   : > { %v426_v54 = vadd.f32 %v419_v52, %v357_v45  ;;  %v799_v55 = vpop.f32.mrb[5].mxu0 }
 0x103   : > { %v422_v57 = vpop.f32.mrb[6].mxu0 }
 0x104   : > { %v427_v58 = vadd.f32 %v422_v57, %v360_v48  ;;  %v505_v59 = vadd.f32 %v498_v50, %v426_v54  ;;  %v800_v60 = vpop.f32.mrb[7].mxu0 }
 0x106   : > { %v506_v61 = vadd.f32 %v501_v53, %v427_v58 }
 0x109   : > { %v563_v62 = vpop.f32.mrb[8].mxu0 }
 0x10a   : > { %v570_v0 = vadd.f32 %v563_v62, %v505_v59  ;;  %v811_v1 = vpop.f32.mrb[9].mxu0  ;;  %582 = sbr.rel (%p764_p10) target bundleno = 287 (0x11f), region = 40 }
 0x10b   : > { %v566_v2 = vpop.f32.mrb[10].mxu0 }
 0x10c   : > { %v574_v4 = vadd.f32 %v572_v63, %v570_v0  ;;  %v571_v5 = vadd.f32 %v566_v2, %v506_v61  ;;  %v812_v6 = vpop.f32.mrb[11].mxu0 }
 0x10e   : > { %577 = vst.msk [vmem:[#allocation2] sm:$0xff] %vm576_vm7, %v574_v4  ;;  %v575_v7 = vadd.f32 %v573_v3, %v571_v5 }
 0x110   : > { %578 = vst.msk [vmem:[#allocation2 + $0x8] sm:$0xff] %vm576_vm7, %v575_v7 }
 0x115   : > { %v583_v8 = vld [vmem:[#allocation2] sm:$0xff] }
 0x116   : > { %v592_v11 = vadd.f32 %v765_v9, %v583_v8 }
 0x117   : > { %v584_v10 = vld [vmem:[#allocation2 + $0x8] sm:$0xff] }
 0x118   : > { %v593_v12 = vadd.f32 %v765_v9, %v584_v10  ;;  %v594_v13 = vmax.f32 %v592_v11, 0.0 }
 0x11a   : > { %v595_v14 = vmax.f32 %v593_v12, 0.0  ;;  %v771_v15 = vpack.c.bf16 %v594_v13, %v594_v13 }
 0x11c   : > { %v772_v16 = vpack.c.bf16 %v595_v14, %v595_v14  ;;  %605 = vst.msk [vmem:[%s1021_s9] sm:$0xf] %vm604_vm8, %v771_v15 }
 0x11e   : > { %606 = vst.msk [vmem:[%s1021_s9 + $0x4] sm:$0xf] %vm604_vm8, %v772_v16 }
 0x11f PF: > { %s13_s18 = sadd.s32 1, %s938_s18   ;;  %s1082_s12 = smov %s926_s15 }
 0x120   : > { %p10_p11 = scmp.ge.s32.totalorder %s13_s18, 162   ;;  %s1083_s13 = smov %s930_s16 }
 0x121   : > { %s1084_s14 = smov %s934_s17  ;;  %s1085_s15 = smov %s1089_s19 }
 0x122   : > { %s1086_s16 = smov %s1093_s20  ;;  %s1087_s17 = smov %s1097_s21 }
 0x123   :  { %12 = sbr.rel (!%p10_p11) target bundleno = 4 (0x4), region = 75 }

// kernel: rpn_head_forward.14
= control target key start
LH: loop header
LB: loop body
LE: loop exit
PB: predicated region body
PF: predicated region fallthrough
CT: control target
= control target key end

     0   :  { %s355_s6 = smov 0   ;;  %s357_s7 = smov 0   ;;  %s411_s0 = inlined_call_operand.vmem [shape: bf16[2,16,8,64], index: 0, kind: input, shape index: {}]   ;;  %s412_s1 = inlined_call_operand.vmem [shape: bf16[2,8,8,32], index: 1, kind: output, shape index: {}]  }
   0x1   :  { %s359_s8 = smov 0   ;;  %s361_s9 = smov 0  }
   0x2   :  { %s363_s10 = smov 0  }
   0x3 LB: > { %s20_s11 = sadd.s32 1, %s334_s8  ;;  %s23_s12 = sadd.s32 1, %s338_s9  ;;  %s342_s10 = sphi %s363_s10, %s11_s10   ;;  %s338_s9 = sphi %s361_s9, %s416_s9   ;;  %s334_s8 = sphi %s359_s8, %s415_s8   ;;  %s330_s7 = sphi %s357_s7, %s414_s7   ;;  %s326_s6 = sphi %s355_s6, %s413_s6  }
   0x4   : > { %p21_p0 = scmp.ge.s32.totalorder %s20_s11, 8  ;;  %p254_p1 = scmp.ge.s32.totalorder %s342_s10, 1 }
   0x5   : > { %p108_p2 = scmp.lt.s32.totalorder %s342_s10, 17 }
   0x6   : > { %s418_s11 = smov (%p21_p0, %s20_s11), 0  ;;  %s420_s12 = smov (!%p21_p0, %s23_s12), %s338_s9 }
   0x7   : > { %p109_p3 = pnand %p254_p1, %p108_p2  ;;  %p25_p4 = scmp.ge.s32.totalorder %s420_s12, 2 }
   0x8   : > { %s255_s13 = sshll.u32 (!%p109_p3), %s326_s6, 1  ;;  %p136_p5 = scmp.lt.s32.totalorder (!%p109_p3), %s330_s7, 1  ;;  %vm162_vm0 = vcmask (!%p109_p3), 257024  }
   0x9   : > { %s422_s12 = smov (%p25_p4, %s420_s12), 0  ;;  %112 = sbr.rel (%p109_p3) target bundleno = 142 (0x8e), region = 24 }
   0xa   : > { %p138_p6 = scmp.lt.s32.totalorder (!%p109_p3), %s255_s13, 15  ;;  %s344_s20 = smov (!%p109_p3), 96  }
   0xb   : > { %p147_p7 = scmp.lt.s32.totalorder (!%p109_p3), %s326_s6, 7 }
  0x10   : > { %s424_s7 = smov (!%p136_p5, %s330_s7), 1  ;;  %s426_s13 = smov (!%p138_p6, %s255_s13), 15 }
  0x11   : > { %s256_s14 = sshll.u32 %s424_s7, 4  ;;  %s428_s6 = smov (!%p147_p7, %s326_s6), 7 }
  0x12   : > { %s141_s15 = sadd.s32 %s256_s14, %s426_s13  ;;  %s258_s21 = sshll.u32 %s424_s7, 3 }
  0x13   : > { %s257_s16 = sshll.u32 %s141_s15, 2  ;;  %s150_s22 = sadd.s32 %s258_s21, %s428_s6 }
  0x14   : > { %s143_s19 = scalar_lea.vmem %s411_s0, %s257_s16  ;;  %s259_s23 = sshll.u32 %s150_s22, 2 }
  0x15   : > { %v153_v0 = vld [vmem:[%s143_s19] sm:$0xf]  ;;  %v260_v1 = vld [vmem:[%s143_s19 + $0x4] sm:$0xf]  ;;  %s152_s26 = scalar_lea.vmem %s412_s1, %s259_s23 }
  0x16   : > { %v156_v2 = vmax.bf16 %v260_v1, %v153_v0 }
  0x18   : > { %158 = vrot.lane.b32.xlu0 %v156_v2, %s344_s20 }
  0x8a   : > { %v159_v3 = vpop.permute.xlu0 %158 }
  0x8b   : > { %v161_v4 = vmax.bf16 %v159_v3, %v156_v2 }
  0x8d   : > { %163 = vst.msk [vmem:[%s152_s26] sm:$0xf] %vm162_vm0, %v161_v4 }
  0x8e PF: > { %s11_s10 = sadd.s32 1, %s342_s10   ;;  %s413_s6 = smov %s334_s8 }
  0x8f   : > { %p8_p8 = scmp.ge.s32.totalorder %s11_s10, 18   ;;  %s414_s7 = smov %s338_s9 }
  0x90   : > { %s415_s8 = smov %s418_s11  ;;  %s416_s9 = smov %s422_s12 }
  0x91   :  { %10 = sbr.rel (!%p8_p8) target bundleno = 3 (0x3), region = 55 }

// kernel: rpn_head_forward.16
= control target key start
LH: loop header
LB: loop body
LE: loop exit
PB: predicated region body
PF: predicated region fallthrough
CT: control target
= control target key end

     0   :  { %s355_s6 = smov 0   ;;  %s357_s7 = smov 0   ;;  %s411_s0 = inlined_call_operand.vmem [shape: bf16[2,8,4,128], index: 0, kind: input, shape index: {}]   ;;  %s412_s1 = inlined_call_operand.vmem [shape: bf16[2,4,4,64], index: 1, kind: output, shape index: {}]  }
   0x1   :  { %s359_s8 = smov 0   ;;  %s361_s9 = smov 0  }
   0x2   :  { %s363_s10 = smov 0  }
   0x3 LB: > { %s20_s11 = sadd.s32 1, %s334_s8  ;;  %s23_s12 = sadd.s32 1, %s338_s9  ;;  %s342_s10 = sphi %s363_s10, %s11_s10   ;;  %s338_s9 = sphi %s361_s9, %s416_s9   ;;  %s334_s8 = sphi %s359_s8, %s415_s8   ;;  %s330_s7 = sphi %s357_s7, %s414_s7   ;;  %s326_s6 = sphi %s355_s6, %s413_s6  }
   0x4   : > { %p21_p0 = scmp.ge.s32.totalorder %s20_s11, 4  ;;  %p254_p1 = scmp.ge.s32.totalorder %s342_s10, 1 }
   0x5   : > { %p108_p2 = scmp.lt.s32.totalorder %s342_s10, 9 }
   0x6   : > { %s418_s11 = smov (%p21_p0, %s20_s11), 0  ;;  %s420_s12 = smov (!%p21_p0, %s23_s12), %s338_s9 }
   0x7   : > { %p109_p3 = pnand %p254_p1, %p108_p2  ;;  %p25_p4 = scmp.ge.s32.totalorder %s420_s12, 2 }
   0x8   : > { %s255_s13 = sshll.u32 (!%p109_p3), %s326_s6, 1  ;;  %p136_p5 = scmp.lt.s32.totalorder (!%p109_p3), %s330_s7, 1  ;;  %vm162_vm0 = vcmask (!%p109_p3), 517120  }
   0x9   : > { %s422_s12 = smov (%p25_p4, %s420_s12), 0  ;;  %112 = sbr.rel (%p109_p3) target bundleno = 142 (0x8e), region = 24 }
   0xa   : > { %p138_p6 = scmp.lt.s32.totalorder (!%p109_p3), %s255_s13, 7  ;;  %s344_s20 = smov (!%p109_p3), 64  }
   0xb   : > { %p147_p7 = scmp.lt.s32.totalorder (!%p109_p3), %s326_s6, 3 }
  0x10   : > { %s424_s7 = smov (!%p136_p5, %s330_s7), 1  ;;  %s426_s13 = smov (!%p138_p6, %s255_s13), 7 }
  0x11   : > { %s256_s14 = sshll.u32 %s424_s7, 3  ;;  %s428_s6 = smov (!%p147_p7, %s326_s6), 3 }
  0x12   : > { %s141_s15 = sadd.s32 %s256_s14, %s426_s13  ;;  %s258_s21 = sshll.u32 %s424_s7, 2 }
  0x13   : > { %s257_s16 = sshll.u32 %s141_s15, 1  ;;  %s150_s22 = sadd.s32 %s258_s21, %s428_s6 }
  0x14   : > { %s143_s19 = scalar_lea.vmem %s411_s0, %s257_s16  ;;  %s259_s23 = sshll.u32 %s150_s22, 1 }
  0x15   : > { %v153_v0 = vld [vmem:[%s143_s19] sm:$0x3]  ;;  %v260_v1 = vld [vmem:[%s143_s19 + $0x2] sm:$0x3]  ;;  %s152_s26 = scalar_lea.vmem %s412_s1, %s259_s23 }
  0x16   : > { %v156_v2 = vmax.bf16 %v260_v1, %v153_v0 }
  0x18   : > { %158 = vrot.lane.b32.xlu0 %v156_v2, %s344_s20 }
  0x8a   : > { %v159_v3 = vpop.permute.xlu0 %158 }
  0x8b   : > { %v161_v4 = vmax.bf16 %v159_v3, %v156_v2 }
  0x8d   : > { %163 = vst.msk [vmem:[%s152_s26] sm:$0x3] %vm162_vm0, %v161_v4 }
  0x8e PF: > { %s11_s10 = sadd.s32 1, %s342_s10   ;;  %s413_s6 = smov %s334_s8 }
  0x8f   : > { %p8_p8 = scmp.ge.s32.totalorder %s11_s10, 10   ;;  %s414_s7 = smov %s338_s9 }
  0x90   : > { %s415_s8 = smov %s418_s11  ;;  %s416_s9 = smov %s422_s12 }
  0x91   :  { %10 = sbr.rel (!%p8_p8) target bundleno = 3 (0x3), region = 55 }

// kernel: rpn_head_forward.15
= control target key start
LH: loop header
LB: loop body
LE: loop exit
PB: predicated region body
PF: predicated region fallthrough
CT: control target
= control target key end

     0   :  { %s973_s12 = smov 0   ;;  %s975_s13 = smov 0   ;;  %s1091_s0 = inlined_call_operand.vmem [shape: bf16[2,12,12,32], index: 0, kind: input, shape index: {}]   ;;  %s1092_s1 = inlined_call_operand.vmem [shape: bf16[5,5,32,64], index: 1, kind: input, shape index: {}]   ;;  %s1093_s2 = inlined_call_operand.vmem [shape: f32[1,64], index: 2, kind: input, shape index: {}]   ;;  %s1094_s3 = inlined_call_operand.vmem [shape: bf16[2,8,8,64], index: 3, kind: output, shape index: {}]  }
   0x1   :  { %s977_s14 = smov 0   ;;  %s979_s15 = smov 0  }
   0x2   :  { %s981_s16 = smov 0   ;;  %s983_s17 = smov 0  }
   0x3   :  { %s985_s18 = smov 0  }
   0x4 LB: > { %s25_s19 = sadd.s32 1, %s936_s15  ;;  %s28_s20 = sadd.s32 1, %s940_s16  ;;  %s948_s18 = sphi %s985_s18, %s13_s18   ;;  %s944_s17 = sphi %s983_s17, %s1100_s17   ;;  %s940_s16 = sphi %s981_s16, %s1099_s16   ;;  %s936_s15 = sphi %s979_s15, %s1098_s15   ;;  %s932_s14 = sphi %s977_s14, %s1097_s14   ;;  %s928_s13 = sphi %s975_s13, %s1096_s13   ;;  %s924_s12 = sphi %s973_s12, %s1095_s12  }
   0x5   : > { %p26_p0 = scmp.ge.s32.totalorder %s25_s19, 5  ;;  %p714_p1 = scmp.ge.s32.totalorder %s948_s18, 1 }
   0x6   : > { %p168_p2 = scmp.lt.s32.totalorder %s948_s18, 81  ;;  %s32_s21 = sadd.s32 1, %s944_s17 }
   0x7   : > { %s1102_s19 = smov (%p26_p0, %s25_s19), 0  ;;  %s1104_s20 = smov (!%p26_p0, %s28_s20), %s940_s16 }
   0x8   : > { %p169_p3 = pnand %p714_p1, %p168_p2  ;;  %p30_p4 = scmp.ge.s32.totalorder %s1104_s20, 8 }
   0x9   : > { %s200_s22 = sadd.s32 (!%p169_p3), %s924_s12, %s928_s13  ;;  %p201_p6 = scmp.lt.s32.totalorder (!%p169_p3), %s932_s14, 1 }
   0xa   : > { %s1106_s20 = smov (%p30_p4, %s1104_s20), 0  ;;  %s1108_s21 = smov (!%p30_p4, %s32_s21), %s944_s17 }
   0xb   : > { %p34_p5 = scmp.ge.s32.totalorder %s1108_s21, 2  ;;  %172 = sbr.rel (%p169_p3) target bundleno = 289 (0x121), region = 32 }
   0xc   : > { %p203_p7 = scmp.lt.s32.totalorder (!%p169_p3), %s200_s22, 11  ;;  %p213_p8 = scmp.lt.s32.totalorder (!%p169_p3), %s928_s13, 7 }
   0xd   : > { %s1110_s21 = smov (%p34_p5, %s1108_s21), 0  ;;  %p719_p9 = scmp.ne.s32.totalorder (!%p169_p3), %s924_s12, 0 }
  0x12   : > { %s1112_s14 = smov (!%p201_p6, %s932_s14), 1  ;;  %s1114_s22 = smov (!%p203_p7, %s200_s22), 11 }
  0x13   : > { %s820_s23 = smul.u32 24, %s1112_s14  ;;  %s715_s24 = sshll.u32 %s1114_s22, 1  ;;  %vm224_vm0 = vcmask (!%p719_p9), 523264   ;;  %v950_v0 = vmov (!%p719_p9), 0.0  }
  0x14   : > { %s717_s30 = sshll.u32 %s1112_s14, 3  ;;  %s1116_s13 = smov (!%p213_p8, %s928_s13), 7  ;;  %225 = vst.msk [vmem:[#allocation2] sm:$0xff] (!%p719_p9), %vm224_vm0, %v950_v0 }
  0x15   : > { %s207_s25 = sadd.s32 %s820_s23, %s715_s24  ;;  %s216_s4 = sadd.s32 %s717_s30, %s1116_s13 }
  0x16   : > { %s716_s26 = sshll.u32 %s207_s25, 2  ;;  %s718_s5 = sshll.u32 %s216_s4, 2 }
  0x17   : > { %s1025_s29 = scalar_lea.vmem %s1091_s0, %s716_s26  ;;  %s1031_s8 = scalar_lea.vmem %s1094_s3, %s718_s5 }
  0x18   : > { %223 = sbr.rel (%p719_p9) target bundleno = 31 (0x1f), region = 36 }
  0x1f PF: > { %s764_s9 = smul.u32 80, %s924_s12  ;;  %v226_v1 = vld [vmem:[%s1025_s29] sm:$0xf]  ;;  %v951_v2 = vmov 0.0   ;;  %v234_v3 = vld [vmem:[%s1025_s29 + $0x4] sm:$0x1] }
  0x20   : > { %780 = vmatprep.subr.bf16.mxu0 %v951_v2  ;;  %788 = vmatprep.subr.bf16.mxu1 %v951_v2  ;;  %vm952_vm1 = vmmov 0   ;;  %v726_v4 = vcombine.low %v226_v1, %v234_v3  ;;  %v365_v5 = vld [vmem:[%s1025_s29] sm:$0xe]  ;;  %v433_v6 = vld [vmem:[%s1025_s29 + $0x4] sm:$0x3]  ;;  %vm266_vm2 = vcmask 261120  }
  0x21   : > { %s1040_s13 = scalar_lea.vmem %s1092_s1, %s764_s9  ;;  %784 = vmatprep.mubr.msk.bf16.mxu0 %vm952_vm1, %v951_v2  ;;  %792 = vmatprep.mubr.msk.bf16.mxu1 %vm952_vm1, %v951_v2  ;;  %v747_v12 = vcombine.low %v365_v5, %v433_v6  ;;  %v738_v20 = vcombine.low %v365_v5, %v234_v3  ;;  %v508_v28 = vld [vmem:[%s1025_s29] sm:$0xc]  ;;  %vm578_vm3 = vcmask 523264   ;;  %p760_p10 = scmp.ne.s32.totalorder %s924_s12, 4 }
  0x22   : > { %v880_v7 = vld [vmem:[%s1040_s13 + $0x10] sm:$0xff]   ;;  %v881_v8 = vld [vmem:[%s1040_s13] sm:$0xff]   ;;  %v248_v9 = vshrl.u32 %v726_v4, 16  ;;  %v882_v10 = vld [vmem:[%s1040_s13 + $0x18] sm:$0xff]   ;;  %v250_v11 = vshll.u32 %v726_v4, 16  ;;  %v756_v29 = vcombine.low %v508_v28, %v433_v6  ;;  %vm595_vm4 = vcmask (!%p760_p10), 519168  }
  0x23   : > { %781 = vmatpush3.bf16.msra.mxu0 %v880_v7  ;;  %789 = vmatpush3.bf16.msra.mxu1 %v881_v8  ;;  %v883_v13 = vld [vmem:[%s1040_s13 + $0x8] sm:$0xff]   ;;  %v885_v15 = vld [vmem:[%s1040_s13 + $0x20] sm:$0xff]   ;;  %v445_v17 = vshrl.u32 %v747_v12, 16  ;;  %v448_v18 = vshll.u32 %v747_v12, 16  ;;  %v886_v19 = vld [vmem:[%s1040_s13 + $0x30] sm:$0xff]   ;;  %v376_v25 = vrot.slane %v738_v20, 1 }
  0x24   : > { %782 = vmatprep.subr.bf16.mxu0 %v951_v2  ;;  %790 = vmatprep.subr.bf16.mxu1 %v951_v2  ;;  %v252_v14 = vrot.slane %v250_v11, 1  ;;  %v887_v21 = vld [vmem:[%s1040_s13 + $0x28] sm:$0xff]   ;;  %v888_v24 = vld [vmem:[%s1040_s13 + $0x38] sm:$0xff]   ;;  %v891_v26 = vld [vmem:[%s1040_s13 + $0x40] sm:$0xff]   ;;  %v519_v31 = vrot.slane %v756_v29, 2 }
  0x25   : > { %v447_v22 = vrot.slane %v445_v17, 1  ;;  %v450_v23 = vrot.slane %v448_v18, 2  ;;  %v892_v30 = vld [vmem:[%s1040_s13 + $0x48] sm:$0xff]   ;;  %v576_v52 = vld [vmem:[#allocation2] sm:$0xff] }
  0x26   : > { %v253_v16 = vor.u32 %v252_v14, %v248_v9  ;;  %v761_v59 = vld [vmem:[%s1093_s2] ss:$0 sm:$0xff] (!%p760_p10) }
  0x27   : > { %783 = vmatpush3.bf16.msra.mxu0 %v882_v10  ;;  %791 = vmatpush3.bf16.msra.mxu1 %v883_v13  ;;  %v451_v27 = vor.u32 %v450_v23, %v447_v22 }
  0x28   : > { %796 = vmatprep.subr.bf16.mxu0 %v951_v2  ;;  %804 = vmatprep.subr.bf16.mxu1 %v951_v2 }
  0x2a   : > { %785 = vmatmul.mubr.msk.bf16.vlgmr.msra.gmra.mrb[0].mxu0 %vm266_vm2, %v253_v16  ;;  %793 = vmatmul.mubr.msk.bf16.vlgmr.msra.gmra.mrb[0].mxu1 %vm266_vm2, %v226_v1 }
  0x2b   : > { %797 = vmatpush3.bf16.msra.mxu0 %v885_v15  ;;  %805 = vmatpush3.bf16.msra.mxu1 %v886_v19 }
  0x2c   : > { %798 = vmatprep.subr.bf16.mxu0 %v951_v2  ;;  %806 = vmatprep.subr.bf16.mxu1 %v951_v2 }
  0x2d   : > { %800 = vmatprep.mubr.msk.bf16.mxu0 %vm952_vm1, %v951_v2  ;;  %808 = vmatprep.mubr.msk.bf16.mxu1 %vm952_vm1, %v951_v2 }
  0x2f   : > { %799 = vmatpush3.bf16.msra.mxu0 %v887_v21  ;;  %807 = vmatpush3.bf16.msra.mxu1 %v888_v24 }
  0x30   : > { %812 = vmatprep.subr.bf16.mxu0 %v951_v2 }
  0x32   : > { %801 = vmatmul.mubr.msk.bf16.vlgmr.msra.gmra.mrb[4].mxu0 %vm266_vm2, %v376_v25  ;;  %809 = vmatmul.mubr.msk.bf16.vlgmr.msra.gmra.mrb[4].mxu1 %vm266_vm2, %v451_v27 }
  0x33   : > { %813 = vmatpush3.bf16.msra.mxu0 %v891_v26  ;;  %816 = vmatprep.mubr.msk.bf16.mxu0 %vm952_vm1, %v951_v2 }
  0x34   : > { %814 = vmatprep.subr.bf16.mxu0 %v951_v2 }
  0x37   : > { %815 = vmatpush3.bf16.msra.mxu0 %v892_v30 }
  0x3a   : > { %817 = vmatmul.mubr.msk.bf16.vlgmr.msra.gmra.mrb[8].mxu0 %vm266_vm2, %v519_v31 }
  0xfd   : > { %v304_v32 = vpop.f32.mrb[0].mxu0  ;;  %v359_v34 = vpop.f32.mrb[0].mxu1 }
  0xfe   : > { %v786_v33 = vpop.f32.mrb[1].mxu0  ;;  %v360_v35 = vadd.f32 %v359_v34, %v304_v32  ;;  %v794_v37 = vpop.f32.mrb[1].mxu1 }
  0xff   : > { %v307_v36 = vpop.f32.mrb[2].mxu0  ;;  %v362_v39 = vpop.f32.mrb[2].mxu1 }
 0x100   : > { %v787_v38 = vpop.f32.mrb[3].mxu0  ;;  %v795_v40 = vpop.f32.mrb[3].mxu1 }
 0x105   : > { %v426_v41 = vpop.f32.mrb[4].mxu0  ;;  %v501_v44 = vpop.f32.mrb[4].mxu1 }
 0x106   : > { %v432_v42 = vadd.f32 %v426_v41, %v360_v35  ;;  %v802_v43 = vpop.f32.mrb[5].mxu0  ;;  %v810_v46 = vpop.f32.mrb[5].mxu1 }
 0x107   : > { %v429_v45 = vpop.f32.mrb[6].mxu0  ;;  %v504_v49 = vpop.f32.mrb[6].mxu1 }
 0x108   : > { %v507_v47 = vadd.f32 %v501_v44, %v432_v42  ;;  %v803_v48 = vpop.f32.mrb[7].mxu0  ;;  %v811_v50 = vpop.f32.mrb[7].mxu1 }
 0x10c   : > { %583 = sbr.rel (%p760_p10) target bundleno = 289 (0x121), region = 40 }
 0x10d   : > { %v569_v51 = vpop.f32.mrb[8].mxu0 }
 0x10e   : > { %v575_v53 = vadd.f32 %v569_v51, %v507_v47  ;;  %v818_v54 = vpop.f32.mrb[9].mxu0 }
 0x10f   : > { %v572_v55 = vpop.f32.mrb[10].mxu0 }
 0x110   : > { %v577_v56 = vadd.f32 %v576_v52, %v575_v53  ;;  %v819_v57 = vpop.f32.mrb[11].mxu0 }
 0x112   : > { %579 = vst.msk [vmem:[#allocation2] sm:$0xff] %vm578_vm3, %v577_v56 }
 0x119   : > { %v584_v58 = vld [vmem:[#allocation2] sm:$0xff] }
 0x11a   : > { %v592_v60 = vadd.f32 %v761_v59, %v584_v58 }
 0x11c   : > { %v593_v61 = vmax.f32 %v592_v60, 0.0 }
 0x11e   : > { %v594_v62 = vpack.c.bf16 %v593_v61, %v593_v61 }
 0x120   : > { %596 = vst.msk [vmem:[%s1031_s8] sm:$0xf] %vm595_vm4, %v594_v62 }
 0x121 PF: > { %s13_s18 = sadd.s32 1, %s948_s18   ;;  %s1095_s12 = smov %s936_s15 }
 0x122   : > { %p10_p11 = scmp.ge.s32.totalorder %s13_s18, 82   ;;  %s1096_s13 = smov %s940_s16 }
 0x123   : > { %s1097_s14 = smov %s944_s17  ;;  %s1098_s15 = smov %s1102_s19 }
 0x124   : > { %s1099_s16 = smov %s1106_s20  ;;  %s1100_s17 = smov %s1110_s21 }
 0x125   :  { %12 = sbr.rel (!%p10_p11) target bundleno = 4 (0x4), region = 75 }

// kernel: rpn_head_forward.17
= control target key start
LH: loop header
LB: loop body
LE: loop exit
PB: predicated region body
PF: predicated region fallthrough
CT: control target
= control target key end

     0   :  { %s1107_s12 = smov 0   ;;  %s1109_s13 = smov 0   ;;  %s1260_s0 = inlined_call_operand.vmem [shape: bf16[2,8,8,64], index: 0, kind: input, shape index: {}]   ;;  %s1261_s1 = inlined_call_operand.vmem [shape: bf16[5,5,64,128], index: 1, kind: input, shape index: {}]   ;;  %s1262_s2 = inlined_call_operand.vmem [shape: f32[1,128], index: 2, kind: input, shape index: {}]   ;;  %s1263_s3 = inlined_call_operand.vmem [shape: bf16[2,4,4,128], index: 3, kind: output, shape index: {}]  }
   0x1   :  { %s1111_s14 = smov 0   ;;  %s1113_s15 = smov 0  }
   0x2   :  { %s1115_s16 = smov 0   ;;  %s1117_s17 = smov 0  }
   0x3   :  { %s1119_s18 = smov 0  }
   0x4 LB: > { %s25_s19 = sadd.s32 1, %s1070_s15  ;;  %s28_s20 = sadd.s32 1, %s1074_s16  ;;  %s1082_s18 = sphi %s1119_s18, %s13_s18   ;;  %s1078_s17 = sphi %s1117_s17, %s1269_s17   ;;  %s1074_s16 = sphi %s1115_s16, %s1268_s16   ;;  %s1070_s15 = sphi %s1113_s15, %s1267_s15   ;;  %s1066_s14 = sphi %s1111_s14, %s1266_s14   ;;  %s1062_s13 = sphi %s1109_s13, %s1265_s13   ;;  %s1058_s12 = sphi %s1107_s12, %s1264_s12  }
   0x5   : > { %p26_p0 = scmp.ge.s32.totalorder %s25_s19, 5  ;;  %p783_p1 = scmp.ge.s32.totalorder %s1082_s18, 1 }
   0x6   : > { %p167_p2 = scmp.lt.s32.totalorder %s1082_s18, 41  ;;  %s32_s21 = sadd.s32 1, %s1078_s17 }
   0x7   : > { %s1271_s19 = smov (%p26_p0, %s25_s19), 0  ;;  %s1273_s20 = smov (!%p26_p0, %s28_s20), %s1074_s16 }
   0x8   : > { %p168_p3 = pnand %p783_p1, %p167_p2  ;;  %p30_p4 = scmp.ge.s32.totalorder %s1273_s20, 4 }
   0x9   : > { %s198_s22 = sadd.s32 (!%p168_p3), %s1058_s12, %s1062_s13  ;;  %p199_p6 = scmp.lt.s32.totalorder (!%p168_p3), %s1066_s14, 1 }
   0xa   : > { %s1275_s20 = smov (%p30_p4, %s1273_s20), 0  ;;  %s1277_s21 = smov (!%p30_p4, %s32_s21), %s1078_s17 }
   0xb   : > { %p34_p5 = scmp.ge.s32.totalorder %s1277_s21, 2  ;;  %171 = sbr.rel (%p168_p3) target bundleno = 312 (0x138), region = 32 }
   0xc   : > { %p201_p7 = scmp.lt.s32.totalorder (!%p168_p3), %s198_s22, 7  ;;  %p210_p8 = scmp.lt.s32.totalorder (!%p168_p3), %s1062_s13, 3 }
   0xd   : > { %s1279_s21 = smov (%p34_p5, %s1277_s21), 0  ;;  %p788_p9 = scmp.ne.s32.totalorder (!%p168_p3), %s1058_s12, 0 }
  0x12   : > { %s1281_s14 = smov (!%p199_p6, %s1066_s14), 1  ;;  %s1283_s22 = smov (!%p201_p7, %s198_s22), 7 }
  0x13   : > { %s784_s23 = sshll.u32 %s1281_s14, 3  ;;  %s786_s29 = sshll.u32 %s1281_s14, 2  ;;  %v1084_v0 = vmov (!%p788_p9), 0.0  }
  0x14   : > { %s204_s24 = sadd.s32 %s784_s23, %s1283_s22  ;;  %s1285_s13 = smov (!%p210_p8, %s1062_s13), 3  ;;  %221 = vst [vmem:[#allocation2] sm:$0xf] (!%p788_p9), %v1084_v0 }
  0x15   : > { %s785_s25 = sshll.u32 %s204_s24, 2  ;;  %s213_s30 = sadd.s32 %s786_s29, %s1285_s13 }
  0x16   : > { %s1159_s28 = scalar_lea.vmem %s1260_s0, %s785_s25  ;;  %s787_s4 = sshll.u32 %s213_s30, 1 }
  0x17   : > { %s1165_s7 = scalar_lea.vmem %s1263_s3, %s787_s4  ;;  %220 = sbr.rel (%p788_p9) target bundleno = 30 (0x1e), region = 36 }
  0x1e PF: > { %s859_s8 = smul.u32 160, %s1058_s12  ;;  %v1085_v1 = vmov 0.0   ;;  %vm1086_vm0 = vmmov 0   ;;  %v1012_v2 = vld [vmem:[%s1159_s28] ss:$0 sps:$4 sm:$0x77]  }
  0x1f   : > { %885 = vmatprep.subr.bf16.mxu0 %v1085_v1  ;;  %897 = vmatprep.subr.bf16.mxu1 %v1085_v1  ;;  %v252_v7 = vshll.u32 %v1012_v2, 16  ;;  %v250_v10 = vshrl.u32 %v1012_v2, 16  ;;  %v222_v15 = vld [vmem:[%s1159_s28] sm:$0x3]  ;;  %vm280_vm1 = vcmask 523264   ;;  %p855_p10 = scmp.ne.s32.totalorder %s1058_s12, 4 }
  0x20   : > { %s1174_s11 = scalar_lea.vmem %s1261_s1, %s859_s8  ;;  %893 = vmatprep.mubr.msk.bf16.mxu0 %vm1086_vm0, %v1085_v1  ;;  %905 = vmatprep.mubr.msk.bf16.mxu1 %vm1086_vm0, %v1085_v1  ;;  %v1023_v19 = vld [vmem:[%s1159_s28] ss:$0 sps:$4 sm:$0xee]  }
  0x21   : > { %v1004_v3 = vld [vmem:[%s1174_s11 + $0x20] sm:$0xff]   ;;  %v1006_v5 = vld [vmem:[%s1174_s11 + $0x28] sm:$0xff]   ;;  %v1008_v8 = vld [vmem:[%s1174_s11 + $0x30] sm:$0xff]   ;;  %v254_v11 = vrot.slane %v252_v7, 1  ;;  %v491_v22 = vshrl.u32 %v1023_v19, 16  ;;  %v494_v23 = vshll.u32 %v1023_v19, 16 }
  0x22   : > { %v1005_v4 = vld [vmem:[%s1174_s11] sm:$0xff]   ;;  %886 = vmatpush3.bf16.msra.mxu0 %v1004_v3  ;;  %v1007_v6 = vld [vmem:[%s1174_s11 + $0x8] sm:$0xff]   ;;  %v1009_v9 = vld [vmem:[%s1174_s11 + $0x10] sm:$0xff]  }
  0x23   : > { %898 = vmatpush3.bf16.msra.mxu1 %v1005_v4  ;;  %887 = vmatprep.subr.bf16.mxu0 %v1085_v1  ;;  %v1010_v12 = vld [vmem:[%s1174_s11 + $0x38] sm:$0xff]   ;;  %v255_v14 = vor.u32 %v254_v11, %v250_v10  ;;  %v1013_v16 = vld [vmem:[%s1174_s11 + $0x40] sm:$0xff]   ;;  %v1015_v18 = vld [vmem:[%s1174_s11 + $0x48] sm:$0xff]   ;;  %v493_v27 = vrot.slane %v491_v22, 1  ;;  %v496_v28 = vrot.slane %v494_v23, 2 }
  0x24   : > { %899 = vmatprep.subr.bf16.mxu1 %v1085_v1  ;;  %v1011_v13 = vld [vmem:[%s1174_s11 + $0x18] sm:$0xff]   ;;  %v1014_v17 = vld [vmem:[%s1174_s11 + $0x60] sm:$0xff]   ;;  %v1016_v20 = vld [vmem:[%s1174_s11 + $0x68] sm:$0xff]  }
  0x25   : > { %v1017_v21 = vld [vmem:[%s1174_s11 + $0x50] sm:$0xff]   ;;  %v1021_v25 = vld [vmem:[%s1159_s28] ss:$0 sps:$4 sm:$0x66]   ;;  %v1019_v26 = vld [vmem:[%s1174_s11 + $0x58] sm:$0xff]   ;;  %v497_v32 = vor.u32 %v496_v28, %v493_v27 }
  0x26   : > { %888 = vmatpush3.bf16.msra.mxu0 %v1006_v5  ;;  %v1018_v24 = vld [vmem:[%s1174_s11 + $0x70] sm:$0xff]   ;;  %v1020_v29 = vld [vmem:[%s1174_s11 + $0x78] sm:$0xff]   ;;  %v406_v30 = vrot.slane %v1021_v25, 1  ;;  %v1022_v31 = vld [vmem:[%s1174_s11 + $0x80] sm:$0xff]  }
  0x27   : > { %900 = vmatpush3.bf16.msra.mxu1 %v1007_v6  ;;  %889 = vmatprep.subr.bf16.mxu0 %v1085_v1  ;;  %v1024_v33 = vld [vmem:[%s1174_s11 + $0x88] sm:$0xff]   ;;  %v1025_v34 = vld [vmem:[%s1174_s11 + $0x90] sm:$0xff]   ;;  %v1027_v35 = vld [vmem:[%s1159_s28] ss:$0 sps:$4 sm:$0xcc]  }
  0x28   : > { %901 = vmatprep.subr.bf16.mxu1 %v1085_v1  ;;  %v1026_v36 = vld [vmem:[%s1174_s11 + $0x98] sm:$0xff]   ;;  %v581_v37 = vrot.slane %v1027_v35, 2  ;;  %v650_v58 = vld [vmem:[#allocation2] sm:$0xf] }
  0x2a   : > { %890 = vmatpush3.bf16.msra.mxu0 %v1008_v8 }
  0x2b   : > { %902 = vmatpush3.bf16.msra.mxu1 %v1009_v9  ;;  %891 = vmatprep.subr.bf16.mxu0 %v1085_v1 }
  0x2c   : > { %903 = vmatprep.subr.bf16.mxu1 %v1085_v1 }
  0x2e   : > { %892 = vmatpush3.bf16.msra.mxu0 %v1010_v12 }
  0x2f   : > { %904 = vmatpush3.bf16.msra.mxu1 %v1011_v13  ;;  %909 = vmatprep.subr.bf16.mxu0 %v1085_v1 }
  0x30   : > { %921 = vmatprep.subr.bf16.mxu1 %v1085_v1 }
  0x31   : > { %894 = vmatmul.mubr.msk.bf16.vlgmr.msra.gmra.mrb[0].mxu0 %vm280_vm1, %v255_v14 }
  0x32   : > { %906 = vmatmul.mubr.msk.bf16.vlgmr.msra.gmra.mrb[0].mxu1 %vm280_vm1, %v222_v15  ;;  %910 = vmatpush3.bf16.msra.mxu0 %v1013_v16 }
  0x33   : > { %922 = vmatpush3.bf16.msra.mxu1 %v1014_v17  ;;  %911 = vmatprep.subr.bf16.mxu0 %v1085_v1 }
  0x34   : > { %923 = vmatprep.subr.bf16.mxu1 %v1085_v1  ;;  %917 = vmatprep.mubr.msk.bf16.mxu0 %vm1086_vm0, %v1085_v1 }
  0x35   : > { %929 = vmatprep.mubr.msk.bf16.mxu1 %vm1086_vm0, %v1085_v1 }
  0x36   : > { %912 = vmatpush3.bf16.msra.mxu0 %v1015_v18 }
  0x37   : > { %924 = vmatpush3.bf16.msra.mxu1 %v1016_v20  ;;  %913 = vmatprep.subr.bf16.mxu0 %v1085_v1 }
  0x38   : > { %925 = vmatprep.subr.bf16.mxu1 %v1085_v1 }
  0x3a   : > { %914 = vmatpush3.bf16.msra.mxu0 %v1017_v21 }
  0x3b   : > { %926 = vmatpush3.bf16.msra.mxu1 %v1018_v24  ;;  %915 = vmatprep.subr.bf16.mxu0 %v1085_v1 }
  0x3c   : > { %927 = vmatprep.subr.bf16.mxu1 %v1085_v1 }
  0x3e   : > { %916 = vmatpush3.bf16.msra.mxu0 %v1019_v26 }
  0x3f   : > { %928 = vmatpush3.bf16.msra.mxu1 %v1020_v29  ;;  %933 = vmatprep.subr.bf16.mxu0 %v1085_v1 }
  0x41   : > { %918 = vmatmul.mubr.msk.bf16.vlgmr.msra.gmra.mrb[4].mxu0 %vm280_vm1, %v406_v30 }
  0x42   : > { %934 = vmatpush3.bf16.msra.mxu0 %v1022_v31  ;;  %930 = vmatmul.mubr.msk.bf16.vlgmr.msra.gmra.mrb[4].mxu1 %vm280_vm1, %v497_v32 }
  0x43   : > { %935 = vmatprep.subr.bf16.mxu0 %v1085_v1  ;;  %941 = vmatprep.mubr.msk.bf16.mxu0 %vm1086_vm0, %v1085_v1 }
  0x46   : > { %936 = vmatpush3.bf16.msra.mxu0 %v1024_v33 }
  0x47   : > { %937 = vmatprep.subr.bf16.mxu0 %v1085_v1 }
  0x4a   : > { %938 = vmatpush3.bf16.msra.mxu0 %v1025_v34 }
  0x4b   : > { %939 = vmatprep.subr.bf16.mxu0 %v1085_v1  ;;  %v856_v1 = vld [vmem:[%s1262_s2] ss:$0 sm:$0xff] (!%p855_p10) }
  0x4e   : > { %940 = vmatpush3.bf16.msra.mxu0 %v1026_v36 }
  0x51   : > { %942 = vmatmul.mubr.msk.bf16.vlgmr.msra.gmra.mrb[8].mxu0 %vm280_vm1, %v581_v37 }
 0x104   : > { %v318_v38 = vpop.f32.mrb[0].mxu0 }
 0x105   : > { %v895_v39 = vpop.f32.mrb[1].mxu0  ;;  %v385_v40 = vpop.f32.mrb[0].mxu1 }
 0x106   : > { %v386_v41 = vadd.f32 %v385_v40, %v318_v38  ;;  %v321_v42 = vpop.f32.mrb[2].mxu0  ;;  %v907_v43 = vpop.f32.mrb[1].mxu1 }
 0x107   : > { %v896_v44 = vpop.f32.mrb[3].mxu0  ;;  %v388_v45 = vpop.f32.mrb[2].mxu1 }
 0x108   : > { %v908_v46 = vpop.f32.mrb[3].mxu1 }
 0x114   : > { %v468_v47 = vpop.f32.mrb[4].mxu0 }
 0x115   : > { %v474_v48 = vadd.f32 %v468_v47, %v386_v41  ;;  %v919_v49 = vpop.f32.mrb[5].mxu0  ;;  %v559_v50 = vpop.f32.mrb[4].mxu1 }
 0x116   : > { %v471_v51 = vpop.f32.mrb[6].mxu0  ;;  %v931_v52 = vpop.f32.mrb[5].mxu1 }
 0x117   : > { %v565_v53 = vadd.f32 %v559_v50, %v474_v48  ;;  %v920_v54 = vpop.f32.mrb[7].mxu0  ;;  %v562_v55 = vpop.f32.mrb[6].mxu1 }
 0x118   : > { %v932_v56 = vpop.f32.mrb[7].mxu1 }
 0x123   : > { %656 = sbr.rel (%p855_p10) target bundleno = 312 (0x138), region = 40 }
 0x124   : > { %v643_v57 = vpop.f32.mrb[8].mxu0 }
 0x125   : > { %v649_v59 = vadd.f32 %v643_v57, %v565_v53  ;;  %v943_v60 = vpop.f32.mrb[9].mxu0 }
 0x126   : > { %v646_v61 = vpop.f32.mrb[10].mxu0 }
 0x127   : > { %v651_v62 = vadd.f32 %v650_v58, %v649_v59  ;;  %v944_v63 = vpop.f32.mrb[11].mxu0 }
 0x129   : > { %652 = vst [vmem:[#allocation2] sm:$0xf] %v651_v62 }
 0x130   : > { %v657_v0 = vld [vmem:[#allocation2] sm:$0xf] }
 0x131   : > { %v665_v2 = vadd.f32 %v856_v1, %v657_v0 }
 0x133   : > { %v666_v3 = vmax.f32 %v665_v2, 0.0 }
 0x135   : > { %v667_v4 = vpack.c.bf16 %v666_v3, %v666_v3 }
 0x137   : > { %668 = vst [vmem:[%s1165_s7] sm:$0x3] %v667_v4 }
 0x138 PF: > { %s13_s18 = sadd.s32 1, %s1082_s18   ;;  %s1264_s12 = smov %s1070_s15 }
 0x139   : > { %p10_p11 = scmp.ge.s32.totalorder %s13_s18, 42   ;;  %s1265_s13 = smov %s1074_s16 }
 0x13a   : > { %s1266_s14 = smov %s1078_s17  ;;  %s1267_s15 = smov %s1271_s19 }
 0x13b   : > { %s1268_s16 = smov %s1275_s20  ;;  %s1269_s17 = smov %s1279_s21 }
 0x13c   :  { %12 = sbr.rel (!%p10_p11) target bundleno = 4 (0x4), region = 75 }

// kernel: rpn_head_forward.18
= control target key start
LH: loop header
LB: loop body
LE: loop exit
PB: predicated region body
PF: predicated region fallthrough
CT: control target
= control target key end

     0   :  { %s342_s6 = smov 0   ;;  %s344_s7 = smov 0   ;;  %s390_s0 = inlined_call_operand.vmem [shape: bf16[2,4,2,256], index: 0, kind: input, shape index: {}]   ;;  %s391_s1 = inlined_call_operand.vmem [shape: bf16[2,2,2,128], index: 1, kind: output, shape index: {}]  }
   0x1   :  { %s346_s8 = smov 0   ;;  %s348_s9 = smov 0  }
   0x2   :  { %s350_s10 = smov 0  }
   0x3 LB: > { %s20_s11 = sadd.s32 1, %s322_s8  ;;  %s23_s12 = sadd.s32 1, %s326_s9  ;;  %s330_s10 = sphi %s350_s10, %s11_s10   ;;  %s326_s9 = sphi %s348_s9, %s395_s9   ;;  %s322_s8 = sphi %s346_s8, %s394_s8   ;;  %s318_s7 = sphi %s344_s7, %s393_s7   ;;  %s314_s6 = sphi %s342_s6, %s392_s6  }
   0x4   : > { %p21_p0 = scmp.ge.s32.totalorder %s20_s11, 2  ;;  %p244_p1 = scmp.ge.s32.totalorder %s330_s10, 1 }
   0x5   : > { %p108_p2 = scmp.lt.s32.totalorder %s330_s10, 5 }
   0x6   : > { %s397_s11 = smov (%p21_p0, %s20_s11), 0  ;;  %s399_s12 = smov (!%p21_p0, %s23_s12), %s326_s9 }
   0x7   : > { %p109_p3 = pnand %p244_p1, %p108_p2  ;;  %p25_p4 = scmp.ge.s32.totalorder %s399_s12, 2 }
   0x8   : > { %s245_s13 = sshll.u32 (!%p109_p3), %s314_s6, 1  ;;  %p135_p5 = scmp.lt.s32.totalorder (!%p109_p3), %s318_s7, 1 }
   0x9   : > { %s401_s12 = smov (%p25_p4, %s399_s12), 0  ;;  %112 = sbr.rel (%p109_p3) target bundleno = 28 (0x1c), region = 24 }
   0xa   : > { %p137_p6 = scmp.lt.s32.totalorder (!%p109_p3), %s245_s13, 3  ;;  %p146_p7 = scmp.lt.s32.totalorder (!%p109_p3), %s314_s6, 1 }
  0x10   : > { %s403_s7 = smov (!%p135_p5, %s318_s7), 1  ;;  %s405_s13 = smov (!%p137_p6, %s245_s13), 3 }
  0x11   : > { %s247_s14 = sshll.u32 %s403_s7, 3  ;;  %s246_s15 = sshll.u32 %s405_s13, 1 }
  0x12   : > { %s141_s16 = sadd.s32 %s247_s14, %s246_s15  ;;  %s248_s20 = sshll.u32 %s403_s7, 1 }
  0x13   : > { %s142_s19 = scalar_lea.vmem %s390_s0, %s141_s16  ;;  %s407_s6 = smov (!%p146_p7, %s314_s6), 1 }
  0x14   : > { %v151_v0 = vld [vmem:[%s142_s19] sm:$0x3]  ;;  %v249_v1 = vld [vmem:[%s142_s19 + $0x2] sm:$0x3]  ;;  %s149_s21 = sadd.s32 %s248_s20, %s407_s6 }
  0x15   : > { %v154_v2 = vmax.bf16 %v249_v1, %v151_v0  ;;  %s150_s24 = scalar_lea.vmem %s391_s1, %s149_s21 }
  0x17   : > { %v156_v3 = vrot.slane %v154_v2, 1 }
  0x19   : > { %v158_v4 = vmax.bf16 %v156_v3, %v154_v2 }
  0x1b   : > { %159 = vst [vmem:[%s150_s24] sm:$0x1] %v158_v4 }
  0x1c PF: > { %s11_s10 = sadd.s32 1, %s330_s10   ;;  %s392_s6 = smov %s322_s8 }
  0x1d   : > { %p8_p8 = scmp.ge.s32.totalorder %s11_s10, 6   ;;  %s393_s7 = smov %s326_s9 }
  0x1e   : > { %s394_s8 = smov %s397_s11  ;;  %s395_s9 = smov %s401_s12 }
  0x1f   :  { %10 = sbr.rel (!%p8_p8) target bundleno = 3 (0x3), region = 55 }

// kernel: rpn_head_forward.19
= control target key start
LH: loop header
LB: loop body
LE: loop exit
PB: predicated region body
PF: predicated region fallthrough
CT: control target
= control target key end

     0   :  { %s1595_s12 = smov 0   ;;  %s1597_s13 = smov 0   ;;  %s1778_s0 = inlined_call_operand.vmem [shape: bf16[2,6,6,128], index: 0, kind: input, shape index: {}]   ;;  %s1779_s1 = inlined_call_operand.vmem [shape: bf16[5,5,128,256], index: 1, kind: input, shape index: {}]   ;;  %s1780_s2 = inlined_call_operand.vmem [shape: f32[1,256], index: 2, kind: input, shape index: {}]   ;;  %s1781_s3 = inlined_call_operand.vmem [shape: bf16[2,2,2,256], index: 3, kind: output, shape index: {}]  }
   0x1   :  { %s1599_s14 = smov 0   ;;  %s1601_s15 = smov 0  }
   0x2   :  { %s1603_s16 = smov 0   ;;  %s1605_s17 = smov 0  }
   0x3   :  { %s1607_s18 = smov 0  }
   0x4 LB: > { %s25_s19 = sadd.s32 1, %s1557_s15  ;;  %s28_s20 = sadd.s32 1, %s1561_s16  ;;  %s1569_s18 = sphi %s1607_s18, %s13_s18   ;;  %s1565_s17 = sphi %s1605_s17, %s1787_s17   ;;  %s1561_s16 = sphi %s1603_s16, %s1786_s16   ;;  %s1557_s15 = sphi %s1601_s15, %s1785_s15   ;;  %s1553_s14 = sphi %s1599_s14, %s1784_s14   ;;  %s1549_s13 = sphi %s1597_s13, %s1783_s13   ;;  %s1545_s12 = sphi %s1595_s12, %s1782_s12  }
   0x5   : > { %p26_p0 = scmp.ge.s32.totalorder %s25_s19, 5  ;;  %p1152_p1 = scmp.ge.s32.totalorder %s1569_s18, 1 }
   0x6   : > { %p167_p2 = scmp.lt.s32.totalorder %s1569_s18, 21  ;;  %s32_s21 = sadd.s32 1, %s1565_s17 }
   0x7   : > { %s1789_s19 = smov (%p26_p0, %s25_s19), 0  ;;  %s1791_s20 = smov (!%p26_p0, %s28_s20), %s1561_s16 }
   0x8   : > { %p168_p3 = pnand %p1152_p1, %p167_p2  ;;  %p30_p4 = scmp.ge.s32.totalorder %s1791_s20, 2 }
   0x9   : > { %s198_s22 = sadd.s32 (!%p168_p3), %s1545_s12, %s1549_s13  ;;  %p199_p6 = scmp.lt.s32.totalorder (!%p168_p3), %s1553_s14, 1 }
   0xa   : > { %s1793_s20 = smov (%p30_p4, %s1791_s20), 0  ;;  %s1795_s21 = smov (!%p30_p4, %s32_s21), %s1565_s17 }
   0xb   : > { %p34_p5 = scmp.ge.s32.totalorder %s1795_s21, 2  ;;  %171 = sbr.rel (%p168_p3) target bundleno = 370 (0x172), region = 32 }
   0xc   : > { %p201_p7 = scmp.lt.s32.totalorder (!%p168_p3), %s198_s22, 5  ;;  %p210_p8 = scmp.lt.s32.totalorder (!%p168_p3), %s1549_s13, 1 }
   0xd   : > { %s1797_s21 = smov (%p34_p5, %s1795_s21), 0  ;;  %p1156_p9 = scmp.ne.s32.totalorder (!%p168_p3), %s1545_s12, 0 }
  0x12   : > { %s1799_s14 = smov (!%p199_p6, %s1553_s14), 1  ;;  %s1801_s22 = smov (!%p201_p7, %s198_s22), 5 }
  0x13   : > { %s1330_s23 = smul.u32 6, %s1799_s14  ;;  %s1155_s24 = sshll.u32 %s1799_s14, 2  ;;  %v1571_v0 = vmov (!%p1156_p9), 0.0  }
  0x14   : > { %s1803_s13 = smov (!%p210_p8, %s1549_s13), 1  ;;  %220 = sbr.rel (%p1156_p9) target bundleno = 27 (0x1b), region = 36 }
  0x15   : > { %s204_s25 = sadd.s32 %s1330_s23, %s1801_s22  ;;  %s1154_s27 = sshll.u32 %s1803_s13, 1  ;;  %221 = vst [vmem:[#allocation2] sm:$0xf] (!%p1156_p9), %v1571_v0 }
  0x16   : > { %s1153_s26 = sshll.u32 %s204_s25, 2  ;;  %s1645_s4 = sadd.s32 %s1155_s24, %s1154_s27 }
  0x17   : > { %s1643_s30 = scalar_lea.vmem %s1778_s0, %s1153_s26  ;;  %s215_s7 = scalar_lea.vmem %s1781_s3, %s1645_s4 }
  0x1b PF: > { %s1315_s8 = smul.u32 640, %s1545_s12  ;;  %v1572_v1 = vmov 0   ;;  %v1445_v24 = vld [vmem:[%s1643_s30] ss:$0 sps:$4 sm:$0x33]   ;;  %p1310_p10 = scmp.ne.s32.totalorder %s1545_s12, 4 }
  0x1c   : > { %385 = vmatprep.mubr.bf16.mxu1 %v1572_v1  ;;  %652 = vmatprep.mubr.bf16.mxu0 %v1572_v1  ;;  %v268_v31 = vshll.u32 %v1445_v24, 16  ;;  %v266_v34 = vshrl.u32 %v1445_v24, 16  ;;  %v1446_v35 = vld [vmem:[%s1643_s30] ss:$0 sps:$4 sm:$0x22]  }
  0x1d   : > { %s1658_s11 = scalar_lea.vmem %s1779_s1, %s1315_s8  ;;  %v538_v44 = vrot.slane %v1446_v35, 1  ;;  %v1492_v0 = vld [vmem:[%s1643_s30] ss:$0 sps:$4 sm:$0x66]  }
  0x1e   : > { %v1391_v2 = vld [vmem:[%s1658_s11 + $0x84] ss:$8 sps:$4 sm:$0xff]   ;;  %v1395_v4 = vld [vmem:[%s1658_s11 + $0x80] ss:$8 sps:$4 sm:$0xff]   ;;  %v1397_v6 = vld [vmem:[%s1658_s11 + $0x94] ss:$8 sps:$4 sm:$0xff]  }
  0x1f   : > { %v1393_v3 = vld [vmem:[%s1658_s11 + $0x104] ss:$8 sps:$4 sm:$0xff]   ;;  %353 = vmatprep.subr.bf16.mxu1 %v1391_v2  ;;  %v1396_v5 = vld [vmem:[%s1658_s11 + $0x100] ss:$8 sps:$4 sm:$0xff]   ;;  %v1399_v7 = vld [vmem:[%s1658_s11 + $0x114] ss:$8 sps:$4 sm:$0xff]  }
  0x20   : > { %620 = vmatprep.subr.bf16.mxu0 %v1393_v3  ;;  %354 = vmatpush1.bf16.msra.mxu1 %v1395_v4  ;;  %v1401_v8 = vld [vmem:[%s1658_s11 + $0x90] ss:$8 sps:$4 sm:$0xff]   ;;  %v1403_v10 = vld [vmem:[%s1658_s11 + $0xa4] ss:$8 sps:$4 sm:$0xff]   ;;  %v1407_v12 = vld [vmem:[%s1658_s11 + $0xa0] ss:$8 sps:$4 sm:$0xff]  }
  0x21   : > { %621 = vmatpush1.bf16.msra.mxu0 %v1396_v5  ;;  %355 = vmatprep.subr.bf16.mxu1 %v1397_v6  ;;  %v1402_v9 = vld [vmem:[%s1658_s11 + $0x110] ss:$8 sps:$4 sm:$0xff]   ;;  %v1405_v11 = vld [vmem:[%s1658_s11 + $0x124] ss:$8 sps:$4 sm:$0xff]   ;;  %v1408_v13 = vld [vmem:[%s1658_s11 + $0x120] ss:$8 sps:$4 sm:$0xff]  }
  0x22   : > { %622 = vmatprep.subr.bf16.mxu0 %v1399_v7  ;;  %v1409_v14 = vld [vmem:[%s1658_s11 + $0xb4] ss:$8 sps:$4 sm:$0xff]   ;;  %v1413_v16 = vld [vmem:[%s1658_s11 + $0xb0] ss:$8 sps:$4 sm:$0xff]   ;;  %v1415_v18 = vld [vmem:[%s1658_s11 + $0xc4] ss:$8 sps:$4 sm:$0xff]  }
  0x23   : > { %v1411_v15 = vld [vmem:[%s1658_s11 + $0x134] ss:$8 sps:$4 sm:$0xff]   ;;  %v1414_v17 = vld [vmem:[%s1658_s11 + $0x130] ss:$8 sps:$4 sm:$0xff]   ;;  %v1417_v19 = vld [vmem:[%s1658_s11 + $0x144] ss:$8 sps:$4 sm:$0xff]  }
  0x24   : > { %356 = vmatpush1.bf16.msra.mxu1 %v1401_v8  ;;  %v1419_v20 = vld [vmem:[%s1658_s11 + $0xc0] ss:$8 sps:$4 sm:$0xff]   ;;  %v1421_v22 = vld [vmem:[%s1658_s11 + $0xd4] ss:$8 sps:$4 sm:$0xff]   ;;  %v1425_v25 = vld [vmem:[%s1658_s11 + $0xd0] ss:$8 sps:$4 sm:$0xff]  }
  0x25   : > { %623 = vmatpush1.bf16.msra.mxu0 %v1402_v9  ;;  %357 = vmatprep.subr.bf16.mxu1 %v1403_v10  ;;  %v1420_v21 = vld [vmem:[%s1658_s11 + $0x140] ss:$8 sps:$4 sm:$0xff]   ;;  %v1423_v23 = vld [vmem:[%s1658_s11 + $0x154] ss:$8 sps:$4 sm:$0xff]   ;;  %v1426_v26 = vld [vmem:[%s1658_s11 + $0x150] ss:$8 sps:$4 sm:$0xff]  }
  0x26   : > { %624 = vmatprep.subr.bf16.mxu0 %v1405_v11  ;;  %v1427_v27 = vld [vmem:[%s1658_s11 + $0xe4] ss:$8 sps:$4 sm:$0xff]   ;;  %v1431_v29 = vld [vmem:[%s1658_s11 + $0xe0] ss:$8 sps:$4 sm:$0xff]   ;;  %v1433_v32 = vld [vmem:[%s1658_s11 + $0xf4] ss:$8 sps:$4 sm:$0xff]  }
  0x27   : > { %v1429_v28 = vld [vmem:[%s1658_s11 + $0x164] ss:$8 sps:$4 sm:$0xff]   ;;  %v1432_v30 = vld [vmem:[%s1658_s11 + $0x160] ss:$8 sps:$4 sm:$0xff]   ;;  %v1435_v33 = vld [vmem:[%s1658_s11 + $0x174] ss:$8 sps:$4 sm:$0xff]  }
  0x28   : > { %358 = vmatpush1.bf16.msra.mxu1 %v1407_v12  ;;  %v1437_v36 = vld [vmem:[%s1658_s11 + $0xf0] ss:$8 sps:$4 sm:$0xff]   ;;  %v270_v38 = vrot.slane %v268_v31, 1  ;;  %v1441_v39 = vld [vmem:[%s1658_s11 + $0x4] ss:$8 sps:$4 sm:$0xff]   ;;  %v687_v5 = vshrl.u32 %v1492_v0, 16 }
  0x29   : > { %625 = vmatpush1.bf16.msra.mxu0 %v1408_v13  ;;  %359 = vmatprep.subr.bf16.mxu1 %v1409_v14  ;;  %v1438_v37 = vld [vmem:[%s1658_s11 + $0x170] ss:$8 sps:$4 sm:$0xff]   ;;  %v1444_v40 = vld [vmem:[%s1658_s11 + $0x184] ss:$8 sps:$4 sm:$0xff]   ;;  %v1439_v41 = vld [vmem:[%s1658_s11] ss:$8 sps:$4 sm:$0xff]  }
  0x2a   : > { %626 = vmatprep.subr.bf16.mxu0 %v1411_v15  ;;  %v1442_v42 = vld [vmem:[%s1658_s11 + $0x180] ss:$8 sps:$4 sm:$0xff]   ;;  %v271_v43 = vor.u32 %v270_v38, %v266_v34  ;;  %v1449_v45 = vld [vmem:[%s1658_s11 + $0x14] ss:$8 sps:$4 sm:$0xff]   ;;  %v1447_v47 = vld [vmem:[%s1658_s11 + $0x10] ss:$8 sps:$4 sm:$0xff]  }
  0x2b   : > { %v1452_v46 = vld [vmem:[%s1658_s11 + $0x194] ss:$8 sps:$4 sm:$0xff]   ;;  %v1450_v48 = vld [vmem:[%s1658_s11 + $0x190] ss:$8 sps:$4 sm:$0xff]   ;;  %v1455_v49 = vld [vmem:[%s1658_s11 + $0x24] ss:$8 sps:$4 sm:$0xff]  }
  0x2c   : > { %360 = vmatpush1.bf16.msra.mxu1 %v1413_v16  ;;  %v1458_v50 = vld [vmem:[%s1658_s11 + $0x1a4] ss:$8 sps:$4 sm:$0xff]   ;;  %v1453_v51 = vld [vmem:[%s1658_s11 + $0x20] ss:$8 sps:$4 sm:$0xff]   ;;  %v1461_v53 = vld [vmem:[%s1658_s11 + $0x34] ss:$8 sps:$4 sm:$0xff]  }
  0x2d   : > { %627 = vmatpush1.bf16.msra.mxu0 %v1414_v17  ;;  %361 = vmatprep.subr.bf16.mxu1 %v1415_v18  ;;  %v1456_v52 = vld [vmem:[%s1658_s11 + $0x1a0] ss:$8 sps:$4 sm:$0xff]   ;;  %v1464_v54 = vld [vmem:[%s1658_s11 + $0x1b4] ss:$8 sps:$4 sm:$0xff]   ;;  %v1459_v55 = vld [vmem:[%s1658_s11 + $0x30] ss:$8 sps:$4 sm:$0xff]  }
  0x2e   : > { %628 = vmatprep.subr.bf16.mxu0 %v1417_v19  ;;  %v1462_v56 = vld [vmem:[%s1658_s11 + $0x1b0] ss:$8 sps:$4 sm:$0xff]   ;;  %v1467_v57 = vld [vmem:[%s1658_s11 + $0x44] ss:$8 sps:$4 sm:$0xff]   ;;  %v1465_v59 = vld [vmem:[%s1658_s11 + $0x40] ss:$8 sps:$4 sm:$0xff]  }
  0x2f   : > { %v1470_v58 = vld [vmem:[%s1658_s11 + $0x1c4] ss:$8 sps:$4 sm:$0xff]   ;;  %v1468_v60 = vld [vmem:[%s1658_s11 + $0x1c0] ss:$8 sps:$4 sm:$0xff]   ;;  %v1473_v61 = vld [vmem:[%s1658_s11 + $0x54] ss:$8 sps:$4 sm:$0xff]  }
  0x30   : > { %362 = vmatpush1.bf16.msra.mxu1 %v1419_v20  ;;  %v1476_v62 = vld [vmem:[%s1658_s11 + $0x1d4] ss:$8 sps:$4 sm:$0xff]   ;;  %v1471_v63 = vld [vmem:[%s1658_s11 + $0x50] ss:$8 sps:$4 sm:$0xff]   ;;  %v1479_v3 = vld [vmem:[%s1658_s11 + $0x64] ss:$8 sps:$4 sm:$0xff]  }
  0x31   : > { %629 = vmatpush1.bf16.msra.mxu0 %v1420_v21  ;;  %363 = vmatprep.subr.bf16.mxu1 %v1421_v22  ;;  %v1474_v2 = vld [vmem:[%s1658_s11 + $0x1d0] ss:$8 sps:$4 sm:$0xff]   ;;  %v1482_v4 = vld [vmem:[%s1658_s11 + $0x1e4] ss:$8 sps:$4 sm:$0xff]   ;;  %v690_v6 = vshll.u32 %v1492_v0, 16  ;;  %v689_v11 = vrot.slane %v687_v5, 1 }
  0x32   : > { %630 = vmatprep.subr.bf16.mxu0 %v1423_v23  ;;  %v1477_v7 = vld [vmem:[%s1658_s11 + $0x60] ss:$8 sps:$4 sm:$0xff]   ;;  %v1485_v9 = vld [vmem:[%s1658_s11 + $0x74] ss:$8 sps:$4 sm:$0xff]   ;;  %v1483_v13 = vld [vmem:[%s1658_s11 + $0x70] ss:$8 sps:$4 sm:$0xff]  }
  0x33   : > { %v1480_v8 = vld [vmem:[%s1658_s11 + $0x1e0] ss:$8 sps:$4 sm:$0xff]   ;;  %v1488_v10 = vld [vmem:[%s1658_s11 + $0x1f4] ss:$8 sps:$4 sm:$0xff]   ;;  %v692_v12 = vrot.slane %v690_v6, 2 }
  0x34   : > { %364 = vmatpush1.bf16.msra.mxu1 %v1425_v25  ;;  %v1486_v14 = vld [vmem:[%s1658_s11 + $0x1f0] ss:$8 sps:$4 sm:$0xff]   ;;  %v1491_v15 = vld [vmem:[%s1658_s11 + $0x204] ss:$8 sps:$4 sm:$0xff]   ;;  %v222_v17 = vld [vmem:[%s1643_s30] sm:$0x1] }
  0x35   : > { %631 = vmatpush1.bf16.msra.mxu0 %v1426_v26  ;;  %365 = vmatprep.subr.bf16.mxu1 %v1427_v27  ;;  %v693_v16 = vor.u32 %v692_v12, %v689_v11  ;;  %v1489_v18 = vld [vmem:[%s1658_s11 + $0x200] ss:$8 sps:$4 sm:$0xff]   ;;  %v1495_v19 = vld [vmem:[%s1658_s11 + $0x214] ss:$8 sps:$4 sm:$0xff]   ;;  %v1493_v20 = vld [vmem:[%s1658_s11 + $0x210] ss:$8 sps:$4 sm:$0xff]  }
  0x36   : > { %632 = vmatprep.subr.bf16.mxu0 %v1429_v28  ;;  %v1498_v21 = vld [vmem:[%s1658_s11 + $0x224] ss:$8 sps:$4 sm:$0xff]   ;;  %v1496_v22 = vld [vmem:[%s1658_s11 + $0x220] ss:$8 sps:$4 sm:$0xff]   ;;  %v1501_v23 = vld [vmem:[%s1658_s11 + $0x234] ss:$8 sps:$4 sm:$0xff]  }
  0x37   : > { %v1499_v24 = vld [vmem:[%s1658_s11 + $0x230] ss:$8 sps:$4 sm:$0xff]   ;;  %v1504_v25 = vld [vmem:[%s1658_s11 + $0x244] ss:$8 sps:$4 sm:$0xff]   ;;  %v1502_v26 = vld [vmem:[%s1658_s11 + $0x240] ss:$8 sps:$4 sm:$0xff]  }
  0x38   : > { %366 = vmatpush1.bf16.msra.mxu1 %v1431_v29  ;;  %v1505_v27 = vld [vmem:[%s1658_s11 + $0x250] ss:$8 sps:$4 sm:$0xff]   ;;  %v1510_v28 = vld [vmem:[%s1658_s11 + $0x264] ss:$8 sps:$4 sm:$0xff]   ;;  %v1508_v29 = vld [vmem:[%s1658_s11 + $0x260] ss:$8 sps:$4 sm:$0xff]  }
  0x39   : > { %633 = vmatpush1.bf16.msra.mxu0 %v1432_v30  ;;  %367 = vmatprep.subr.bf16.mxu1 %v1433_v32  ;;  %v1513_v30 = vld [vmem:[%s1658_s11 + $0x274] ss:$8 sps:$4 sm:$0xff]   ;;  %v1514_v31 = vld [vmem:[%s1643_s30] ss:$0 sps:$4 sm:$0x44]  }
  0x3a   : > { %634 = vmatprep.subr.bf16.mxu0 %v1435_v33  ;;  %v1511_v32 = vld [vmem:[%s1658_s11 + $0x270] ss:$8 sps:$4 sm:$0xff]   ;;  %v841_v33 = vrot.slane %v1514_v31, 2  ;;  %v1573_v38 = vmov 1983009808  }
  0x3c   : > { %368 = vmatpush1.bf16.msra.mxu1 %v1437_v36 }
  0x3d   : > { %635 = vmatpush1.bf16.msra.mxu0 %v1438_v37  ;;  %474 = vmatprep.subr.bf16.mxu1 %v1441_v39  ;;  %v971_v39 = vunpack.c.l.s4 %v1573_v38 }
  0x3e   : > { %775 = vmatprep.subr.bf16.mxu0 %v1444_v40  ;;  %v973_v40 = vlaneseq }
  0x3f   : > { %386 = vmatmul.mubr.bf16.vlgmr.msra.gmra.mrb[0].mxu1 %v271_v43 }
  0x40   : > { %653 = vmatmul.mubr.bf16.vlgmr.msra.gmra.mrb[0].mxu0 %v538_v44  ;;  %475 = vmatpush1.bf16.msra.mxu1 %v1439_v41  ;;  %v972_v41 = vunpack.c.0.s8 %v971_v39 }
  0x41   : > { %776 = vmatpush1.bf16.msra.mxu0 %v1442_v42  ;;  %476 = vmatprep.subr.bf16.mxu1 %v1449_v45  ;;  %v974_v42 = vshrl.u32 %v973_v40, 7 }
  0x42   : > { %777 = vmatprep.subr.bf16.mxu0 %v1452_v46  ;;  %506 = vmatprep.mubr.bf16.mxu1 %v1572_v1 }
  0x43   : > { %807 = vmatprep.mubr.bf16.mxu0 %v1572_v1 }
  0x44   : > { %477 = vmatpush1.bf16.msra.mxu1 %v1447_v47  ;;  %v975_v47 = vsub.s32 %v972_v41, %v974_v42 }
  0x45   : > { %778 = vmatpush1.bf16.msra.mxu0 %v1450_v48  ;;  %478 = vmatprep.subr.bf16.mxu1 %v1455_v49 }
  0x46   : > { %779 = vmatprep.subr.bf16.mxu0 %v1458_v50 }
  0x48   : > { %479 = vmatpush1.bf16.msra.mxu1 %v1453_v51  ;;  %v966_v51 = vld [vmem:[#allocation2] sm:$0xf] }
  0x49   : > { %780 = vmatpush1.bf16.msra.mxu0 %v1456_v52  ;;  %480 = vmatprep.subr.bf16.mxu1 %v1461_v53 }
  0x4a   : > { %781 = vmatprep.subr.bf16.mxu0 %v1464_v54  ;;  %v985_v54 = vld [vmem:[%s1780_s2] sm:$0x3] (!%p1310_p10) }
  0x4c   : > { %481 = vmatpush1.bf16.msra.mxu1 %v1459_v55  ;;  %v989_v55 = vsub.s32 (!%p1310_p10), 0, %v974_v42 }
  0x4d   : > { %782 = vmatpush1.bf16.msra.mxu0 %v1462_v56  ;;  %482 = vmatprep.subr.bf16.mxu1 %v1467_v57  ;;  %v993_v56 = vsub.s32 (!%p1310_p10), 1, %v974_v42 }
  0x4e   : > { %783 = vmatprep.subr.bf16.mxu0 %v1470_v58  ;;  %v990_v57 = vrot.slane (!%p1310_p10), %v985_v54, %v989_v55 }
  0x4f   : > { %v994_v58 = vrot.slane (!%p1310_p10), %v985_v54, %v993_v56 }
  0x50   : > { %483 = vmatpush1.bf16.msra.mxu1 %v1465_v59 }
  0x51   : > { %784 = vmatpush1.bf16.msra.mxu0 %v1468_v60  ;;  %484 = vmatprep.subr.bf16.mxu1 %v1473_v61  ;;  %v995_v59 = vcombine.low (!%p1310_p10), %v990_v57, %v994_v58 }
  0x52   : > { %785 = vmatprep.subr.bf16.mxu0 %v1476_v62  ;;  %v1574_v62 = vmov (!%p1310_p10), 1966171168  }
  0x53   : > { %v1002_v61 = vrot.slane (!%p1310_p10), %v995_v59, %v975_v47 }
  0x54   : > { %485 = vmatpush1.bf16.msra.mxu1 %v1471_v63  ;;  %v1023_v63 = vunpack.c.l.s4 (!%p1310_p10), %v1574_v62 }
  0x55   : > { %786 = vmatpush1.bf16.msra.mxu0 %v1474_v2  ;;  %486 = vmatprep.subr.bf16.mxu1 %v1479_v3 }
  0x56   : > { %787 = vmatprep.subr.bf16.mxu0 %v1482_v4  ;;  %v1024_v3 = vunpack.c.0.s8 (!%p1310_p10), %v1023_v63 }
  0x58   : > { %487 = vmatpush1.bf16.msra.mxu1 %v1477_v7  ;;  %v1027_v6 = vsub.s32 (!%p1310_p10), %v1024_v3, %v974_v42 }
  0x59   : > { %788 = vmatpush1.bf16.msra.mxu0 %v1480_v8  ;;  %488 = vmatprep.subr.bf16.mxu1 %v1485_v9 }
  0x5a   : > { %789 = vmatprep.subr.bf16.mxu0 %v1488_v10 }
  0x5c   : > { %489 = vmatpush1.bf16.msra.mxu1 %v1483_v13 }
  0x5d   : > { %790 = vmatpush1.bf16.msra.mxu0 %v1486_v14 }
  0x5e   : > { %923 = vmatprep.subr.bf16.mxu0 %v1491_v15 }
  0x5f   : > { %507 = vmatmul.mubr.bf16.vlgmr.msra.gmra.mrb[0].mxu1 %v222_v17 }
  0x60   : > { %808 = vmatmul.mubr.bf16.vlgmr.msra.gmra.mrb[0].mxu0 %v693_v16 }
  0x61   : > { %924 = vmatpush1.bf16.msra.mxu0 %v1489_v18  ;;  %955 = vmatprep.mubr.bf16.mxu0 %v1572_v1  ;;  %v1507_v1 = vld [vmem:[%s1658_s11 + $0x254] ss:$8 sps:$4 sm:$0xff]  }
  0x62   : > { %925 = vmatprep.subr.bf16.mxu0 %v1495_v19 }
  0x65   : > { %926 = vmatpush1.bf16.msra.mxu0 %v1493_v20 }
  0x66   : > { %927 = vmatprep.subr.bf16.mxu0 %v1498_v21 }
  0x69   : > { %928 = vmatpush1.bf16.msra.mxu0 %v1496_v22 }
  0x6a   : > { %929 = vmatprep.subr.bf16.mxu0 %v1501_v23 }
  0x6d   : > { %930 = vmatpush1.bf16.msra.mxu0 %v1499_v24 }
  0x6e   : > { %931 = vmatprep.subr.bf16.mxu0 %v1504_v25 }
  0x71   : > { %932 = vmatpush1.bf16.msra.mxu0 %v1502_v26 }
  0x72   : > { %933 = vmatprep.subr.bf16.mxu0 %v1507_v1 }
  0x75   : > { %934 = vmatpush1.bf16.msra.mxu0 %v1505_v27 }
  0x76   : > { %935 = vmatprep.subr.bf16.mxu0 %v1510_v28 }
  0x79   : > { %936 = vmatpush1.bf16.msra.mxu0 %v1508_v29 }
  0x7a   : > { %937 = vmatprep.subr.bf16.mxu0 %v1513_v30 }
  0x7d   : > { %938 = vmatpush1.bf16.msra.mxu0 %v1511_v32 }
  0x80   : > { %956 = vmatmul.mubr.bf16.vlgmr.msra.gmra.mrb[0].mxu0 %v841_v33 }
 0x132   : > { %v508_v34 = vpop.f32.mrb[0].mxu1 }
 0x133   : > { %v510_v35 = vpop.f32.mrb[1].mxu1 }
 0x134   : > { %v512_v36 = vpop.f32.mrb[2].mxu1 }
 0x135   : > { %v513_v37 = vpop.f32.mrb[3].mxu1 }
 0x153   : > { %v957_v43 = vpop.f32.mrb[0].mxu0 }
 0x154   : > { %v1316_v44 = vadd.f32 %v957_v43, %v508_v34  ;;  %v959_v45 = vpop.f32.mrb[1].mxu0 }
 0x155   : > { %v1317_v46 = vadd.f32 %v959_v45, %v510_v35  ;;  %v961_v48 = vpop.f32.mrb[2].mxu0 }
 0x156   : > { %v962_v49 = vpop.f32.mrb[3].mxu0 }
 0x157   : > { %v969_v50 = vcombine.low %v1316_v44, %v1317_v46  ;;  %983 = sbr.rel (%p1310_p10) target bundleno = 370 (0x172), region = 40 }
 0x159   : > { %v976_v52 = vrot.slane %v969_v50, %v975_v47 }
 0x15b   : > { %v978_v53 = vadd.f32 %v976_v52, %v966_v51 }
 0x15d   : > { %979 = vst [vmem:[#allocation2] sm:$0xf] %v978_v53 }
 0x164   : > { %v984_v60 = vld [vmem:[#allocation2] sm:$0xf] }
 0x165   : > { %v1004_v0 = vadd.f32 %v1002_v61, %v984_v60 }
 0x167   : > { %v1005_v2 = vmax.f32 %v1004_v0, 0.0 }
 0x169   : > { %v1013_v4 = vrot.slane %v1005_v2, %v975_v47 }
 0x16b   : > { %v1014_v5 = vcombine.high %v1013_v4, %v1013_v4 }
 0x16d   : > { %v1311_v7 = vpack.c.bf16 %v1014_v5, %v1013_v4 }
 0x16f   : > { %v1028_v8 = vrot.slane %v1311_v7, %v1027_v6 }
 0x171   : > { %1312 = vst.sshfl [vmem:[%s215_s7] sm:$0x5 pattern:$0x73625140] %v1028_v8 }
 0x172 PF: > { %s13_s18 = sadd.s32 1, %s1569_s18   ;;  %s1782_s12 = smov %s1557_s15 }
 0x173   : > { %p10_p11 = scmp.ge.s32.totalorder %s13_s18, 22   ;;  %s1783_s13 = smov %s1561_s16 }
 0x174   : > { %s1784_s14 = smov %s1565_s17  ;;  %s1785_s15 = smov %s1789_s19 }
 0x175   : > { %s1786_s16 = smov %s1793_s20  ;;  %s1787_s17 = smov %s1797_s21 }
 0x176   :  { %12 = sbr.rel (!%p10_p11) target bundleno = 4 (0x4), region = 75 }

// kernel: rpn_head_forward.21
= control target key start
LH: loop header
LB: loop body
LE: loop exit
PB: predicated region body
PF: predicated region fallthrough
CT: control target
= control target key end

     0   :  { %s712_s12 = smov 0   ;;  %s714_s13 = smov 0   ;;  %s817_s0 = inlined_call_operand.vmem [shape: bf16[2,2,2,256], index: 0, kind: input, shape index: {}]   ;;  %s818_s1 = inlined_call_operand.vmem [shape: bf16[1,1,256,128], index: 1, kind: input, shape index: {}]   ;;  %s819_s2 = inlined_call_operand.vmem [shape: f32[1,128], index: 2, kind: input, shape index: {}]   ;;  %s820_s3 = inlined_call_operand.vmem [shape: f32[2,2,2,128], index: 3, kind: output, shape index: {}]  }
   0x1   :  { %s716_s14 = smov 0   ;;  %s718_s15 = smov 0  }
   0x2   :  { %s720_s16 = smov 0  }
   0x3 LB: > { %s28_s17 = sadd.s32 1, %s680_s14  ;;  %s32_s18 = sadd.s32 1, %s684_s15  ;;  %s688_s16 = sphi %s720_s16, %s13_s16   ;;  %s684_s15 = sphi %s718_s15, %s824_s15   ;;  %s680_s14 = sphi %s716_s14, %s823_s14   ;;  %s676_s13 = sphi %s714_s13, %s822_s13   ;;  %s672_s12 = sphi %s712_s12, %s821_s12  }
   0x4   : > { %p30_p0 = scmp.ge.s32.totalorder %s28_s17, 2  ;;  %p540_p1 = scmp.ge.s32.totalorder %s688_s16, 1 }
   0x5   : > { %p167_p2 = scmp.lt.s32.totalorder %s688_s16, 5 }
   0x6   : > { %s826_s17 = smov (%p30_p0, %s28_s17), 0  ;;  %s828_s18 = smov (!%p30_p0, %s32_s18), %s684_s15 }
   0x7   : > { %p168_p3 = pnand %p540_p1, %p167_p2  ;;  %p34_p4 = scmp.ge.s32.totalorder %s828_s18, 2 }
   0x8   : > { %v630_v0 = vld [vmem:[%s818_s1 + $0x40] sm:$0xff] (!%p168_p3)   ;;  %p199_p5 = scmp.lt.s32.totalorder (!%p168_p3), %s676_s13, 1  ;;  %p201_p6 = scmp.lt.s32.totalorder (!%p168_p3), %s672_s12, 1  ;;  %v632_v2 = vld [vmem:[%s818_s1 + $0x48] sm:$0xff] (!%p168_p3)   ;;  %v634_v4 = vld [vmem:[%s818_s1 + $0x50] sm:$0xff] (!%p168_p3)   ;;  %v270_v9 = vlaneseq (!%p168_p3)  ;;  %v691_v26 = vmov (!%p168_p3), 0.0  }
   0x9   : > { %s830_s18 = smov (%p34_p4, %s828_s18), 0  ;;  %171 = sbr.rel (%p168_p3) target bundleno = 297 (0x129), region = 32 }
   0xa   : > { %v631_v1 = vld [vmem:[%s818_s1] sm:$0xff] (!%p168_p3)   ;;  %566 = vmatprep.subr.bf16.mxu0 (!%p168_p3), %v630_v0  ;;  %v633_v3 = vld [vmem:[%s818_s1 + $0x8] sm:$0xff] (!%p168_p3)   ;;  %v635_v5 = vld [vmem:[%s818_s1 + $0x10] sm:$0xff] (!%p168_p3)   ;;  %v690_v13 = vmov (!%p168_p3), 1966171168   ;;  %v271_v15 = vshrl.u32 (!%p168_p3), %v270_v9, 7 }
   0xb   : > { %567 = vmatpush3.bf16.msra.mxu0 (!%p168_p3), %v631_v1  ;;  %v636_v6 = vld [vmem:[%s818_s1 + $0x58] sm:$0xff] (!%p168_p3)   ;;  %v638_v8 = vld [vmem:[%s818_s1 + $0x60] sm:$0xff] (!%p168_p3)   ;;  %v640_v11 = vld [vmem:[%s818_s1 + $0x68] sm:$0xff] (!%p168_p3)   ;;  %v268_v14 = vunpack.c.l.s4 (!%p168_p3), %v690_v13  ;;  %221 = vst [vmem:[#allocation2] sm:$0x3] (!%p168_p3), %v691_v26  ;;  %v435_v40 = vand.u32 (!%p168_p3), 127, %v270_v9 }
   0xc   : > { %568 = vmatprep.subr.bf16.mxu0 (!%p168_p3), %v632_v2  ;;  %v637_v7 = vld [vmem:[%s818_s1 + $0x18] sm:$0xff] (!%p168_p3)   ;;  %v639_v10 = vld [vmem:[%s818_s1 + $0x20] sm:$0xff] (!%p168_p3)   ;;  %v641_v16 = vld [vmem:[%s818_s1 + $0x28] sm:$0xff] (!%p168_p3)  }
   0xd   : > { %v269_v18 = vunpack.c.0.s8 (!%p168_p3), %v268_v14  ;;  %v642_v19 = vld [vmem:[%s818_s1 + $0x70] sm:$0xff] (!%p168_p3)   ;;  %v644_v23 = vld [vmem:[%s818_s1 + $0x78] sm:$0xff] (!%p168_p3)   ;;  %v562_v34 = vld [vmem:[%s819_s2] ss:$0 sm:$0xff] (!%p168_p3)  ;;  %vm436_vm0 = vcmp.eq.s32.totalorder (!%p168_p3), %v435_v40, 0 }
   0xe   : > { %v643_v21 = vld [vmem:[%s818_s1 + $0x30] sm:$0xff] (!%p168_p3)   ;;  %v645_v24 = vld [vmem:[%s818_s1 + $0x38] sm:$0xff] (!%p168_p3)  }
   0xf   : > { %569 = vmatpush3.bf16.msra.mxu0 (!%p168_p3), %v633_v3  ;;  %v272_v20 = vsub.s32 (!%p168_p3), %v269_v18, %v271_v15 }
  0x10   : > { %s832_s13 = smov (!%p199_p5, %s676_s13), 1  ;;  %s834_s12 = smov (!%p201_p6, %s672_s12), 1  ;;  %570 = vmatprep.subr.bf16.mxu0 %v634_v4 }
  0x11   : > { %s542_s29 = sshll.u32 %s832_s13, 2  ;;  %s543_s30 = sshll.u32 %s832_s13, 1 }
  0x12   : > { %s541_s6 = sshll.u32 %s834_s12, 1  ;;  %s760_s7 = sadd.s32 %s543_s30, %s834_s12  ;;  %v419_v29 = vld [vmem:[#allocation2] sm:$0x3] }
  0x13   : > { %s205_s10 = sadd.s32 %s542_s29, %s541_s6  ;;  %571 = vmatpush3.bf16.msra.mxu0 %v635_v5  ;;  %s544_s13 = sshll.u32 %s760_s7, 1 }
  0x14   : > { %572 = vmatprep.subr.bf16.mxu0 %v636_v6  ;;  %s206_s12 = scalar_lea.vmem %s817_s0, %s205_s10  ;;  %s215_s22 = scalar_lea.vmem %s820_s3, %s544_s13 }
  0x15   : > { %v545_v12 = vld.sshfl [vmem:[%s206_s12] sm:$0x11 pattern:$0x75316420] }
  0x16   : > { %v266_v17 = vcombine.high %v545_v12, %v545_v12  ;;  %v273_v25 = vrot.slane %v545_v12, %v272_v20 }
  0x17   : > { %573 = vmatpush3.bf16.msra.mxu0 %v637_v7 }
  0x18   : > { %574 = vmatprep.subr.bf16.mxu0 %v638_v8  ;;  %v280_v22 = vrot.slane %v266_v17, %v272_v20 }
  0x1a   : > { %411 = vmatprep.mubr.bf16.mxu0 %v280_v22 }
  0x1b   : > { %575 = vmatpush3.bf16.msra.mxu0 %v639_v10 }
  0x1c   : > { %576 = vmatprep.subr.bf16.mxu0 %v640_v11 }
  0x1f   : > { %577 = vmatpush3.bf16.msra.mxu0 %v641_v16 }
  0x20   : > { %578 = vmatprep.subr.bf16.mxu0 %v642_v19 }
  0x23   : > { %579 = vmatpush3.bf16.msra.mxu0 %v643_v21 }
  0x24   : > { %580 = vmatprep.subr.bf16.mxu0 %v644_v23 }
  0x27   : > { %581 = vmatpush3.bf16.msra.mxu0 %v645_v24 }
  0x2a   : > { %412 = vmatmul.mubr.bf16.vlgmr.msra.gmra.mrb[0].mxu0 %v273_v25 }
  0xfd   : > { %v582_v27 = vpop.f32.mrb[0].mxu0 }
  0xfe   : > { %v583_v28 = vpop.f32.mrb[1].mxu0 }
  0xff   : > { %v584_v30 = vadd.f32 %v583_v28, %v582_v27  ;;  %v585_v31 = vpop.f32.mrb[2].mxu0 }
 0x100   : > { %v586_v32 = vpop.f32.mrb[3].mxu0 }
 0x101   : > { %v420_v33 = vadd.f32 %v584_v30, %v419_v29 }
 0x103   : > { %421 = vst [vmem:[#allocation2] sm:$0x3] %v420_v33 }
 0x10a   : > { %v425_v35 = vld [vmem:[#allocation2] sm:$0x3] }
 0x10b   : > { %v433_v36 = vadd.f32 %v562_v34, %v425_v35 }
 0x10d   : > { %v563_v37 = vmul.f32 -1.442695, %v433_v36 }
 0x10f   : > { %646 = vpow2.f32 %v563_v37 }
 0x119   : > { %v647_v38 = vpop.eup %646 }
 0x11a   : > { %v440_v39 = vadd.f32 1.0, %v647_v38 }
 0x11c   : > { %648 = vrcp.f32 %v440_v39 }
 0x126   : > { %v649_v41 = vpop.eup %648 }
 0x127   : > { %v443_v42 = vsel %vm436_vm0, %v649_v41, %v433_v36 }
 0x128   : > { %444 = vst [vmem:[%s215_s22] sm:$0x3] %v443_v42 }
 0x129 PF: > { %s13_s16 = sadd.s32 1, %s688_s16   ;;  %s821_s12 = smov %s680_s14 }
 0x12a   : > { %p10_p7 = scmp.ge.s32.totalorder %s13_s16, 6   ;;  %s822_s13 = smov %s684_s15 }
 0x12b   : > { %s823_s14 = smov %s826_s17  ;;  %s824_s15 = smov %s830_s18 }
 0x12c   :  { %12 = sbr.rel (!%p10_p7) target bundleno = 3 (0x3), region = 71 }

// kernel: rpn_head_forward.20
= control target key start
LH: loop header
LB: loop body
LE: loop exit
PB: predicated region body
PF: predicated region fallthrough
CT: control target
= control target key end

     0   :  { %s1634_s12 = smov 0   ;;  %s1636_s13 = smov 0   ;;  %s1847_s0 = inlined_call_operand.vmem [shape: bf16[2,4,4,256], index: 0, kind: input, shape index: {}]   ;;  %s1848_s1 = inlined_call_operand.vmem [shape: bf16[3,3,256,256], index: 1, kind: input, shape index: {}]   ;;  %s1849_s2 = inlined_call_operand.vmem [shape: f32[1,256], index: 2, kind: input, shape index: {}]   ;;  %s1850_s3 = inlined_call_operand.vmem [shape: bf16[2,2,2,256], index: 3, kind: output, shape index: {}]  }
   0x1   :  { %s1638_s14 = smov 0   ;;  %s1640_s15 = smov 0  }
   0x2   :  { %s1642_s16 = smov 0   ;;  %s1644_s17 = smov 0  }
   0x3   :  { %s1646_s18 = smov 0  }
   0x4 LB: > { %s25_s19 = sadd.s32 1, %s1597_s15  ;;  %s28_s20 = sadd.s32 1, %s1601_s16  ;;  %s1609_s18 = sphi %s1646_s18, %s13_s18   ;;  %s1605_s17 = sphi %s1644_s17, %s1856_s17   ;;  %s1601_s16 = sphi %s1642_s16, %s1855_s16   ;;  %s1597_s15 = sphi %s1640_s15, %s1854_s15   ;;  %s1593_s14 = sphi %s1638_s14, %s1853_s14   ;;  %s1589_s13 = sphi %s1636_s13, %s1852_s13   ;;  %s1585_s12 = sphi %s1634_s12, %s1851_s12  }
   0x5   : > { %p26_p0 = scmp.ge.s32.totalorder %s25_s19, 3  ;;  %p1167_p1 = scmp.ge.s32.totalorder %s1609_s18, 1 }
   0x6   : > { %p168_p2 = scmp.lt.s32.totalorder %s1609_s18, 13  ;;  %s32_s21 = sadd.s32 1, %s1605_s17 }
   0x7   : > { %s1858_s19 = smov (%p26_p0, %s25_s19), 0  ;;  %s1860_s20 = smov (!%p26_p0, %s28_s20), %s1601_s16 }
   0x8   : > { %p169_p3 = pnand %p1167_p1, %p168_p2  ;;  %p30_p4 = scmp.ge.s32.totalorder %s1860_s20, 2 }
   0x9   : > { %s200_s22 = sadd.s32 (!%p169_p3), %s1585_s12, %s1589_s13  ;;  %p201_p6 = scmp.lt.s32.totalorder (!%p169_p3), %s1593_s14, 1 }
   0xa   : > { %s1862_s20 = smov (%p30_p4, %s1860_s20), 0  ;;  %s1864_s21 = smov (!%p30_p4, %s32_s21), %s1605_s17 }
   0xb   : > { %p34_p5 = scmp.ge.s32.totalorder %s1864_s21, 2  ;;  %172 = sbr.rel (%p169_p3) target bundleno = 404 (0x194), region = 32 }
   0xc   : > { %p203_p7 = scmp.lt.s32.totalorder (!%p169_p3), %s200_s22, 3  ;;  %p213_p8 = scmp.lt.s32.totalorder (!%p169_p3), %s1589_s13, 1 }
   0xd   : > { %s1866_s21 = smov (%p34_p5, %s1864_s21), 0  ;;  %p1173_p9 = scmp.ne.s32.totalorder (!%p169_p3), %s1585_s12, 0 }
  0x12   : > { %s1868_s14 = smov (!%p201_p6, %s1593_s14), 1  ;;  %s1870_s22 = smov (!%p203_p7, %s200_s22), 3 }
  0x13   : > { %s1169_s23 = sshll.u32 %s1868_s14, 3  ;;  %s1168_s24 = sshll.u32 %s1870_s22, 1  ;;  %v1611_v0 = vmov (!%p1173_p9), 0.0  }
  0x14   : > { %s207_s25 = sadd.s32 %s1169_s23, %s1168_s24  ;;  %s1172_s30 = sshll.u32 %s1868_s14, 2  ;;  %223 = vst [vmem:[#allocation2] sm:$0xf] (!%p1173_p9), %v1611_v0 }
  0x15   : > { %s1170_s26 = sshll.u32 %s207_s25, 1  ;;  %s1872_s13 = smov (!%p213_p8, %s1589_s13), 1 }
  0x16   : > { %s1686_s29 = scalar_lea.vmem %s1847_s0, %s1170_s26  ;;  %s1171_s4 = sshll.u32 %s1872_s13, 1 }
  0x17   : > { %s1689_s5 = sadd.s32 %s1172_s30, %s1171_s4  ;;  %222 = sbr.rel (%p1173_p9) target bundleno = 30 (0x1e), region = 36 }
  0x18   : > { %s218_s8 = scalar_lea.vmem %s1850_s3, %s1689_s5 }
  0x1e PF: > { %s1345_s9 = smul.u32 768, %s1585_s12  ;;  %v1698_v1 = vld.sshfl [vmem:[%s1686_s29] sm:$0x11 pattern:$0x76325410]  ;;  %p1340_p10 = scmp.ne.s32.totalorder %s1585_s12, 2 }
  0x1f   : > { %v530_v2 = vcombine.high %v1698_v1, %v1698_v1  ;;  %v1703_v3 = vld.sshfl [vmem:[%s1686_s29] sm:$0x33 pattern:$0x76325410] }
  0x20   : > { %s1708_s13 = scalar_lea.vmem %s1848_s1, %s1345_s9  ;;  %v304_v4 = vcombine.high %v1703_v3, %v1703_v3  ;;  %v1761_v57 = vld.sshfl [vmem:[%s1686_s29] sm:$0x22 pattern:$0x76325410] }
  0x21   : > { %v1411_v5 = vld [vmem:[%s1708_s13 + $0x4] ss:$8 sps:$4 sm:$0xff]   ;;  %725 = vmatprep.mubr.bf16.mxu0 %v530_v2  ;;  %v1413_v6 = vld [vmem:[%s1708_s13] ss:$8 sps:$4 sm:$0xff]   ;;  %v1414_v9 = vld [vmem:[%s1708_s13 + $0x14] ss:$8 sps:$4 sm:$0xff]   ;;  %v778_v0 = vcombine.high %v1761_v57, %v1761_v57 }
  0x22   : > { %v313_v7 = vshrl.u32 %v304_v4, 16  ;;  %v315_v8 = vshll.u32 %v304_v4, 16  ;;  %693 = vmatprep.subr.bf16.mxu0 %v1411_v5  ;;  %v1416_v10 = vld [vmem:[%s1708_s13 + $0x10] ss:$8 sps:$4 sm:$0xff]   ;;  %v1417_v12 = vld [vmem:[%s1708_s13 + $0x24] ss:$8 sps:$4 sm:$0xff]  }
  0x23   : > { %694 = vmatpush1.bf16.msra.mxu0 %v1413_v6  ;;  %v1419_v14 = vld [vmem:[%s1708_s13 + $0x20] ss:$8 sps:$4 sm:$0xff]   ;;  %v1420_v15 = vld [vmem:[%s1708_s13 + $0x34] ss:$8 sps:$4 sm:$0xff]   ;;  %v1422_v16 = vld [vmem:[%s1708_s13 + $0x30] ss:$8 sps:$4 sm:$0xff]  }
  0x24   : > { %v317_v11 = vrot.slane %v315_v8, 1  ;;  %695 = vmatprep.subr.bf16.mxu0 %v1414_v9  ;;  %v1423_v17 = vld [vmem:[%s1708_s13 + $0x44] ss:$8 sps:$4 sm:$0xff]   ;;  %v1425_v18 = vld [vmem:[%s1708_s13 + $0x40] ss:$8 sps:$4 sm:$0xff]   ;;  %v780_v6 = vrot.slane %v778_v0, 1 }
  0x25   : > { %v1426_v19 = vld [vmem:[%s1708_s13 + $0x54] ss:$8 sps:$4 sm:$0xff]   ;;  %v1428_v20 = vld [vmem:[%s1708_s13 + $0x50] ss:$8 sps:$4 sm:$0xff]   ;;  %v1429_v21 = vld [vmem:[%s1708_s13 + $0x64] ss:$8 sps:$4 sm:$0xff]  }
  0x26   : > { %v318_v13 = vor.u32 %v317_v11, %v313_v7  ;;  %v1458_v22 = vld [vmem:[%s1708_s13 + $0x104] ss:$8 sps:$4 sm:$0xff]   ;;  %v1461_v23 = vld [vmem:[%s1708_s13 + $0x100] ss:$8 sps:$4 sm:$0xff]   ;;  %v1432_v25 = vld [vmem:[%s1708_s13 + $0x74] ss:$8 sps:$4 sm:$0xff]  }
  0x27   : > { %696 = vmatpush1.bf16.msra.mxu0 %v1416_v10  ;;  %v1431_v24 = vld [vmem:[%s1708_s13 + $0x60] ss:$8 sps:$4 sm:$0xff]   ;;  %481 = vmatprep.subr.bf16.mxu1 %v1458_v22  ;;  %v1465_v26 = vld [vmem:[%s1708_s13 + $0x114] ss:$8 sps:$4 sm:$0xff]   ;;  %v1467_v27 = vld [vmem:[%s1708_s13 + $0x110] ss:$8 sps:$4 sm:$0xff]  }
  0x28   : > { %513 = vmatprep.mubr.bf16.mxu1 %v318_v13  ;;  %697 = vmatprep.subr.bf16.mxu0 %v1417_v12  ;;  %v1434_v28 = vld [vmem:[%s1708_s13 + $0x70] ss:$8 sps:$4 sm:$0xff]   ;;  %v1435_v29 = vld [vmem:[%s1708_s13 + $0x84] ss:$8 sps:$4 sm:$0xff]   ;;  %v1473_v31 = vld [vmem:[%s1708_s13 + $0x120] ss:$8 sps:$4 sm:$0xff]  }
  0x29   : > { %482 = vmatpush1.bf16.msra.mxu1 %v1461_v23  ;;  %v1471_v30 = vld [vmem:[%s1708_s13 + $0x124] ss:$8 sps:$4 sm:$0xff]   ;;  %v1477_v32 = vld [vmem:[%s1708_s13 + $0x134] ss:$8 sps:$4 sm:$0xff]   ;;  %v1437_v33 = vld [vmem:[%s1708_s13 + $0x80] ss:$8 sps:$4 sm:$0xff]  }
  0x2a   : > { %483 = vmatprep.subr.bf16.mxu1 %v1465_v26  ;;  %v1438_v34 = vld [vmem:[%s1708_s13 + $0x94] ss:$8 sps:$4 sm:$0xff]   ;;  %v1479_v35 = vld [vmem:[%s1708_s13 + $0x130] ss:$8 sps:$4 sm:$0xff]   ;;  %v1483_v36 = vld [vmem:[%s1708_s13 + $0x144] ss:$8 sps:$4 sm:$0xff]  }
  0x2b   : > { %698 = vmatpush1.bf16.msra.mxu0 %v1419_v14  ;;  %v1440_v37 = vld [vmem:[%s1708_s13 + $0x90] ss:$8 sps:$4 sm:$0xff]   ;;  %v1441_v38 = vld [vmem:[%s1708_s13 + $0xa4] ss:$8 sps:$4 sm:$0xff]   ;;  %v1485_v39 = vld [vmem:[%s1708_s13 + $0x140] ss:$8 sps:$4 sm:$0xff]  }
  0x2c   : > { %699 = vmatprep.subr.bf16.mxu0 %v1420_v15  ;;  %v1489_v40 = vld [vmem:[%s1708_s13 + $0x154] ss:$8 sps:$4 sm:$0xff]   ;;  %v1443_v41 = vld [vmem:[%s1708_s13 + $0xa0] ss:$8 sps:$4 sm:$0xff]   ;;  %v1491_v43 = vld [vmem:[%s1708_s13 + $0x150] ss:$8 sps:$4 sm:$0xff]  }
  0x2d   : > { %484 = vmatpush1.bf16.msra.mxu1 %v1467_v27  ;;  %v1444_v42 = vld [vmem:[%s1708_s13 + $0xb4] ss:$8 sps:$4 sm:$0xff]   ;;  %v1495_v44 = vld [vmem:[%s1708_s13 + $0x164] ss:$8 sps:$4 sm:$0xff]   ;;  %v1446_v45 = vld [vmem:[%s1708_s13 + $0xb0] ss:$8 sps:$4 sm:$0xff]  }
  0x2e   : > { %485 = vmatprep.subr.bf16.mxu1 %v1471_v30  ;;  %v1447_v46 = vld [vmem:[%s1708_s13 + $0xc4] ss:$8 sps:$4 sm:$0xff]   ;;  %v1497_v47 = vld [vmem:[%s1708_s13 + $0x160] ss:$8 sps:$4 sm:$0xff]   ;;  %v1501_v48 = vld [vmem:[%s1708_s13 + $0x174] ss:$8 sps:$4 sm:$0xff]  }
  0x2f   : > { %700 = vmatpush1.bf16.msra.mxu0 %v1422_v16  ;;  %v1449_v49 = vld [vmem:[%s1708_s13 + $0xc0] ss:$8 sps:$4 sm:$0xff]   ;;  %v1450_v50 = vld [vmem:[%s1708_s13 + $0xd4] ss:$8 sps:$4 sm:$0xff]   ;;  %v1503_v51 = vld [vmem:[%s1708_s13 + $0x170] ss:$8 sps:$4 sm:$0xff]  }
  0x30   : > { %701 = vmatprep.subr.bf16.mxu0 %v1423_v17  ;;  %v1507_v52 = vld [vmem:[%s1708_s13 + $0x184] ss:$8 sps:$4 sm:$0xff]   ;;  %v1452_v53 = vld [vmem:[%s1708_s13 + $0xd0] ss:$8 sps:$4 sm:$0xff]   ;;  %v1509_v55 = vld [vmem:[%s1708_s13 + $0x180] ss:$8 sps:$4 sm:$0xff]  }
  0x31   : > { %486 = vmatpush1.bf16.msra.mxu1 %v1473_v31  ;;  %v1453_v54 = vld [vmem:[%s1708_s13 + $0xe4] ss:$8 sps:$4 sm:$0xff]   ;;  %v1513_v56 = vld [vmem:[%s1708_s13 + $0x194] ss:$8 sps:$4 sm:$0xff]   ;;  %v1455_v58 = vld [vmem:[%s1708_s13 + $0xe0] ss:$8 sps:$4 sm:$0xff]  }
  0x32   : > { %487 = vmatprep.subr.bf16.mxu1 %v1477_v32  ;;  %v1456_v59 = vld [vmem:[%s1708_s13 + $0xf4] ss:$8 sps:$4 sm:$0xff]   ;;  %v1515_v60 = vld [vmem:[%s1708_s13 + $0x190] ss:$8 sps:$4 sm:$0xff]   ;;  %v1519_v61 = vld [vmem:[%s1708_s13 + $0x1a4] ss:$8 sps:$4 sm:$0xff]  }
  0x33   : > { %702 = vmatpush1.bf16.msra.mxu0 %v1425_v18  ;;  %v1460_v62 = vld [vmem:[%s1708_s13 + $0xf0] ss:$8 sps:$4 sm:$0xff]   ;;  %v1464_v63 = vld [vmem:[%s1708_s13 + $0x204] ss:$8 sps:$4 sm:$0xff]   ;;  %v1521_v2 = vld [vmem:[%s1708_s13 + $0x1a0] ss:$8 sps:$4 sm:$0xff]  }
  0x34   : > { %703 = vmatprep.subr.bf16.mxu0 %v1426_v19  ;;  %v1525_v4 = vld [vmem:[%s1708_s13 + $0x1b4] ss:$8 sps:$4 sm:$0xff]   ;;  %v1462_v5 = vld [vmem:[%s1708_s13 + $0x200] ss:$8 sps:$4 sm:$0xff]   ;;  %v1527_v8 = vld [vmem:[%s1708_s13 + $0x1b0] ss:$8 sps:$4 sm:$0xff]  }
  0x35   : > { %488 = vmatpush1.bf16.msra.mxu1 %v1479_v35  ;;  %v1470_v7 = vld [vmem:[%s1708_s13 + $0x214] ss:$8 sps:$4 sm:$0xff]   ;;  %v1531_v9 = vld [vmem:[%s1708_s13 + $0x1c4] ss:$8 sps:$4 sm:$0xff]   ;;  %v1468_v10 = vld [vmem:[%s1708_s13 + $0x210] ss:$8 sps:$4 sm:$0xff]  }
  0x36   : > { %489 = vmatprep.subr.bf16.mxu1 %v1483_v36  ;;  %v1476_v11 = vld [vmem:[%s1708_s13 + $0x224] ss:$8 sps:$4 sm:$0xff]   ;;  %v1533_v12 = vld [vmem:[%s1708_s13 + $0x1c0] ss:$8 sps:$4 sm:$0xff]   ;;  %v1537_v13 = vld [vmem:[%s1708_s13 + $0x1d4] ss:$8 sps:$4 sm:$0xff]  }
  0x37   : > { %704 = vmatpush1.bf16.msra.mxu0 %v1428_v20  ;;  %v1474_v14 = vld [vmem:[%s1708_s13 + $0x220] ss:$8 sps:$4 sm:$0xff]   ;;  %v1482_v15 = vld [vmem:[%s1708_s13 + $0x234] ss:$8 sps:$4 sm:$0xff]   ;;  %v1543_v16 = vld [vmem:[%s1708_s13 + $0x1e4] ss:$8 sps:$4 sm:$0xff]  }
  0x38   : > { %705 = vmatprep.subr.bf16.mxu0 %v1429_v21  ;;  %v1480_v17 = vld [vmem:[%s1708_s13 + $0x230] ss:$8 sps:$4 sm:$0xff]   ;;  %v308_v18 = vshll.u32 %v1703_v3, 16  ;;  %v1488_v19 = vld [vmem:[%s1708_s13 + $0x244] ss:$8 sps:$4 sm:$0xff]   ;;  %v306_v23 = vshrl.u32 %v1703_v3, 16 }
  0x39   : > { %490 = vmatpush1.bf16.msra.mxu1 %v1485_v39  ;;  %v1545_v20 = vld [vmem:[%s1708_s13 + $0x1e0] ss:$8 sps:$4 sm:$0xff]   ;;  %v1549_v21 = vld [vmem:[%s1708_s13 + $0x1f4] ss:$8 sps:$4 sm:$0xff]   ;;  %v1551_v26 = vld [vmem:[%s1708_s13 + $0x1f0] ss:$8 sps:$4 sm:$0xff]  }
  0x3a   : > { %491 = vmatprep.subr.bf16.mxu1 %v1489_v40  ;;  %v1486_v22 = vld [vmem:[%s1708_s13 + $0x240] ss:$8 sps:$4 sm:$0xff]   ;;  %v1492_v27 = vld [vmem:[%s1708_s13 + $0x250] ss:$8 sps:$4 sm:$0xff]   ;;  %v1506_v30 = vld [vmem:[%s1708_s13 + $0x274] ss:$8 sps:$4 sm:$0xff]  }
  0x3b   : > { %706 = vmatpush1.bf16.msra.mxu0 %v1431_v24  ;;  %v310_v24 = vrot.slane %v308_v18, 1  ;;  %v1498_v3 = vld [vmem:[%s1708_s13 + $0x260] ss:$8 sps:$4 sm:$0xff]   ;;  %v1504_v31 = vld [vmem:[%s1708_s13 + $0x270] ss:$8 sps:$4 sm:$0xff]  }
  0x3c   : > { %707 = vmatprep.subr.bf16.mxu0 %v1432_v25  ;;  %v1494_v25 = vld [vmem:[%s1708_s13 + $0x254] ss:$8 sps:$4 sm:$0xff]   ;;  %v1512_v32 = vld [vmem:[%s1708_s13 + $0x284] ss:$8 sps:$4 sm:$0xff]   ;;  %v1516_v35 = vld [vmem:[%s1708_s13 + $0x290] ss:$8 sps:$4 sm:$0xff]  }
  0x3d   : > { %492 = vmatpush1.bf16.msra.mxu1 %v1491_v43  ;;  %v1524_v36 = vld [vmem:[%s1708_s13 + $0x2a4] ss:$8 sps:$4 sm:$0xff]   ;;  %v1528_v39 = vld [vmem:[%s1708_s13 + $0x2b0] ss:$8 sps:$4 sm:$0xff]  }
  0x3e   : > { %493 = vmatprep.subr.bf16.mxu1 %v1495_v44  ;;  %v1536_v40 = vld [vmem:[%s1708_s13 + $0x2c4] ss:$8 sps:$4 sm:$0xff]   ;;  %v1540_v43 = vld [vmem:[%s1708_s13 + $0x2d0] ss:$8 sps:$4 sm:$0xff]  }
  0x3f   : > { %708 = vmatpush1.bf16.msra.mxu0 %v1434_v28  ;;  %v311_v28 = vor.u32 %v310_v24, %v306_v23  ;;  %v1548_v44 = vld [vmem:[%s1708_s13 + $0x2e4] ss:$8 sps:$4 sm:$0xff]  }
  0x40   : > { %709 = vmatprep.subr.bf16.mxu0 %v1435_v29  ;;  %v1500_v29 = vld [vmem:[%s1708_s13 + $0x264] ss:$8 sps:$4 sm:$0xff]  }
  0x41   : > { %494 = vmatpush1.bf16.msra.mxu1 %v1497_v47  ;;  %v1552_v47 = vld [vmem:[%s1708_s13 + $0x2f0] ss:$8 sps:$4 sm:$0xff]  }
  0x42   : > { %495 = vmatprep.subr.bf16.mxu1 %v1501_v48  ;;  %v779_v48 = vrot.slane %v1761_v57, 1  ;;  %v986_v57 = vld [vmem:[#allocation2] sm:$0xf] }
  0x43   : > { %710 = vmatpush1.bf16.msra.mxu0 %v1437_v33  ;;  %v1510_v33 = vld [vmem:[%s1708_s13 + $0x280] ss:$8 sps:$4 sm:$0xff]  }
  0x44   : > { %711 = vmatprep.subr.bf16.mxu0 %v1438_v34  ;;  %v1518_v34 = vld [vmem:[%s1708_s13 + $0x294] ss:$8 sps:$4 sm:$0xff]  }
  0x45   : > { %496 = vmatpush1.bf16.msra.mxu1 %v1503_v51 }
  0x46   : > { %497 = vmatprep.subr.bf16.mxu1 %v1507_v52 }
  0x47   : > { %712 = vmatpush1.bf16.msra.mxu0 %v1440_v37  ;;  %v1522_v37 = vld [vmem:[%s1708_s13 + $0x2a0] ss:$8 sps:$4 sm:$0xff]  }
  0x48   : > { %713 = vmatprep.subr.bf16.mxu0 %v1441_v38  ;;  %v1530_v38 = vld [vmem:[%s1708_s13 + $0x2b4] ss:$8 sps:$4 sm:$0xff]  }
  0x49   : > { %498 = vmatpush1.bf16.msra.mxu1 %v1509_v55  ;;  %v993_v55 = vlaneseq }
  0x4a   : > { %499 = vmatprep.subr.bf16.mxu1 %v1513_v56 }
  0x4b   : > { %714 = vmatpush1.bf16.msra.mxu0 %v1443_v41  ;;  %v1534_v41 = vld [vmem:[%s1708_s13 + $0x2c0] ss:$8 sps:$4 sm:$0xff]  }
  0x4c   : > { %715 = vmatprep.subr.bf16.mxu0 %v1444_v42  ;;  %v1542_v42 = vld [vmem:[%s1708_s13 + $0x2d4] ss:$8 sps:$4 sm:$0xff]  }
  0x4d   : > { %500 = vmatpush1.bf16.msra.mxu1 %v1515_v60 }
  0x4e   : > { %501 = vmatprep.subr.bf16.mxu1 %v1519_v61 }
  0x4f   : > { %716 = vmatpush1.bf16.msra.mxu0 %v1446_v45  ;;  %v1546_v45 = vld [vmem:[%s1708_s13 + $0x2e0] ss:$8 sps:$4 sm:$0xff]  }
  0x50   : > { %717 = vmatprep.subr.bf16.mxu0 %v1447_v46  ;;  %v1554_v46 = vld [vmem:[%s1708_s13 + $0x2f4] ss:$8 sps:$4 sm:$0xff]  }
  0x51   : > { %502 = vmatpush1.bf16.msra.mxu1 %v1521_v2 }
  0x52   : > { %503 = vmatprep.subr.bf16.mxu1 %v1525_v4 }
  0x53   : > { %718 = vmatpush1.bf16.msra.mxu0 %v1449_v49 }
  0x54   : > { %719 = vmatprep.subr.bf16.mxu0 %v1450_v50 }
  0x55   : > { %504 = vmatpush1.bf16.msra.mxu1 %v1527_v8 }
  0x56   : > { %505 = vmatprep.subr.bf16.mxu1 %v1531_v9 }
  0x57   : > { %720 = vmatpush1.bf16.msra.mxu0 %v1452_v53  ;;  %v1612_v53 = vmov 1983009808  }
  0x58   : > { %721 = vmatprep.subr.bf16.mxu0 %v1453_v54  ;;  %v991_v54 = vunpack.c.l.s4 %v1612_v53 }
  0x59   : > { %506 = vmatpush1.bf16.msra.mxu1 %v1533_v12 }
  0x5a   : > { %507 = vmatprep.subr.bf16.mxu1 %v1537_v13  ;;  %v992_v56 = vunpack.c.0.s8 %v991_v54 }
  0x5b   : > { %722 = vmatpush1.bf16.msra.mxu0 %v1455_v58  ;;  %v994_v58 = vshrl.u32 %v993_v55, 7 }
  0x5c   : > { %723 = vmatprep.subr.bf16.mxu0 %v1456_v59 }
  0x5d   : > { %v1009_v8 = vsub.s32 (!%p1340_p10), 0, %v994_v58  ;;  %v1013_v9 = vsub.s32 (!%p1340_p10), 1, %v994_v58 }
  0x5f   : > { %724 = vmatpush1.bf16.msra.mxu0 %v1460_v62 }
  0x60   : > { %943 = vmatprep.subr.bf16.mxu0 %v1464_v63  ;;  %v995_v63 = vsub.s32 %v992_v56, %v994_v58 }
  0x62   : > { %726 = vmatmul.mubr.bf16.vlgmr.msra.gmra.mrb[0].mxu0 %v1698_v1  ;;  %v1539_v1 = vld [vmem:[%s1708_s13 + $0x1d0] ss:$8 sps:$4 sm:$0xff]  }
  0x63   : > { %944 = vmatpush1.bf16.msra.mxu0 %v1462_v5  ;;  %975 = vmatprep.mubr.bf16.mxu0 %v780_v6 }
  0x64   : > { %945 = vmatprep.subr.bf16.mxu0 %v1470_v7  ;;  %508 = vmatpush1.bf16.msra.mxu1 %v1539_v1  ;;  %v1005_v7 = vld [vmem:[%s1849_s2] sm:$0x3] (!%p1340_p10) }
  0x65   : > { %509 = vmatprep.subr.bf16.mxu1 %v1543_v16 }
  0x67   : > { %946 = vmatpush1.bf16.msra.mxu0 %v1468_v10  ;;  %v1010_v10 = vrot.slane (!%p1340_p10), %v1005_v7, %v1009_v8 }
  0x68   : > { %947 = vmatprep.subr.bf16.mxu0 %v1476_v11  ;;  %510 = vmatpush1.bf16.msra.mxu1 %v1545_v20  ;;  %v1014_v11 = vrot.slane (!%p1340_p10), %v1005_v7, %v1013_v9 }
  0x69   : > { %511 = vmatprep.subr.bf16.mxu1 %v1549_v21 }
  0x6a   : > { %v1015_v12 = vcombine.low (!%p1340_p10), %v1010_v10, %v1014_v11 }
  0x6b   : > { %948 = vmatpush1.bf16.msra.mxu0 %v1474_v14 }
  0x6c   : > { %949 = vmatprep.subr.bf16.mxu0 %v1482_v15  ;;  %512 = vmatpush1.bf16.msra.mxu1 %v1551_v26  ;;  %v1022_v14 = vrot.slane (!%p1340_p10), %v1015_v12, %v995_v63  ;;  %v1613_v15 = vmov (!%p1340_p10), 1966171168  }
  0x6d   : > { %v1043_v1 = vunpack.c.l.s4 (!%p1340_p10), %v1613_v15 }
  0x6f   : > { %950 = vmatpush1.bf16.msra.mxu0 %v1480_v17  ;;  %514 = vmatmul.mubr.bf16.vlgmr.msra.gmra.mrb[0].mxu1 %v311_v28  ;;  %v1044_v18 = vunpack.c.0.s8 (!%p1340_p10), %v1043_v1 }
  0x70   : > { %951 = vmatprep.subr.bf16.mxu0 %v1488_v19 }
  0x71   : > { %v1047_v21 = vsub.s32 (!%p1340_p10), %v1044_v18, %v994_v58 }
  0x73   : > { %952 = vmatpush1.bf16.msra.mxu0 %v1486_v22 }
  0x74   : > { %953 = vmatprep.subr.bf16.mxu0 %v1494_v25 }
  0x77   : > { %954 = vmatpush1.bf16.msra.mxu0 %v1492_v27 }
  0x78   : > { %955 = vmatprep.subr.bf16.mxu0 %v1500_v29 }
  0x7b   : > { %956 = vmatpush1.bf16.msra.mxu0 %v1498_v3 }
  0x7c   : > { %957 = vmatprep.subr.bf16.mxu0 %v1506_v30 }
  0x7f   : > { %958 = vmatpush1.bf16.msra.mxu0 %v1504_v31 }
  0x80   : > { %959 = vmatprep.subr.bf16.mxu0 %v1512_v32 }
  0x83   : > { %960 = vmatpush1.bf16.msra.mxu0 %v1510_v33 }
  0x84   : > { %961 = vmatprep.subr.bf16.mxu0 %v1518_v34 }
  0x87   : > { %962 = vmatpush1.bf16.msra.mxu0 %v1516_v35 }
  0x88   : > { %963 = vmatprep.subr.bf16.mxu0 %v1524_v36 }
  0x8b   : > { %964 = vmatpush1.bf16.msra.mxu0 %v1522_v37 }
  0x8c   : > { %965 = vmatprep.subr.bf16.mxu0 %v1530_v38 }
  0x8f   : > { %966 = vmatpush1.bf16.msra.mxu0 %v1528_v39 }
  0x90   : > { %967 = vmatprep.subr.bf16.mxu0 %v1536_v40 }
  0x93   : > { %968 = vmatpush1.bf16.msra.mxu0 %v1534_v41 }
  0x94   : > { %969 = vmatprep.subr.bf16.mxu0 %v1542_v42 }
  0x97   : > { %970 = vmatpush1.bf16.msra.mxu0 %v1540_v43 }
  0x98   : > { %971 = vmatprep.subr.bf16.mxu0 %v1548_v44 }
  0x9b   : > { %972 = vmatpush1.bf16.msra.mxu0 %v1546_v45 }
  0x9c   : > { %973 = vmatprep.subr.bf16.mxu0 %v1554_v46 }
  0x9f   : > { %974 = vmatpush1.bf16.msra.mxu0 %v1552_v47 }
  0xa2   : > { %976 = vmatmul.mubr.bf16.vlgmr.msra.gmra.mrb[0].mxu0 %v779_v48 }
 0x142   : > { %v515_v49 = vpop.f32.mrb[0].mxu1 }
 0x143   : > { %v517_v50 = vpop.f32.mrb[1].mxu1 }
 0x144   : > { %v519_v51 = vpop.f32.mrb[2].mxu1 }
 0x145   : > { %v520_v52 = vpop.f32.mrb[3].mxu1 }
 0x175   : > { %v977_v59 = vpop.f32.mrb[0].mxu0 }
 0x176   : > { %v1346_v60 = vadd.f32 %v977_v59, %v515_v49  ;;  %v979_v61 = vpop.f32.mrb[1].mxu0 }
 0x177   : > { %v1347_v62 = vadd.f32 %v979_v61, %v517_v50  ;;  %v981_v0 = vpop.f32.mrb[2].mxu0 }
 0x178   : > { %v982_v2 = vpop.f32.mrb[3].mxu0 }
 0x179   : > { %v989_v4 = vcombine.low %v1346_v60, %v1347_v62  ;;  %1003 = sbr.rel (%p1340_p10) target bundleno = 404 (0x194), region = 40 }
 0x17b   : > { %v996_v5 = vrot.slane %v989_v4, %v995_v63 }
 0x17d   : > { %v998_v6 = vadd.f32 %v996_v5, %v986_v57 }
 0x17f   : > { %999 = vst [vmem:[#allocation2] sm:$0xf] %v998_v6 }
 0x186   : > { %v1004_v13 = vld [vmem:[#allocation2] sm:$0xf] }
 0x187   : > { %v1024_v16 = vadd.f32 %v1022_v14, %v1004_v13 }
 0x189   : > { %v1025_v17 = vmax.f32 %v1024_v16, 0.0 }
 0x18b   : > { %v1033_v19 = vrot.slane %v1025_v17, %v995_v63 }
 0x18d   : > { %v1034_v20 = vcombine.high %v1033_v19, %v1033_v19 }
 0x18f   : > { %v1341_v22 = vpack.c.bf16 %v1034_v20, %v1033_v19 }
 0x191   : > { %v1048_v23 = vrot.slane %v1341_v22, %v1047_v21 }
 0x193   : > { %1342 = vst.sshfl [vmem:[%s218_s8] sm:$0x5 pattern:$0x73625140] %v1048_v23 }
 0x194 PF: > { %s13_s18 = sadd.s32 1, %s1609_s18   ;;  %s1851_s12 = smov %s1597_s15 }
 0x195   : > { %p10_p11 = scmp.ge.s32.totalorder %s13_s18, 14   ;;  %s1852_s13 = smov %s1601_s16 }
 0x196   : > { %s1853_s14 = smov %s1605_s17  ;;  %s1854_s15 = smov %s1858_s19 }
 0x197   : > { %s1855_s16 = smov %s1862_s20  ;;  %s1856_s17 = smov %s1866_s21 }
 0x198   :  { %12 = sbr.rel (!%p10_p11) target bundleno = 4 (0x4), region = 73 }

</bundles_post_ra>
